<compile_context>
chip_gen: v5e
topology: v5e:2x2
jax: 0.10.0
libtpu: 0.0.40
codegen_flags: <defaults>
</compile_context>

<pallas_src>
import jax
import jax.numpy as jnp
import numpy as np
from jax.experimental import pallas as pl
from jax.experimental.pallas import tpu as pltpu


def _round_up(x, m):
    return ((x + m - 1) // m) * m


_KP1 = _round_up(9 * 3 * 3 * 3, 128)      # conv1 K (243) padded to 256 lanes
_NPOS = 36                                 # conv2/conv3 positions: 4 * 3 * 3


# ----------------------------- fused Pallas kernel ---------------------------

def _vqn_kernel(x1_ref, w1_ref, w2_ref, w3_ref, fc1w_ref, fc2w_ref,
                s1_ref, t1_ref, s2_ref, t2_ref, s3_ref, t3_ref,
                fb1_ref, fb2_ref, o_ref, pack_ref):
    """One batch tile of the VisualQNetwork forward; all VMEM-resident.

    x1_ref  : (36*tile_b, 256) bf16  im2col patches, rows ordered (q, b_local),
              each row = concat over the 9 conv2 offsets of the 27-elem conv1
              patch (zero-padded 243 -> 256).
    w1_ref  : (256, 9*c1)  block-diagonal conv1 weight
    w2_ref  : (9*c1, c2)   conv2 weight, K-concatenated over the 9 offsets
    w3_ref  : (36*c2, c3)  conv3 weight flattened over (d, h, w, ci)
    s*/t*   : (1, n) f32   folded BatchNorm scale / (conv-bias-folded) shift
    fb*     : (1, n) f32   fc biases
    pack_ref: (tile_b, 36*c2) f32 scratch for the conv3 operand.
    """
    f32, bf16 = jnp.float32, jnp.bfloat16
    rows = x1_ref.shape[0]                       # 36 * tile_b
    tb = o_ref.shape[0]                          # tile_b
    n_pos = rows // tb                           # 36
    c2 = w2_ref.shape[1]

    # conv1 + bn1 + relu : one wide-K matmul, one VPU pass
    h1 = jnp.dot(x1_ref[...], w1_ref[...], preferred_element_type=f32)
    h1 = jnp.maximum(h1 * s1_ref[...] + t1_ref[...], 0.0).astype(bf16)

    # conv2 + bn2 + relu : one wide-K matmul (K = 9*c1)
    h2 = jnp.dot(h1, w2_ref[...], preferred_element_type=f32)
    h2 = jnp.maximum(h2 * s2_ref[...] + t2_ref[...], 0.0)       # (rows, c2) f32

    # repack rows (position, batch) -> lanes (batch, position*c2):
    # 36 aligned slab copies (rows at multiples of 8, lanes at multiples of c2)
    for q in range(n_pos):
        pack_ref[:, q * c2:(q + 1) * c2] = h2[q * tb:(q + 1) * tb, :]
    h2p = pack_ref[...].astype(bf16)                             # one cast pass

    # conv3 + bn3 + relu : one matmul with K = 36*c2
    h3 = jnp.dot(h2p, w3_ref[...], preferred_element_type=f32)
    h3 = jnp.maximum(h3 * s3_ref[...] + t3_ref[...], 0.0).astype(bf16)

    # fc1 + relu (bf16 operands, f32 acc); fc2 kept in f32 for final precision
    f1 = jnp.dot(h3, fc1w_ref[...], preferred_element_type=f32) + fb1_ref[...]
    f1 = jnp.maximum(f1, 0.0)
    out = jnp.dot(f1, fc2w_ref[...], preferred_element_type=f32) + fb2_ref[...]
    o_ref[...] = out.astype(o_ref.dtype)


# ----------------------------- im2col glue (input only) ----------------------

def _conv1_patches(xb, tile_b):
    """(Bp, 3, 4, H, W) bf16 -> (36*Bp, 256) bf16 patches.

    Rows ordered (batch_tile, d, ho2, wo2, b_local); each row is the
    concatenation over the 9 conv2 kernel offsets p=(kh2,kw2) of the 27-element
    conv1 patch (order ci, ih, iw), zero-padded from 243 to 256 lanes.
    Only the [:27, :27] input region is consumed downstream."""
    Bp, C, D, H, W = xb.shape
    H1, W1 = (H - 3) // 3 + 1, (W - 3) // 3 + 1
    H2, W2 = (H1 - 3) // 3 + 1, (W1 - 3) // 3 + 1
    assert D == 4 and H2 == 3 and W2 == 3, (D, H2, W2)
    nt = Bp // tile_b
    xc = xb[:, :, :, :27, :27]
    xc = xc.reshape(nt, tile_b, C, D, 3, 3, 3, 3, 3, 3)
    # dims: t bl ci d ho2 kh2 ih wo2 kw2 iw  ->  t d ho2 wo2 bl kh2 kw2 ci ih iw
    xt = jnp.transpose(xc, (0, 3, 4, 7, 1, 5, 8, 2, 6, 9))
    x1 = xt.reshape(nt * _NPOS * tile_b, C * 81)                 # (rows, 243)
    return jnp.pad(x1, ((0, 0), (0, _KP1 - C * 81)))


# ----------------------------- parameters ------------------------------------

def init_params(key, *, c1, c2, c3, fc1_units, fc2_units, action_size):
    assert fc1_units == c3, "conv3 output is (c3,1,1,1); fc1_units must equal c3"
    ks = jax.random.split(key, 13)

    def winit(k, shape):   # He-like init (conv weight in PyTorch OIDHW layout)
        fan_in = int(np.prod(shape[1:]))
        return (jax.random.normal(k, shape, jnp.float32)
                * np.sqrt(2.0 / fan_in)).astype(jnp.float32)

    def bn(k, c):          # inference-mode BN folded into scale / shift
        k1, k2, k3, k4 = jax.random.split(k, 4)
        gamma = 1.0 + 0.1 * jax.random.normal(k1, (c,), jnp.float32)
        beta = 0.1 * jax.random.normal(k2, (c,), jnp.float32)
        rmean = 0.1 * jax.random.normal(k3, (c,), jnp.float32)
        rvar = 1.0 + 0.1 * jax.random.uniform(k4, (c,), jnp.float32)
        eps = 1e-5
        scale = gamma / jnp.sqrt(rvar + eps)
        shift = beta - rmean * scale
        return scale, shift

    p = {}
    p["w1"] = winit(ks[0], (c1, 3, 1, 3, 3))
    p["b1"] = 0.01 * jax.random.normal(ks[1], (c1,), jnp.float32)
    p["w2"] = winit(ks[2], (c2, c1, 1, 3, 3))
    p["b2"] = 0.01 * jax.random.normal(ks[3], (c2,), jnp.float32)
    p["w3"] = winit(ks[4], (c3, c2, 4, 3, 3))
    p["b3"] = 0.01 * jax.random.normal(ks[5], (c3,), jnp.float32)
    p["s1"], p["t1"] = bn(ks[6], c1)
    p["s2"], p["t2"] = bn(ks[7], c2)
    p["s3"], p["t3"] = bn(ks[8], c3)
    p["fc1_w"] = winit(ks[9], (fc2_units, fc1_units))
    p["fc1_b"] = 0.01 * jax.random.normal(ks[10], (fc2_units,), jnp.float32)
    p["fc2_w"] = winit(ks[11], (action_size, fc2_units))
    p["fc2_b"] = 0.01 * jax.random.normal(ks[12], (action_size,), jnp.float32)

    # --- kernel-layout params, prepared ONCE ---------------------------------
    bf16 = jnp.bfloat16
    # conv1: block-diagonal (256, 9*c1) so conv1 is a single wide-K matmul and
    # its output already has the K = 9*c1 layout conv2 needs (no relayout).
    w1m = jnp.transpose(p["w1"][:, :, 0], (1, 2, 3, 0)).reshape(27, c1)
    w1blk = jnp.zeros((_KP1, 9 * c1), jnp.float32)
    for off in range(9):
        w1blk = w1blk.at[off * 27:(off + 1) * 27, off * c1:(off + 1) * c1].set(w1m)
    p["w1blk"] = w1blk.astype(bf16)
    # conv2: K-concatenated over the 9 offsets -> (9*c1, c2)
    p["w2cat"] = jnp.transpose(p["w2"][:, :, 0], (2, 3, 1, 0)).reshape(9 * c1, c2).astype(bf16)
    # conv3: flattened over (d, h, w, ci) -> (36*c2, c3)
    p["w3flat"] = jnp.transpose(p["w3"], (2, 3, 4, 1, 0)).reshape(_NPOS * c2, c3).astype(bf16)
    p["fc1m"] = p["fc1_w"].T.astype(bf16)
    p["fc2m"] = p["fc2_w"].T.astype(jnp.float32)        # tiny matmul, keep f32
    # BN scale / (conv-bias-folded) shift rows; conv1's tiled 9x over lanes.
    t1 = p["b1"] * p["s1"] + p["t1"]
    p["s1r"] = jnp.tile(p["s1"], 9).reshape(1, 9 * c1)
    p["t1r"] = jnp.tile(t1, 9).reshape(1, 9 * c1)
    p["s2r"] = p["s2"].reshape(1, c2)
    p["t2r"] = (p["b2"] * p["s2"] + p["t2"]).reshape(1, c2)
    p["s3r"] = p["s3"].reshape(1, c3)
    p["t3r"] = (p["b3"] * p["s3"] + p["t3"]).reshape(1, c3)
    p["fb1"] = p["fc1_b"].reshape(1, fc2_units)
    p["fb2"] = p["fc2_b"].reshape(1, action_size)
    return p


# ----------------------------- forward passes --------------------------------

def forward_pallas(x6, p, *, tile_b=None):
    x = jnp.squeeze(x6, 0)                          # (B, 3, 4, H, W)
    B = x.shape[0]
    if tile_b is None:
        tile_b = min(128, _round_up(B, 8))          # M>=128 per tile when B allows
    Bp = _round_up(B, tile_b)
    n_tiles = Bp // tile_b
    xb = x.astype(jnp.bfloat16)
    if Bp != B:
        xb = jnp.pad(xb, ((0, Bp - B),) + ((0, 0),) * 4)
    x1 = _conv1_patches(xb, tile_b)                 # (36*Bp, 256) bf16

    c2 = p["w2cat"].shape[1]
    action_size = p["fb2"].shape[1]
    args = (x1, p["w1blk"], p["w2cat"], p["w3flat"], p["fc1m"], p["fc2m"],
            p["s1r"], p["t1r"], p["s2r"], p["t2r"], p["s3r"], p["t3r"],
            p["fb1"], p["fb2"])

    in_specs = [pl.BlockSpec((_NPOS * tile_b, _KP1), lambda i: (i, 0))]
    # weights / BN rows: same block every grid step -> fetched once, resident
    in_specs += [pl.BlockSpec(a.shape, lambda i: (0, 0)) for a in args[1:]]

    out = pl.pallas_call(
        _vqn_kernel,
        out_shape=jax.ShapeDtypeStruct((Bp, action_size), jnp.float32),
        grid=(n_tiles,),
        in_specs=in_specs,
        out_specs=pl.BlockSpec((tile_b, action_size), lambda i: (i, 0)),
        scratch_shapes=[pltpu.VMEM((tile_b, _NPOS * c2), jnp.float32)],
        compiler_params=pltpu.CompilerParams(
            dimension_semantics=("parallel",)),     # batch tiles -> both v7x TCs
    )(*args)
    return out[:B]


def forward_reference(x6, p):
    """Pure-JAX reference (true 3-D convs, f32) to validate the kernel path."""
    x = jnp.squeeze(x6, 0)

    def conv_bn_relu(x, w, b, s, t, stride):
        y = jax.lax.conv_general_dilated(
            x, w, window_strides=stride, padding="VALID",
            dimension_numbers=("NCDHW", "OIDHW", "NCDHW"))
        y = y + b[None, :, None, None, None]
        y = y * s[None, :, None, None, None] + t[None, :, None, None, None]
        return jnp.maximum(y, 0.0)

    x = conv_bn_relu(x, p["w1"], p["b1"], p["s1"], p["t1"], (1, 3, 3))
    x = conv_bn_relu(x, p["w2"], p["b2"], p["s2"], p["t2"], (1, 3, 3))
    x = conv_bn_relu(x, p["w3"], p["b3"], p["s3"], p["t3"], (1, 3, 3))
    x = x.reshape(x.shape[0], -1)
    x = jnp.maximum(x @ p["fc1_w"].T + p["fc1_b"], 0.0)
    return x @ p["fc2_w"].T + p["fc2_b"]


# ----------------------------- main -------------------------------------------

if __name__ == "__main__":
    # Small-but-consistent configuration:
    #   input (1, B, 3, 4, 30, 30) -> conv1 (B,c1,4,10,10) -> conv2 (B,c2,4,3,3)
    #   -> conv3 (B,c3,1,1,1) -> fc1 -> fc2.  c2=128 keeps the in-kernel
    #   lane-slab writes 128-aligned.
    B, C, D, H, W = 2, 3, 4, 30, 30
    c1, c2, c3 = 32, 128, 128
    fc1_units = c3 * 1 * 1 * 1
    fc2_units = 128
    action_size = 4

    key = jax.random.PRNGKey(0)
    kx, kp = jax.random.split(key)
    x = jax.random.normal(kx, (1, B, C, D, H, W), jnp.float32)
    params = init_params(kp, c1=c1, c2=c2, c3=c3,
                         fc1_units=fc1_units, fc2_units=fc2_units,
                         action_size=action_size)

    fwd = jax.jit(forward_pallas)
    out = jax.block_until_ready(fwd(x, params))
    ref = jax.block_until_ready(forward_reference(x, params))

    assert out.shape == (B, action_size), out.shape
    # Kernel uses bf16 MXU operands with f32 accumulation; compare to f32 ref.
    np.testing.assert_allclose(np.asarray(out), np.asarray(ref),
                               rtol=5e-2, atol=5e-2)
    print("KERNEL_OK")
</pallas_src>

<mosaic_0001>
module attributes {stable_mosaic.version = 11 : i64} {
  func.func @_vqn_kernel(%arg0: i32, %arg1: memref<288x256xbf16, #tpu.memory_space<vmem>>, %arg2: memref<256x288xbf16, #tpu.memory_space<vmem>>, %arg3: memref<288x128xbf16, #tpu.memory_space<vmem>>, %arg4: memref<4608x128xbf16, #tpu.memory_space<vmem>>, %arg5: memref<128x128xbf16, #tpu.memory_space<vmem>>, %arg6: memref<128x4xf32, #tpu.memory_space<vmem>>, %arg7: memref<1x288xf32, #tpu.memory_space<vmem>>, %arg8: memref<1x288xf32, #tpu.memory_space<vmem>>, %arg9: memref<1x128xf32, #tpu.memory_space<vmem>>, %arg10: memref<1x128xf32, #tpu.memory_space<vmem>>, %arg11: memref<1x128xf32, #tpu.memory_space<vmem>>, %arg12: memref<1x128xf32, #tpu.memory_space<vmem>>, %arg13: memref<1x128xf32, #tpu.memory_space<vmem>>, %arg14: memref<1x4xf32, #tpu.memory_space<vmem>>, %arg15: memref<8x4xf32, #tpu.memory_space<vmem>>, %arg16: memref<8x4608xf32, #tpu.memory_space<vmem>>) attributes {dimension_semantics = [#tpu.dimension_semantics<parallel>], iteration_bounds = array<i64: 1>, scalar_prefetch = 0 : i64, scratch_operands = 1 : i64, tpu.core_type = #tpu.core_type<tc>, window_params = [{transform_indices = @transform_0, window_bounds = array<i64: 288, 256>}, {pipeline_mode = #tpu.pipeline_mode<synchronous>, transform_indices = @transform_1, window_bounds = array<i64: 256, 288>}, {pipeline_mode = #tpu.pipeline_mode<synchronous>, transform_indices = @transform_2, window_bounds = array<i64: 288, 128>}, {pipeline_mode = #tpu.pipeline_mode<synchronous>, transform_indices = @transform_3, window_bounds = array<i64: 4608, 128>}, {pipeline_mode = #tpu.pipeline_mode<synchronous>, transform_indices = @transform_4, window_bounds = array<i64: 128, 128>}, {pipeline_mode = #tpu.pipeline_mode<synchronous>, transform_indices = @transform_5, window_bounds = array<i64: 128, 4>}, {pipeline_mode = #tpu.pipeline_mode<synchronous>, transform_indices = @transform_6, window_bounds = array<i64: 1, 288>}, {pipeline_mode = #tpu.pipeline_mode<synchronous>, transform_indices = @transform_7, window_bounds = array<i64: 1, 288>}, {pipeline_mode = #tpu.pipeline_mode<synchronous>, transform_indices = @transform_8, window_bounds = array<i64: 1, 128>}, {pipeline_mode = #tpu.pipeline_mode<synchronous>, transform_indices = @transform_9, window_bounds = array<i64: 1, 128>}, {pipeline_mode = #tpu.pipeline_mode<synchronous>, transform_indices = @transform_10, window_bounds = array<i64: 1, 128>}, {pipeline_mode = #tpu.pipeline_mode<synchronous>, transform_indices = @transform_11, window_bounds = array<i64: 1, 128>}, {pipeline_mode = #tpu.pipeline_mode<synchronous>, transform_indices = @transform_12, window_bounds = array<i64: 1, 128>}, {pipeline_mode = #tpu.pipeline_mode<synchronous>, transform_indices = @transform_13, window_bounds = array<i64: 1, 4>}, {transform_indices = @transform_14, window_bounds = array<i64: 8, 4>}]} {
    %c0 = arith.constant 0 : index
    %c0_0 = arith.constant 0 : index
    %0 = vector.load %arg1[%c0, %c0_0] : memref<288x256xbf16, #tpu.memory_space<vmem>>, vector<288x256xbf16>
    %c0_1 = arith.constant 0 : index
    %c0_2 = arith.constant 0 : index
    %1 = vector.load %arg2[%c0_1, %c0_2] : memref<256x288xbf16, #tpu.memory_space<vmem>>, vector<256x288xbf16>
    %cst = arith.constant dense<0.000000e+00> : vector<288x288xf32>
    %2 = tpu.matmul %0, %1, %cst {dimension_numbers = #tpu.dot_dimension_numbers<[1], [0], [0], [1], [0, 0, 1, 1], [], []>} : vector<288x256xbf16>, vector<256x288xbf16>, vector<288x288xf32> -> vector<288x288xf32>
    %c0_3 = arith.constant 0 : index
    %c0_4 = arith.constant 0 : index
    %3 = vector.load %arg7[%c0_3, %c0_4] : memref<1x288xf32, #tpu.memory_space<vmem>>, vector<1x288xf32>
    %4 = vector.broadcast %3 : vector<1x288xf32> to vector<288x288xf32>
    %5 = arith.mulf %2, %4 : vector<288x288xf32>
    %c0_5 = arith.constant 0 : index
    %c0_6 = arith.constant 0 : index
    %6 = vector.load %arg8[%c0_5, %c0_6] : memref<1x288xf32, #tpu.memory_space<vmem>>, vector<1x288xf32>
    %7 = vector.broadcast %6 : vector<1x288xf32> to vector<288x288xf32>
    %8 = arith.addf %5, %7 : vector<288x288xf32>
    %cst_7 = arith.constant 0.000000e+00 : f32
    %9 = vector.broadcast %cst_7 : f32 to vector<288x288xf32>
    %10 = arith.maximumf %8, %9 : vector<288x288xf32>
    %11 = arith.truncf %10 : vector<288x288xf32> to vector<288x288xbf16>
    %c0_8 = arith.constant 0 : index
    %c0_9 = arith.constant 0 : index
    %12 = vector.load %arg3[%c0_8, %c0_9] : memref<288x128xbf16, #tpu.memory_space<vmem>>, vector<288x128xbf16>
    %cst_10 = arith.constant dense<0.000000e+00> : vector<288x128xf32>
    %13 = tpu.matmul %11, %12, %cst_10 {dimension_numbers = #tpu.dot_dimension_numbers<[1], [0], [0], [1], [0, 0, 1, 1], [], []>} : vector<288x288xbf16>, vector<288x128xbf16>, vector<288x128xf32> -> vector<288x128xf32>
    %c0_11 = arith.constant 0 : index
    %c0_12 = arith.constant 0 : index
    %14 = vector.load %arg9[%c0_11, %c0_12] : memref<1x128xf32, #tpu.memory_space<vmem>>, vector<1x128xf32>
    %15 = vector.broadcast %14 : vector<1x128xf32> to vector<288x128xf32>
    %16 = arith.mulf %13, %15 : vector<288x128xf32>
    %c0_13 = arith.constant 0 : index
    %c0_14 = arith.constant 0 : index
    %17 = vector.load %arg10[%c0_13, %c0_14] : memref<1x128xf32, #tpu.memory_space<vmem>>, vector<1x128xf32>
    %18 = vector.broadcast %17 : vector<1x128xf32> to vector<288x128xf32>
    %19 = arith.addf %16, %18 : vector<288x128xf32>
    %cst_15 = arith.constant 0.000000e+00 : f32
    %20 = vector.broadcast %cst_15 : f32 to vector<288x128xf32>
    %21 = arith.maximumf %19, %20 : vector<288x128xf32>
    %22 = vector.extract_strided_slice %21 {offsets = [0, 0], sizes = [8, 128], strides = [1, 1]} : vector<288x128xf32> to vector<8x128xf32>
    %c0_16 = arith.constant 0 : index
    %c0_17 = arith.constant 0 : index
    %23 = vector.load %arg16[%c0_16, %c0_17] : memref<8x4608xf32, #tpu.memory_space<vmem>>, vector<8x128xf32>
    tpu.vector_store %arg16[%c0_16, %c0_17], %22 {strides = array<i32>} : memref<8x4608xf32, #tpu.memory_space<vmem>>, vector<8x128xf32>,
    %24 = vector.extract_strided_slice %21 {offsets = [8, 0], sizes = [8, 128], strides = [1, 1]} : vector<288x128xf32> to vector<8x128xf32>
    %c0_18 = arith.constant 0 : index
    %c128 = arith.constant 128 : index
    %25 = vector.load %arg16[%c0_18, %c128] : memref<8x4608xf32, #tpu.memory_space<vmem>>, vector<8x128xf32>
    tpu.vector_store %arg16[%c0_18, %c128], %24 {strides = array<i32>} : memref<8x4608xf32, #tpu.memory_space<vmem>>, vector<8x128xf32>,
    %26 = vector.extract_strided_slice %21 {offsets = [16, 0], sizes = [8, 128], strides = [1, 1]} : vector<288x128xf32> to vector<8x128xf32>
    %c0_19 = arith.constant 0 : index
    %c256 = arith.constant 256 : index
    %27 = vector.load %arg16[%c0_19, %c256] : memref<8x4608xf32, #tpu.memory_space<vmem>>, vector<8x128xf32>
    tpu.vector_store %arg16[%c0_19, %c256], %26 {strides = array<i32>} : memref<8x4608xf32, #tpu.memory_space<vmem>>, vector<8x128xf32>,
    %28 = vector.extract_strided_slice %21 {offsets = [24, 0], sizes = [8, 128], strides = [1, 1]} : vector<288x128xf32> to vector<8x128xf32>
    %c0_20 = arith.constant 0 : index
    %c384 = arith.constant 384 : index
    %29 = vector.load %arg16[%c0_20, %c384] : memref<8x4608xf32, #tpu.memory_space<vmem>>, vector<8x128xf32>
    tpu.vector_store %arg16[%c0_20, %c384], %28 {strides = array<i32>} : memref<8x4608xf32, #tpu.memory_space<vmem>>, vector<8x128xf32>,
    %30 = vector.extract_strided_slice %21 {offsets = [32, 0], sizes = [8, 128], strides = [1, 1]} : vector<288x128xf32> to vector<8x128xf32>
    %c0_21 = arith.constant 0 : index
    %c512 = arith.constant 512 : index
    %31 = vector.load %arg16[%c0_21, %c512] : memref<8x4608xf32, #tpu.memory_space<vmem>>, vector<8x128xf32>
    tpu.vector_store %arg16[%c0_21, %c512], %30 {strides = array<i32>} : memref<8x4608xf32, #tpu.memory_space<vmem>>, vector<8x128xf32>,
    %32 = vector.extract_strided_slice %21 {offsets = [40, 0], sizes = [8, 128], strides = [1, 1]} : vector<288x128xf32> to vector<8x128xf32>
    %c0_22 = arith.constant 0 : index
    %c640 = arith.constant 640 : index
    %33 = vector.load %arg16[%c0_22, %c640] : memref<8x4608xf32, #tpu.memory_space<vmem>>, vector<8x128xf32>
    tpu.vector_store %arg16[%c0_22, %c640], %32 {strides = array<i32>} : memref<8x4608xf32, #tpu.memory_space<vmem>>, vector<8x128xf32>,
    %34 = vector.extract_strided_slice %21 {offsets = [48, 0], sizes = [8, 128], strides = [1, 1]} : vector<288x128xf32> to vector<8x128xf32>
    %c0_23 = arith.constant 0 : index
    %c768 = arith.constant 768 : index
    %35 = vector.load %arg16[%c0_23, %c768] : memref<8x4608xf32, #tpu.memory_space<vmem>>, vector<8x128xf32>
    tpu.vector_store %arg16[%c0_23, %c768], %34 {strides = array<i32>} : memref<8x4608xf32, #tpu.memory_space<vmem>>, vector<8x128xf32>,
    %36 = vector.extract_strided_slice %21 {offsets = [56, 0], sizes = [8, 128], strides = [1, 1]} : vector<288x128xf32> to vector<8x128xf32>
    %c0_24 = arith.constant 0 : index
    %c896 = arith.constant 896 : index
    %37 = vector.load %arg16[%c0_24, %c896] : memref<8x4608xf32, #tpu.memory_space<vmem>>, vector<8x128xf32>
    tpu.vector_store %arg16[%c0_24, %c896], %36 {strides = array<i32>} : memref<8x4608xf32, #tpu.memory_space<vmem>>, vector<8x128xf32>,
    %38 = vector.extract_strided_slice %21 {offsets = [64, 0], sizes = [8, 128], strides = [1, 1]} : vector<288x128xf32> to vector<8x128xf32>
    %c0_25 = arith.constant 0 : index
    %c1024 = arith.constant 1024 : index
    %39 = vector.load %arg16[%c0_25, %c1024] : memref<8x4608xf32, #tpu.memory_space<vmem>>, vector<8x128xf32>
    tpu.vector_store %arg16[%c0_25, %c1024], %38 {strides = array<i32>} : memref<8x4608xf32, #tpu.memory_space<vmem>>, vector<8x128xf32>,
    %40 = vector.extract_strided_slice %21 {offsets = [72, 0], sizes = [8, 128], strides = [1, 1]} : vector<288x128xf32> to vector<8x128xf32>
    %c0_26 = arith.constant 0 : index
    %c1152 = arith.constant 1152 : index
    %41 = vector.load %arg16[%c0_26, %c1152] : memref<8x4608xf32, #tpu.memory_space<vmem>>, vector<8x128xf32>
    tpu.vector_store %arg16[%c0_26, %c1152], %40 {strides = array<i32>} : memref<8x4608xf32, #tpu.memory_space<vmem>>, vector<8x128xf32>,
    %42 = vector.extract_strided_slice %21 {offsets = [80, 0], sizes = [8, 128], strides = [1, 1]} : vector<288x128xf32> to vector<8x128xf32>
    %c0_27 = arith.constant 0 : index
    %c1280 = arith.constant 1280 : index
    %43 = vector.load %arg16[%c0_27, %c1280] : memref<8x4608xf32, #tpu.memory_space<vmem>>, vector<8x128xf32>
    tpu.vector_store %arg16[%c0_27, %c1280], %42 {strides = array<i32>} : memref<8x4608xf32, #tpu.memory_space<vmem>>, vector<8x128xf32>,
    %44 = vector.extract_strided_slice %21 {offsets = [88, 0], sizes = [8, 128], strides = [1, 1]} : vector<288x128xf32> to vector<8x128xf32>
    %c0_28 = arith.constant 0 : index
    %c1408 = arith.constant 1408 : index
    %45 = vector.load %arg16[%c0_28, %c1408] : memref<8x4608xf32, #tpu.memory_space<vmem>>, vector<8x128xf32>
    tpu.vector_store %arg16[%c0_28, %c1408], %44 {strides = array<i32>} : memref<8x4608xf32, #tpu.memory_space<vmem>>, vector<8x128xf32>,
    %46 = vector.extract_strided_slice %21 {offsets = [96, 0], sizes = [8, 128], strides = [1, 1]} : vector<288x128xf32> to vector<8x128xf32>
    %c0_29 = arith.constant 0 : index
    %c1536 = arith.constant 1536 : index
    %47 = vector.load %arg16[%c0_29, %c1536] : memref<8x4608xf32, #tpu.memory_space<vmem>>, vector<8x128xf32>
    tpu.vector_store %arg16[%c0_29, %c1536], %46 {strides = array<i32>} : memref<8x4608xf32, #tpu.memory_space<vmem>>, vector<8x128xf32>,
    %48 = vector.extract_strided_slice %21 {offsets = [104, 0], sizes = [8, 128], strides = [1, 1]} : vector<288x128xf32> to vector<8x128xf32>
    %c0_30 = arith.constant 0 : index
    %c1664 = arith.constant 1664 : index
    %49 = vector.load %arg16[%c0_30, %c1664] : memref<8x4608xf32, #tpu.memory_space<vmem>>, vector<8x128xf32>
    tpu.vector_store %arg16[%c0_30, %c1664], %48 {strides = array<i32>} : memref<8x4608xf32, #tpu.memory_space<vmem>>, vector<8x128xf32>,
    %50 = vector.extract_strided_slice %21 {offsets = [112, 0], sizes = [8, 128], strides = [1, 1]} : vector<288x128xf32> to vector<8x128xf32>
    %c0_31 = arith.constant 0 : index
    %c1792 = arith.constant 1792 : index
    %51 = vector.load %arg16[%c0_31, %c1792] : memref<8x4608xf32, #tpu.memory_space<vmem>>, vector<8x128xf32>
    tpu.vector_store %arg16[%c0_31, %c1792], %50 {strides = array<i32>} : memref<8x4608xf32, #tpu.memory_space<vmem>>, vector<8x128xf32>,
    %52 = vector.extract_strided_slice %21 {offsets = [120, 0], sizes = [8, 128], strides = [1, 1]} : vector<288x128xf32> to vector<8x128xf32>
    %c0_32 = arith.constant 0 : index
    %c1920 = arith.constant 1920 : index
    %53 = vector.load %arg16[%c0_32, %c1920] : memref<8x4608xf32, #tpu.memory_space<vmem>>, vector<8x128xf32>
    tpu.vector_store %arg16[%c0_32, %c1920], %52 {strides = array<i32>} : memref<8x4608xf32, #tpu.memory_space<vmem>>, vector<8x128xf32>,
    %54 = vector.extract_strided_slice %21 {offsets = [128, 0], sizes = [8, 128], strides = [1, 1]} : vector<288x128xf32> to vector<8x128xf32>
    %c0_33 = arith.constant 0 : index
    %c2048 = arith.constant 2048 : index
    %55 = vector.load %arg16[%c0_33, %c2048] : memref<8x4608xf32, #tpu.memory_space<vmem>>, vector<8x128xf32>
    tpu.vector_store %arg16[%c0_33, %c2048], %54 {strides = array<i32>} : memref<8x4608xf32, #tpu.memory_space<vmem>>, vector<8x128xf32>,
    %56 = vector.extract_strided_slice %21 {offsets = [136, 0], sizes = [8, 128], strides = [1, 1]} : vector<288x128xf32> to vector<8x128xf32>
    %c0_34 = arith.constant 0 : index
    %c2176 = arith.constant 2176 : index
    %57 = vector.load %arg16[%c0_34, %c2176] : memref<8x4608xf32, #tpu.memory_space<vmem>>, vector<8x128xf32>
    tpu.vector_store %arg16[%c0_34, %c2176], %56 {strides = array<i32>} : memref<8x4608xf32, #tpu.memory_space<vmem>>, vector<8x128xf32>,
    %58 = vector.extract_strided_slice %21 {offsets = [144, 0], sizes = [8, 128], strides = [1, 1]} : vector<288x128xf32> to vector<8x128xf32>
    %c0_35 = arith.constant 0 : index
    %c2304 = arith.constant 2304 : index
    %59 = vector.load %arg16[%c0_35, %c2304] : memref<8x4608xf32, #tpu.memory_space<vmem>>, vector<8x128xf32>
    tpu.vector_store %arg16[%c0_35, %c2304], %58 {strides = array<i32>} : memref<8x4608xf32, #tpu.memory_space<vmem>>, vector<8x128xf32>,
    %60 = vector.extract_strided_slice %21 {offsets = [152, 0], sizes = [8, 128], strides = [1, 1]} : vector<288x128xf32> to vector<8x128xf32>
    %c0_36 = arith.constant 0 : index
    %c2432 = arith.constant 2432 : index
    %61 = vector.load %arg16[%c0_36, %c2432] : memref<8x4608xf32, #tpu.memory_space<vmem>>, vector<8x128xf32>
    tpu.vector_store %arg16[%c0_36, %c2432], %60 {strides = array<i32>} : memref<8x4608xf32, #tpu.memory_space<vmem>>, vector<8x128xf32>,
    %62 = vector.extract_strided_slice %21 {offsets = [160, 0], sizes = [8, 128], strides = [1, 1]} : vector<288x128xf32> to vector<8x128xf32>
    %c0_37 = arith.constant 0 : index
    %c2560 = arith.constant 2560 : index
    %63 = vector.load %arg16[%c0_37, %c2560] : memref<8x4608xf32, #tpu.memory_space<vmem>>, vector<8x128xf32>
    tpu.vector_store %arg16[%c0_37, %c2560], %62 {strides = array<i32>} : memref<8x4608xf32, #tpu.memory_space<vmem>>, vector<8x128xf32>,
    %64 = vector.extract_strided_slice %21 {offsets = [168, 0], sizes = [8, 128], strides = [1, 1]} : vector<288x128xf32> to vector<8x128xf32>
    %c0_38 = arith.constant 0 : index
    %c2688 = arith.constant 2688 : index
    %65 = vector.load %arg16[%c0_38, %c2688] : memref<8x4608xf32, #tpu.memory_space<vmem>>, vector<8x128xf32>
    tpu.vector_store %arg16[%c0_38, %c2688], %64 {strides = array<i32>} : memref<8x4608xf32, #tpu.memory_space<vmem>>, vector<8x128xf32>,
    %66 = vector.extract_strided_slice %21 {offsets = [176, 0], sizes = [8, 128], strides = [1, 1]} : vector<288x128xf32> to vector<8x128xf32>
    %c0_39 = arith.constant 0 : index
    %c2816 = arith.constant 2816 : index
    %67 = vector.load %arg16[%c0_39, %c2816] : memref<8x4608xf32, #tpu.memory_space<vmem>>, vector<8x128xf32>
    tpu.vector_store %arg16[%c0_39, %c2816], %66 {strides = array<i32>} : memref<8x4608xf32, #tpu.memory_space<vmem>>, vector<8x128xf32>,
    %68 = vector.extract_strided_slice %21 {offsets = [184, 0], sizes = [8, 128], strides = [1, 1]} : vector<288x128xf32> to vector<8x128xf32>
    %c0_40 = arith.constant 0 : index
    %c2944 = arith.constant 2944 : index
    %69 = vector.load %arg16[%c0_40, %c2944] : memref<8x4608xf32, #tpu.memory_space<vmem>>, vector<8x128xf32>
    tpu.vector_store %arg16[%c0_40, %c2944], %68 {strides = array<i32>} : memref<8x4608xf32, #tpu.memory_space<vmem>>, vector<8x128xf32>,
    %70 = vector.extract_strided_slice %21 {offsets = [192, 0], sizes = [8, 128], strides = [1, 1]} : vector<288x128xf32> to vector<8x128xf32>
    %c0_41 = arith.constant 0 : index
    %c3072 = arith.constant 3072 : index
    %71 = vector.load %arg16[%c0_41, %c3072] : memref<8x4608xf32, #tpu.memory_space<vmem>>, vector<8x128xf32>
    tpu.vector_store %arg16[%c0_41, %c3072], %70 {strides = array<i32>} : memref<8x4608xf32, #tpu.memory_space<vmem>>, vector<8x128xf32>,
    %72 = vector.extract_strided_slice %21 {offsets = [200, 0], sizes = [8, 128], strides = [1, 1]} : vector<288x128xf32> to vector<8x128xf32>
    %c0_42 = arith.constant 0 : index
    %c3200 = arith.constant 3200 : index
    %73 = vector.load %arg16[%c0_42, %c3200] : memref<8x4608xf32, #tpu.memory_space<vmem>>, vector<8x128xf32>
    tpu.vector_store %arg16[%c0_42, %c3200], %72 {strides = array<i32>} : memref<8x4608xf32, #tpu.memory_space<vmem>>, vector<8x128xf32>,
    %74 = vector.extract_strided_slice %21 {offsets = [208, 0], sizes = [8, 128], strides = [1, 1]} : vector<288x128xf32> to vector<8x128xf32>
    %c0_43 = arith.constant 0 : index
    %c3328 = arith.constant 3328 : index
    %75 = vector.load %arg16[%c0_43, %c3328] : memref<8x4608xf32, #tpu.memory_space<vmem>>, vector<8x128xf32>
    tpu.vector_store %arg16[%c0_43, %c3328], %74 {strides = array<i32>} : memref<8x4608xf32, #tpu.memory_space<vmem>>, vector<8x128xf32>,
    %76 = vector.extract_strided_slice %21 {offsets = [216, 0], sizes = [8, 128], strides = [1, 1]} : vector<288x128xf32> to vector<8x128xf32>
    %c0_44 = arith.constant 0 : index
    %c3456 = arith.constant 3456 : index
    %77 = vector.load %arg16[%c0_44, %c3456] : memref<8x4608xf32, #tpu.memory_space<vmem>>, vector<8x128xf32>
    tpu.vector_store %arg16[%c0_44, %c3456], %76 {strides = array<i32>} : memref<8x4608xf32, #tpu.memory_space<vmem>>, vector<8x128xf32>,
    %78 = vector.extract_strided_slice %21 {offsets = [224, 0], sizes = [8, 128], strides = [1, 1]} : vector<288x128xf32> to vector<8x128xf32>
    %c0_45 = arith.constant 0 : index
    %c3584 = arith.constant 3584 : index
    %79 = vector.load %arg16[%c0_45, %c3584] : memref<8x4608xf32, #tpu.memory_space<vmem>>, vector<8x128xf32>
    tpu.vector_store %arg16[%c0_45, %c3584], %78 {strides = array<i32>} : memref<8x4608xf32, #tpu.memory_space<vmem>>, vector<8x128xf32>,
    %80 = vector.extract_strided_slice %21 {offsets = [232, 0], sizes = [8, 128], strides = [1, 1]} : vector<288x128xf32> to vector<8x128xf32>
    %c0_46 = arith.constant 0 : index
    %c3712 = arith.constant 3712 : index
    %81 = vector.load %arg16[%c0_46, %c3712] : memref<8x4608xf32, #tpu.memory_space<vmem>>, vector<8x128xf32>
    tpu.vector_store %arg16[%c0_46, %c3712], %80 {strides = array<i32>} : memref<8x4608xf32, #tpu.memory_space<vmem>>, vector<8x128xf32>,
    %82 = vector.extract_strided_slice %21 {offsets = [240, 0], sizes = [8, 128], strides = [1, 1]} : vector<288x128xf32> to vector<8x128xf32>
    %c0_47 = arith.constant 0 : index
    %c3840 = arith.constant 3840 : index
    %83 = vector.load %arg16[%c0_47, %c3840] : memref<8x4608xf32, #tpu.memory_space<vmem>>, vector<8x128xf32>
    tpu.vector_store %arg16[%c0_47, %c3840], %82 {strides = array<i32>} : memref<8x4608xf32, #tpu.memory_space<vmem>>, vector<8x128xf32>,
    %84 = vector.extract_strided_slice %21 {offsets = [248, 0], sizes = [8, 128], strides = [1, 1]} : vector<288x128xf32> to vector<8x128xf32>
    %c0_48 = arith.constant 0 : index
    %c3968 = arith.constant 3968 : index
    %85 = vector.load %arg16[%c0_48, %c3968] : memref<8x4608xf32, #tpu.memory_space<vmem>>, vector<8x128xf32>
    tpu.vector_store %arg16[%c0_48, %c3968], %84 {strides = array<i32>} : memref<8x4608xf32, #tpu.memory_space<vmem>>, vector<8x128xf32>,
    %86 = vector.extract_strided_slice %21 {offsets = [256, 0], sizes = [8, 128], strides = [1, 1]} : vector<288x128xf32> to vector<8x128xf32>
    %c0_49 = arith.constant 0 : index
    %c4096 = arith.constant 4096 : index
    %87 = vector.load %arg16[%c0_49, %c4096] : memref<8x4608xf32, #tpu.memory_space<vmem>>, vector<8x128xf32>
    tpu.vector_store %arg16[%c0_49, %c4096], %86 {strides = array<i32>} : memref<8x4608xf32, #tpu.memory_space<vmem>>, vector<8x128xf32>,
    %88 = vector.extract_strided_slice %21 {offsets = [264, 0], sizes = [8, 128], strides = [1, 1]} : vector<288x128xf32> to vector<8x128xf32>
    %c0_50 = arith.constant 0 : index
    %c4224 = arith.constant 4224 : index
    %89 = vector.load %arg16[%c0_50, %c4224] : memref<8x4608xf32, #tpu.memory_space<vmem>>, vector<8x128xf32>
    tpu.vector_store %arg16[%c0_50, %c4224], %88 {strides = array<i32>} : memref<8x4608xf32, #tpu.memory_space<vmem>>, vector<8x128xf32>,
    %90 = vector.extract_strided_slice %21 {offsets = [272, 0], sizes = [8, 128], strides = [1, 1]} : vector<288x128xf32> to vector<8x128xf32>
    %c0_51 = arith.constant 0 : index
    %c4352 = arith.constant 4352 : index
    %91 = vector.load %arg16[%c0_51, %c4352] : memref<8x4608xf32, #tpu.memory_space<vmem>>, vector<8x128xf32>
    tpu.vector_store %arg16[%c0_51, %c4352], %90 {strides = array<i32>} : memref<8x4608xf32, #tpu.memory_space<vmem>>, vector<8x128xf32>,
    %92 = vector.extract_strided_slice %21 {offsets = [280, 0], sizes = [8, 128], strides = [1, 1]} : vector<288x128xf32> to vector<8x128xf32>
    %c0_52 = arith.constant 0 : index
    %c4480 = arith.constant 4480 : index
    %93 = vector.load %arg16[%c0_52, %c4480] : memref<8x4608xf32, #tpu.memory_space<vmem>>, vector<8x128xf32>
    tpu.vector_store %arg16[%c0_52, %c4480], %92 {strides = array<i32>} : memref<8x4608xf32, #tpu.memory_space<vmem>>, vector<8x128xf32>,
    %c0_53 = arith.constant 0 : index
    %c0_54 = arith.constant 0 : index
    %94 = vector.load %arg16[%c0_53, %c0_54] : memref<8x4608xf32, #tpu.memory_space<vmem>>, vector<8x4608xf32>
    %95 = arith.truncf %94 : vector<8x4608xf32> to vector<8x4608xbf16>
    %c0_55 = arith.constant 0 : index
    %c0_56 = arith.constant 0 : index
    %96 = vector.load %arg4[%c0_55, %c0_56] : memref<4608x128xbf16, #tpu.memory_space<vmem>>, vector<4608x128xbf16>
    %cst_57 = arith.constant dense<0.000000e+00> : vector<8x128xf32>
    %97 = tpu.matmul %95, %96, %cst_57 {dimension_numbers = #tpu.dot_dimension_numbers<[1], [0], [0], [1], [0, 0, 1, 1], [], []>} : vector<8x4608xbf16>, vector<4608x128xbf16>, vector<8x128xf32> -> vector<8x128xf32>
    %c0_58 = arith.constant 0 : index
    %c0_59 = arith.constant 0 : index
    %98 = vector.load %arg11[%c0_58, %c0_59] : memref<1x128xf32, #tpu.memory_space<vmem>>, vector<1x128xf32>
    %99 = vector.broadcast %98 : vector<1x128xf32> to vector<8x128xf32>
    %100 = arith.mulf %97, %99 : vector<8x128xf32>
    %c0_60 = arith.constant 0 : index
    %c0_61 = arith.constant 0 : index
    %101 = vector.load %arg12[%c0_60, %c0_61] : memref<1x128xf32, #tpu.memory_space<vmem>>, vector<1x128xf32>
    %102 = vector.broadcast %101 : vector<1x128xf32> to vector<8x128xf32>
    %103 = arith.addf %100, %102 : vector<8x128xf32>
    %cst_62 = arith.constant 0.000000e+00 : f32
    %104 = vector.broadcast %cst_62 : f32 to vector<8x128xf32>
    %105 = arith.maximumf %103, %104 : vector<8x128xf32>
    %106 = arith.truncf %105 : vector<8x128xf32> to vector<8x128xbf16>
    %c0_63 = arith.constant 0 : index
    %c0_64 = arith.constant 0 : index
    %107 = vector.load %arg5[%c0_63, %c0_64] : memref<128x128xbf16, #tpu.memory_space<vmem>>, vector<128x128xbf16>
    %cst_65 = arith.constant dense<0.000000e+00> : vector<8x128xf32>
    %108 = tpu.matmul %106, %107, %cst_65 {dimension_numbers = #tpu.dot_dimension_numbers<[1], [0], [0], [1], [0, 0, 1, 1], [], []>} : vector<8x128xbf16>, vector<128x128xbf16>, vector<8x128xf32> -> vector<8x128xf32>
    %c0_66 = arith.constant 0 : index
    %c0_67 = arith.constant 0 : index
    %109 = vector.load %arg13[%c0_66, %c0_67] : memref<1x128xf32, #tpu.memory_space<vmem>>, vector<1x128xf32>
    %110 = vector.broadcast %109 : vector<1x128xf32> to vector<8x128xf32>
    %111 = arith.addf %108, %110 : vector<8x128xf32>
    %cst_68 = arith.constant 0.000000e+00 : f32
    %112 = vector.broadcast %cst_68 : f32 to vector<8x128xf32>
    %113 = arith.maximumf %111, %112 : vector<8x128xf32>
    %c0_69 = arith.constant 0 : index
    %c0_70 = arith.constant 0 : index
    %114 = vector.load %arg6[%c0_69, %c0_70] : memref<128x4xf32, #tpu.memory_space<vmem>>, vector<128x4xf32>
    %cst_71 = arith.constant dense<0.000000e+00> : vector<8x4xf32>
    %115 = tpu.matmul %113, %114, %cst_71 {dimension_numbers = #tpu.dot_dimension_numbers<[1], [0], [0], [1], [0, 0, 1, 1], [], []>} : vector<8x128xf32>, vector<128x4xf32>, vector<8x4xf32> -> vector<8x4xf32>
    %c0_72 = arith.constant 0 : index
    %c0_73 = arith.constant 0 : index
    %116 = vector.load %arg14[%c0_72, %c0_73] : memref<1x4xf32, #tpu.memory_space<vmem>>, vector<1x4xf32>
    %117 = vector.broadcast %116 : vector<1x4xf32> to vector<8x4xf32>
    %118 = arith.addf %115, %117 : vector<8x4xf32>
    %c0_74 = arith.constant 0 : index
    %c0_75 = arith.constant 0 : index
    %119 = vector.load %arg15[%c0_74, %c0_75] : memref<8x4xf32, #tpu.memory_space<vmem>>, vector<8x4xf32>
    tpu.vector_store %arg15[%c0_74, %c0_75], %118 {strides = array<i32>} : memref<8x4xf32, #tpu.memory_space<vmem>>, vector<8x4xf32>,
    return
  }
  func.func @transform_0(%arg0: i32) -> (i32, i32) {
    %c0_i32 = arith.constant 0 : i32
    %c0_i32_0 = arith.constant 0 : i32
    return %arg0, %c0_i32 : i32, i32
  }
  func.func @transform_1(%arg0: i32) -> (i32, i32) {
    %c0_i32 = arith.constant 0 : i32
    %c0_i32_0 = arith.constant 0 : i32
    %c0_i32_1 = arith.constant 0 : i32
    return %c0_i32, %c0_i32_0 : i32, i32
  }
  func.func @transform_2(%arg0: i32) -> (i32, i32) {
    %c0_i32 = arith.constant 0 : i32
    %c0_i32_0 = arith.constant 0 : i32
    %c0_i32_1 = arith.constant 0 : i32
    return %c0_i32, %c0_i32_0 : i32, i32
  }
  func.func @transform_3(%arg0: i32) -> (i32, i32) {
    %c0_i32 = arith.constant 0 : i32
    %c0_i32_0 = arith.constant 0 : i32
    %c0_i32_1 = arith.constant 0 : i32
    return %c0_i32, %c0_i32_0 : i32, i32
  }
  func.func @transform_4(%arg0: i32) -> (i32, i32) {
    %c0_i32 = arith.constant 0 : i32
    %c0_i32_0 = arith.constant 0 : i32
    %c0_i32_1 = arith.constant 0 : i32
    return %c0_i32, %c0_i32_0 : i32, i32
  }
  func.func @transform_5(%arg0: i32) -> (i32, i32) {
    %c0_i32 = arith.constant 0 : i32
    %c0_i32_0 = arith.constant 0 : i32
    %c0_i32_1 = arith.constant 0 : i32
    return %c0_i32, %c0_i32_0 : i32, i32
  }
  func.func @transform_6(%arg0: i32) -> (i32, i32) {
    %c0_i32 = arith.constant 0 : i32
    %c0_i32_0 = arith.constant 0 : i32
    %c0_i32_1 = arith.constant 0 : i32
    return %c0_i32, %c0_i32_0 : i32, i32
  }
  func.func @transform_7(%arg0: i32) -> (i32, i32) {
    %c0_i32 = arith.constant 0 : i32
    %c0_i32_0 = arith.constant 0 : i32
    %c0_i32_1 = arith.constant 0 : i32
    return %c0_i32, %c0_i32_0 : i32, i32
  }
  func.func @transform_8(%arg0: i32) -> (i32, i32) {
    %c0_i32 = arith.constant 0 : i32
    %c0_i32_0 = arith.constant 0 : i32
    %c0_i32_1 = arith.constant 0 : i32
    return %c0_i32, %c0_i32_0 : i32, i32
  }
  func.func @transform_9(%arg0: i32) -> (i32, i32) {
    %c0_i32 = arith.constant 0 : i32
    %c0_i32_0 = arith.constant 0 : i32
    %c0_i32_1 = arith.constant 0 : i32
    return %c0_i32, %c0_i32_0 : i32, i32
  }
  func.func @transform_10(%arg0: i32) -> (i32, i32) {
    %c0_i32 = arith.constant 0 : i32
    %c0_i32_0 = arith.constant 0 : i32
    %c0_i32_1 = arith.constant 0 : i32
    return %c0_i32, %c0_i32_0 : i32, i32
  }
  func.func @transform_11(%arg0: i32) -> (i32, i32) {
    %c0_i32 = arith.constant 0 : i32
    %c0_i32_0 = arith.constant 0 : i32
    %c0_i32_1 = arith.constant 0 : i32
    return %c0_i32, %c0_i32_0 : i32, i32
  }
  func.func @transform_12(%arg0: i32) -> (i32, i32) {
    %c0_i32 = arith.constant 0 : i32
    %c0_i32_0 = arith.constant 0 : i32
    %c0_i32_1 = arith.constant 0 : i32
    return %c0_i32, %c0_i32_0 : i32, i32
  }
  func.func @transform_13(%arg0: i32) -> (i32, i32) {
    %c0_i32 = arith.constant 0 : i32
    %c0_i32_0 = arith.constant 0 : i32
    %c0_i32_1 = arith.constant 0 : i32
    return %c0_i32, %c0_i32_0 : i32, i32
  }
  func.func @transform_14(%arg0: i32) -> (i32, i32) {
    %c0_i32 = arith.constant 0 : i32
    %c0_i32_0 = arith.constant 0 : i32
    return %arg0, %c0_i32 : i32, i32
  }
}

</mosaic_0001>

<bundles_post_ra>
// kernel: forward_pallas.1
= control target key start
LH: loop header
LB: loop body
LE: loop exit
PB: predicated region body
PF: predicated region fallthrough
CT: control target
= control target key end

     0   :  { %vm1716_vm0 = vcmask 261120   ;;  %vm5198_vm1 = vcmask 31744   ;;  %s9722_s1 = inlined_call_operand.vmem [shape: bf16[256,288], index: 1, kind: input, shape index: {}]   ;;  %s9723_s0 = inlined_call_operand.vmem [shape: bf16[288,256], index: 0, kind: input, shape index: {}]   ;;  %s9724_s6 = inlined_call_operand.vmem [shape: f32[1,288], index: 6, kind: input, shape index: {}]   ;;  %s9725_s7 = inlined_call_operand.vmem [shape: f32[1,288], index: 7, kind: input, shape index: {}]   ;;  %s9726_s2 = inlined_call_operand.vmem [shape: bf16[288,128], index: 2, kind: input, shape index: {}]   ;;  %s9727_s3 = inlined_call_operand.vmem [shape: bf16[4608,128], index: 3, kind: input, shape index: {}]   ;;  %s9728_s8 = inlined_call_operand.vmem [shape: f32[1,128], index: 8, kind: input, shape index: {}]   ;;  %s9729_s9 = inlined_call_operand.vmem [shape: f32[1,128], index: 9, kind: input, shape index: {}]   ;;  %s9730_s10 = inlined_call_operand.vmem [shape: f32[1,128], index: 10, kind: input, shape index: {}]   ;;  %s9731_s11 = inlined_call_operand.vmem [shape: f32[1,128], index: 11, kind: input, shape index: {}]   ;;  %s9732_s12 = inlined_call_operand.vmem [shape: f32[1,128], index: 12, kind: input, shape index: {}]   ;;  %s9733_s4 = inlined_call_operand.vmem [shape: bf16[128,128], index: 4, kind: input, shape index: {}]   ;;  %s9734_s5 = inlined_call_operand.vmem [shape: f32[128,4], index: 5, kind: input, shape index: {}]   ;;  %s9735_s13 = inlined_call_operand.vmem [shape: f32[1,4], index: 13, kind: input, shape index: {}]   ;;  %s9736_s14 = inlined_call_operand.vmem [shape: f32[8,4], index: 14, kind: output, shape index: {}]  }
   0x1   :  { %v5434_v0 = vld [vmem:[%s9722_s1 + $0xa8] sm:$0xf]  ;;  %v6872_v1 = vld [vmem:[%s9722_s1 + $0xb0] sm:$0xf0]  ;;  %v6871_v5 = vld [vmem:[%s9722_s1 + $0xac] sm:$0xf] }
   0x2   :  { %v5530_v2 = vld [vmem:[%s9722_s1 + $0x168] sm:$0xf]  ;;  %v5435_v3 = vor.u32 %v6872_v1, %v5434_v0  ;;  %v6896_v4 = vld [vmem:[%s9722_s1 + $0x170] sm:$0xf0]  ;;  %v5436_v6 = vld [vmem:[%s9722_s1 + $0xb4] sm:$0xf0] }
   0x3   :  { %v5531_v7 = vor.u32 %v6896_v4, %v5530_v2  ;;  %v5439_v8 = vor.u32 %v6871_v5, %v5436_v6  ;;  %v6895_v9 = vld [vmem:[%s9722_s1 + $0x16c] sm:$0xf]  ;;  %v5532_v10 = vld [vmem:[%s9722_s1 + $0x174] sm:$0xf0]  ;;  %v5422_v11 = vld [vmem:[%s9722_s1 + $0x90] sm:$0xf] }
   0x4   :  { %584 = vmatpush.bf16.msra.mxu0 %v5435_v3  ;;  %v5535_v12 = vor.u32 %v6895_v9, %v5532_v10  ;;  %v6869_v13 = vld [vmem:[%s9722_s1 + $0x98] sm:$0xf0]  ;;  %v5518_v14 = vld [vmem:[%s9722_s1 + $0x150] sm:$0xf]  ;;  %v6868_v18 = vld [vmem:[%s9722_s1 + $0x94] sm:$0xf] }
   0x5   :  { %v6893_v15 = vld [vmem:[%s9722_s1 + $0x158] sm:$0xf0]  ;;  %683 = vmatpush.bf16.msra.mxu1 %v5531_v7  ;;  %782 = vmatpush.bf16.msra.mxu2 %v5439_v8  ;;  %v5423_v16 = vor.u32 %v6869_v13, %v5422_v11  ;;  %v5424_v19 = vld [vmem:[%s9722_s1 + $0x9c] sm:$0xf0]  ;;  %v6892_v20 = vld [vmem:[%s9722_s1 + $0x154] sm:$0xf] }
   0x6   :  { %v5519_v17 = vor.u32 %v6893_v15, %v5518_v14  ;;  %881 = vmatpush.bf16.msra.mxu3 %v5535_v12  ;;  %v5427_v21 = vor.u32 %v6868_v18, %v5424_v19  ;;  %v5520_v22 = vld [vmem:[%s9722_s1 + $0x15c] sm:$0xf0]  ;;  %v5410_v23 = vld [vmem:[%s9722_s1 + $0x78] sm:$0xf]  ;;  %v6866_v24 = vld [vmem:[%s9722_s1 + $0x80] sm:$0xf0] }
   0x7   :  { %v5523_v25 = vor.u32 %v6892_v20, %v5520_v22  ;;  %v5506_v26 = vld [vmem:[%s9722_s1 + $0x138] sm:$0xf]  ;;  %v6890_v27 = vld [vmem:[%s9722_s1 + $0x140] sm:$0xf0]  ;;  %v6865_v28 = vld [vmem:[%s9722_s1 + $0x7c] sm:$0xf]  ;;  %v5411_v29 = vor.u32 %v6866_v24, %v5410_v23 }
   0x8   :  { %585 = vmatpush.bf16.msra.mxu0 %v5423_v16  ;;  %v5412_v30 = vld [vmem:[%s9722_s1 + $0x84] sm:$0xf0]  ;;  %v6889_v31 = vld [vmem:[%s9722_s1 + $0x13c] sm:$0xf]  ;;  %v5507_v33 = vor.u32 %v6890_v27, %v5506_v26  ;;  %v5398_v35 = vld [vmem:[%s9722_s1 + $0x60] sm:$0xf] }
   0x9   :  { %v5508_v32 = vld [vmem:[%s9722_s1 + $0x144] sm:$0xf0]  ;;  %684 = vmatpush.bf16.msra.mxu1 %v5519_v17  ;;  %783 = vmatpush.bf16.msra.mxu2 %v5427_v21  ;;  %v5415_v34 = vor.u32 %v6865_v28, %v5412_v30  ;;  %v6863_v36 = vld [vmem:[%s9722_s1 + $0x68] sm:$0xf0]  ;;  %v5494_v37 = vld [vmem:[%s9722_s1 + $0x120] sm:$0xf] }
   0xa   :  { %882 = vmatpush.bf16.msra.mxu3 %v5523_v25  ;;  %v5511_v38 = vor.u32 %v6889_v31, %v5508_v32  ;;  %v6887_v39 = vld [vmem:[%s9722_s1 + $0x128] sm:$0xf0]  ;;  %v6862_v40 = vld [vmem:[%s9722_s1 + $0x64] sm:$0xf]  ;;  %v5400_v41 = vld [vmem:[%s9722_s1 + $0x6c] sm:$0xf0]  ;;  %v5399_v44 = vor.u32 %v6863_v36, %v5398_v35 }
   0xb   :  { %v6886_v42 = vld [vmem:[%s9722_s1 + $0x124] sm:$0xf]  ;;  %v5496_v43 = vld [vmem:[%s9722_s1 + $0x12c] sm:$0xf0]  ;;  %v5495_v45 = vor.u32 %v6887_v39, %v5494_v37  ;;  %v5403_v46 = vor.u32 %v6862_v40, %v5400_v41  ;;  %v5386_v47 = vld [vmem:[%s9722_s1 + $0x48] sm:$0xf] }
   0xc   :  { %586 = vmatpush.bf16.msra.mxu0 %v5411_v29  ;;  %v6860_v48 = vld [vmem:[%s9722_s1 + $0x50] sm:$0xf0]  ;;  %v5482_v49 = vld [vmem:[%s9722_s1 + $0x108] sm:$0xf]  ;;  %v5499_v50 = vor.u32 %v6886_v42, %v5496_v43  ;;  %v6859_v52 = vld [vmem:[%s9722_s1 + $0x4c] sm:$0xf] }
   0xd   :  { %685 = vmatpush.bf16.msra.mxu1 %v5507_v33  ;;  %784 = vmatpush.bf16.msra.mxu2 %v5415_v34  ;;  %v6884_v51 = vld [vmem:[%s9722_s1 + $0x110] sm:$0xf0]  ;;  %v5388_v53 = vld [vmem:[%s9722_s1 + $0x54] sm:$0xf0]  ;;  %v6883_v54 = vld [vmem:[%s9722_s1 + $0x10c] sm:$0xf]  ;;  %v5387_v56 = vor.u32 %v6860_v48, %v5386_v47 }
   0xe   :  { %883 = vmatpush.bf16.msra.mxu3 %v5511_v38  ;;  %v5484_v55 = vld [vmem:[%s9722_s1 + $0x114] sm:$0xf0]  ;;  %v5483_v57 = vor.u32 %v6884_v51, %v5482_v49  ;;  %v5391_v58 = vor.u32 %v6859_v52, %v5388_v53  ;;  %v5374_v59 = vld [vmem:[%s9722_s1 + $0x30] sm:$0xf]  ;;  %v6857_v60 = vld [vmem:[%s9722_s1 + $0x38] sm:$0xf0] }
   0xf   :  { %v5470_v61 = vld [vmem:[%s9722_s1 + $0xf0] sm:$0xf]  ;;  %v5487_v62 = vor.u32 %v6883_v54, %v5484_v55  ;;  %v6881_v63 = vld [vmem:[%s9722_s1 + $0xf8] sm:$0xf0]  ;;  %v6856_v0 = vld [vmem:[%s9722_s1 + $0x34] sm:$0xf]  ;;  %v5375_v4 = vor.u32 %v6857_v60, %v5374_v59 }
  0x10   :  { %587 = vmatpush.bf16.msra.mxu0 %v5399_v44  ;;  %v5376_v1 = vld [vmem:[%s9722_s1 + $0x3c] sm:$0xf0]  ;;  %v6880_v2 = vld [vmem:[%s9722_s1 + $0xf4] sm:$0xf]  ;;  %v5471_v5 = vor.u32 %v6881_v63, %v5470_v61  ;;  %v5362_v7 = vld [vmem:[%s9722_s1 + $0x18] sm:$0xf] }
  0x11   :  { %686 = vmatpush.bf16.msra.mxu1 %v5495_v45  ;;  %785 = vmatpush.bf16.msra.mxu2 %v5403_v46  ;;  %v5472_v3 = vld [vmem:[%s9722_s1 + $0xfc] sm:$0xf0]  ;;  %v5379_v6 = vor.u32 %v6856_v0, %v5376_v1  ;;  %v6854_v8 = vld [vmem:[%s9722_s1 + $0x20] sm:$0xf0]  ;;  %v5458_v9 = vld [vmem:[%s9722_s1 + $0xd8] sm:$0xf] }
  0x12   :  { %884 = vmatpush.bf16.msra.mxu3 %v5499_v50  ;;  %v5475_v10 = vor.u32 %v6880_v2, %v5472_v3  ;;  %v6878_v11 = vld [vmem:[%s9722_s1 + $0xe0] sm:$0xf0]  ;;  %v6853_v12 = vld [vmem:[%s9722_s1 + $0x1c] sm:$0xf]  ;;  %v5364_v13 = vld [vmem:[%s9722_s1 + $0x24] sm:$0xf0]  ;;  %v5363_v16 = vor.u32 %v6854_v8, %v5362_v7 }
  0x13   :  { %v6877_v14 = vld [vmem:[%s9722_s1 + $0xdc] sm:$0xf]  ;;  %v5460_v15 = vld [vmem:[%s9722_s1 + $0xe4] sm:$0xf0]  ;;  %v5350_v17 = vld [vmem:[%s9722_s1] sm:$0xf]  ;;  %v5459_v18 = vor.u32 %v6878_v11, %v5458_v9  ;;  %v5367_v19 = vor.u32 %v6853_v12, %v5364_v13 }
  0x14   :  { %588 = vmatpush.bf16.msra.mxu0 %v5387_v56  ;;  %v6851_v20 = vld [vmem:[%s9722_s1 + $0x8] sm:$0xf0]  ;;  %v5446_v21 = vld [vmem:[%s9722_s1 + $0xc0] sm:$0xf]  ;;  %v5463_v23 = vor.u32 %v6877_v14, %v5460_v15  ;;  %v6850_v24 = vld [vmem:[%s9722_s1 + $0x4] sm:$0xf] }
  0x15   :  { %687 = vmatpush.bf16.msra.mxu1 %v5483_v57  ;;  %786 = vmatpush.bf16.msra.mxu2 %v5391_v58  ;;  %v6875_v22 = vld [vmem:[%s9722_s1 + $0xc8] sm:$0xf0]  ;;  %v5352_v25 = vld [vmem:[%s9722_s1 + $0xc] sm:$0xf0]  ;;  %v6874_v26 = vld [vmem:[%s9722_s1 + $0xc4] sm:$0xf]  ;;  %v5351_v30 = vor.u32 %v6851_v20, %v5350_v17 }
  0x16   :  { %885 = vmatpush.bf16.msra.mxu3 %v5487_v62  ;;  %v5448_v27 = vld [vmem:[%s9722_s1 + $0xcc] sm:$0xf0]  ;;  %v6873_v29 = vld [vmem:[%s9722_s1 + $0xb8] sm:$0xf0]  ;;  %v5206_v31 = vld [vmem:[%s9723_s0] sm:$0xf]  ;;  %v5447_v33 = vor.u32 %v6875_v22, %v5446_v21  ;;  %v5355_v34 = vor.u32 %v6850_v24, %v5352_v25 }
  0x17   :  { %v5442_v28 = vld [vmem:[%s9722_s1 + $0xb0] sm:$0xf]  ;;  %v6815_v32 = vld [vmem:[%s9723_s0 + $0x4] sm:$0xf0]  ;;  %v6814_v35 = vld [vmem:[%s9723_s0 + $0x4] sm:$0xf]  ;;  %v5451_v37 = vor.u32 %v6874_v26, %v5448_v27 }
  0x18   :  { %589 = vmatpush.bf16.msra.mxu0 %v5375_v4  ;;  %v5208_v36 = vld [vmem:[%s9723_s0 + $0x8] sm:$0xf0]  ;;  %v5443_v38 = vor.u32 %v6873_v29, %v5442_v28  ;;  %v7507_v39 = vor.u32 %v6815_v32, %v5206_v31  ;;  %v5430_v41 = vld [vmem:[%s9722_s1 + $0x98] sm:$0xf]  ;;  %v6870_v42 = vld [vmem:[%s9722_s1 + $0xa0] sm:$0xf0] }
  0x19   :  { %688 = vmatpush.bf16.msra.mxu1 %v5471_v5  ;;  %787 = vmatpush.bf16.msra.mxu2 %v5379_v6  ;;  %v7509_v40 = vor.u32 %v6814_v35, %v5208_v36  ;;  %v5431_v43 = vor.u32 %v6870_v42, %v5430_v41  ;;  %v5214_v44 = vld [vmem:[%s9723_s0 + $0x10] sm:$0xf]  ;;  %v6817_v45 = vld [vmem:[%s9723_s0 + $0x14] sm:$0xf0]  ;;  %v6816_v46 = vld [vmem:[%s9723_s0 + $0x14] sm:$0xf] }
  0x1a   :  { %886 = vmatpush.bf16.msra.mxu3 %v5475_v10  ;;  %v5216_v47 = vld [vmem:[%s9723_s0 + $0x18] sm:$0xf0]  ;;  %v7533_v48 = vor.u32 %v6817_v45, %v5214_v44  ;;  %v5222_v50 = vld [vmem:[%s9723_s0 + $0x20] sm:$0xf]  ;;  %v6819_v51 = vld [vmem:[%s9723_s0 + $0x24] sm:$0xf0] }
  0x1b   :  { %v7535_v49 = vor.u32 %v6816_v46, %v5216_v47  ;;  %v6818_v52 = vld [vmem:[%s9723_s0 + $0x24] sm:$0xf]  ;;  %v5224_v53 = vld [vmem:[%s9723_s0 + $0x28] sm:$0xf0]  ;;  %v7553_v54 = vor.u32 %v6819_v51, %v5222_v50  ;;  %v5418_v56 = vld [vmem:[%s9722_s1 + $0x80] sm:$0xf] }
  0x1c   :  { %590 = vmatpush.bf16.msra.mxu0 %v5363_v16  ;;  %v7555_v55 = vor.u32 %v6818_v52, %v5224_v53  ;;  %v6867_v57 = vld [vmem:[%s9722_s1 + $0x88] sm:$0xf0]  ;;  %v5230_v59 = vld [vmem:[%s9723_s0 + $0x30] sm:$0xf]  ;;  %v6821_v60 = vld [vmem:[%s9723_s0 + $0x34] sm:$0xf0] }
  0x1d   :  { %689 = vmatpush.bf16.msra.mxu1 %v5459_v18  ;;  %788 = vmatpush.bf16.msra.mxu2 %v5367_v19  ;;  %v5419_v58 = vor.u32 %v6867_v57, %v5418_v56  ;;  %v6820_v61 = vld [vmem:[%s9723_s0 + $0x34] sm:$0xf]  ;;  %v5232_v62 = vld [vmem:[%s9723_s0 + $0x38] sm:$0xf0]  ;;  %v7579_v63 = vor.u32 %v6821_v60, %v5230_v59  ;;  %v5238_v1 = vld [vmem:[%s9723_s0 + $0x40] sm:$0xf] }
  0x1e   :  { %887 = vmatpush.bf16.msra.mxu3 %v5463_v23  ;;  %v7581_v0 = vor.u32 %v6820_v61, %v5232_v62  ;;  %v6823_v2 = vld [vmem:[%s9723_s0 + $0x44] sm:$0xf0]  ;;  %v6822_v3 = vld [vmem:[%s9723_s0 + $0x44] sm:$0xf]  ;;  %v5240_v4 = vld [vmem:[%s9723_s0 + $0x48] sm:$0xf0] }
  0x1f   :  { %v7599_v5 = vor.u32 %v6823_v2, %v5238_v1  ;;  %v7601_v6 = vor.u32 %v6822_v3, %v5240_v4  ;;  %v5246_v7 = vld [vmem:[%s9723_s0 + $0x50] sm:$0xf]  ;;  %v6825_v8 = vld [vmem:[%s9723_s0 + $0x54] sm:$0xf0]  ;;  %v6824_v9 = vld [vmem:[%s9723_s0 + $0x54] sm:$0xf] }
  0x20   :  { %591 = vmatpush.bf16.msra.mxu0 %v5351_v30  ;;  %v5248_v10 = vld [vmem:[%s9723_s0 + $0x58] sm:$0xf0]  ;;  %v7619_v11 = vor.u32 %v6825_v8, %v5246_v7  ;;  %v5406_v13 = vld [vmem:[%s9722_s1 + $0x68] sm:$0xf]  ;;  %v6864_v14 = vld [vmem:[%s9722_s1 + $0x70] sm:$0xf0] }
  0x21   :  { %690 = vmatpush.bf16.msra.mxu1 %v5447_v33  ;;  %789 = vmatpush.bf16.msra.mxu2 %v5355_v34  ;;  %v7621_v12 = vor.u32 %v6824_v9, %v5248_v10  ;;  %v5407_v15 = vor.u32 %v6864_v14, %v5406_v13  ;;  %v5254_v16 = vld [vmem:[%s9723_s0 + $0x60] sm:$0xf]  ;;  %v6827_v17 = vld [vmem:[%s9723_s0 + $0x64] sm:$0xf0]  ;;  %v6826_v18 = vld [vmem:[%s9723_s0 + $0x64] sm:$0xf] }
  0x22   :  { %888 = vmatpush.bf16.msra.mxu3 %v5451_v37  ;;  %v5256_v19 = vld [vmem:[%s9723_s0 + $0x68] sm:$0xf0]  ;;  %v7645_v20 = vor.u32 %v6827_v17, %v5254_v16  ;;  %v5262_v22 = vld [vmem:[%s9723_s0 + $0x70] sm:$0xf]  ;;  %v6829_v23 = vld [vmem:[%s9723_s0 + $0x74] sm:$0xf0] }
  0x23   :  { %592 = vmatmul.bf16.vlgmr.msra.gmra.mxu0 %v7507_v39  ;;  %v7647_v21 = vor.u32 %v6826_v18, %v5256_v19  ;;  %v6828_v24 = vld [vmem:[%s9723_s0 + $0x74] sm:$0xf]  ;;  %v5264_v25 = vld [vmem:[%s9723_s0 + $0x78] sm:$0xf0]  ;;  %v7665_v26 = vor.u32 %v6829_v23, %v5262_v22  ;;  %v5270_v28 = vld [vmem:[%s9723_s0 + $0x80] sm:$0xf] }
  0x24   :  { %980 = vmatpush.bf16.msrb.mxu0 %v5443_v38  ;;  %691 = vmatmul.bf16.vlgmr.msra.gmra.mxu1 %v7509_v40  ;;  %v7667_v27 = vor.u32 %v6828_v24, %v5264_v25  ;;  %v6831_v29 = vld [vmem:[%s9723_s0 + $0x84] sm:$0xf0]  ;;  %v6830_v30 = vld [vmem:[%s9723_s0 + $0x84] sm:$0xf]  ;;  %v5272_v31 = vld [vmem:[%s9723_s0 + $0x88] sm:$0xf0] }
  0x25   :  { %790 = vmatmul.bf16.vlgmr.msra.gmra.mxu2 %v7507_v39  ;;  %889 = vmatmul.bf16.vlgmr.msra.gmra.mxu3 %v7509_v40  ;;  %v7685_v32 = vor.u32 %v6831_v29, %v5270_v28  ;;  %v5394_v33 = vld [vmem:[%s9722_s1 + $0x50] sm:$0xf]  ;;  %v6861_v34 = vld [vmem:[%s9722_s1 + $0x58] sm:$0xf0]  ;;  %v7696_v37 = vor.u32 %v6830_v30, %v5272_v31  ;;  %v7715_v47 = vld [vmem:[%s9725_s7] sm:$0x7] }
  0x26   :  { %v5538_v35 = vld [vmem:[%s9722_s1 + $0x170] sm:$0xf]  ;;  %v5395_v38 = vor.u32 %v6861_v34, %v5394_v33  ;;  %v6897_v41 = vld [vmem:[%s9722_s1 + $0x178] sm:$0xf0]  ;;  %v7720_v52 = vperm.slane %v7715_v47, 0 }
  0x27   :  { %9756 = vst [vmem:[#allocation3_spill] sm:$0xff] %v7696_v37  ;;  %v5539_v44 = vor.u32 %v6897_v41, %v5538_v35  ;;  %v5278_v62 = vld [vmem:[%s9723_s0 + $0x90] sm:$0xf]  ;;  %v6833_v1 = vld [vmem:[%s9723_s0 + $0x94] sm:$0xf0] }
  0x28   :  { %981 = vmatpush.bf16.msrb.mxu0 %v5431_v43  ;;  %v7704_v43 = vld [vmem:[%s9724_s6] sm:$0x7]  ;;  %v6832_v2 = vld [vmem:[%s9723_s0 + $0x94] sm:$0xf]  ;;  %v5280_v3 = vld [vmem:[%s9723_s0 + $0x98] sm:$0xf0]  ;;  %v7739_v8 = vor.u32 %v6833_v1, %v5278_v62 }
  0x29   :  { %1079 = vmatpush.bf16.msrb.mxu1 %v5539_v44  ;;  %v7708_v46 = vperm.slane %v7704_v43, 0  ;;  %v5286_v34 = vld [vmem:[%s9723_s0 + $0xa0] sm:$0xf]  ;;  %v6835_v35 = vld [vmem:[%s9723_s0 + $0xa4] sm:$0xf0] }
  0x2a   :  { %9757 = vst [vmem:[#allocation4_spill] sm:$0xff] %v7739_v8  ;;  %v7769_v44 = vor.u32 %v6835_v35, %v5286_v34  ;;  %v5382_v62 = vld [vmem:[%s9722_s1 + $0x38] sm:$0xf]  ;;  %v6858_v1 = vld [vmem:[%s9722_s1 + $0x40] sm:$0xf0] }
  0x2c   :  { %982 = vmatpush.bf16.msrb.mxu0 %v5419_v58  ;;  %9759 = vst [vmem:[#allocation6_spill] sm:$0xff] %v7769_v44 }
  0x30   :  { %983 = vmatpush.bf16.msrb.mxu0 %v5407_v15  ;;  %v7741_v15 = vor.u32 %v6832_v2, %v5280_v3  ;;  %v5526_v2 = vld [vmem:[%s9722_s1 + $0x158] sm:$0xf]  ;;  %v5383_v3 = vor.u32 %v6858_v1, %v5382_v62 }
  0x32   :  { %9758 = vst [vmem:[#allocation5_spill] sm:$0xff] %v7741_v15 }
  0x33   :  { %597 = vmatmul.bf16.gmra.mxu0 %v7533_v48 }
  0x34   :  { %696 = vmatmul.bf16.gmra.mxu1 %v7535_v49  ;;  %984 = vmatpush.bf16.msrb.mxu0 %v5395_v38  ;;  %v5288_v38 = vld [vmem:[%s9723_s0 + $0xa8] sm:$0xf0] }
  0x35   :  { %795 = vmatmul.bf16.gmra.mxu2 %v7533_v48  ;;  %894 = vmatmul.bf16.gmra.mxu3 %v7535_v49 }
  0x38   :  { %985 = vmatpush.bf16.msrb.mxu0 %v5383_v3 }
  0x43   :  { %602 = vmatmul.bf16.gmra.mxu0 %v7553_v54 }
  0x44   :  { %701 = vmatmul.bf16.gmra.mxu1 %v7555_v55 }
  0x45   :  { %800 = vmatmul.bf16.gmra.mxu2 %v7553_v54  ;;  %899 = vmatmul.bf16.gmra.mxu3 %v7555_v55 }
  0x53   :  { %607 = vmatmul.bf16.gmra.mxu0 %v7579_v63 }
  0x54   :  { %706 = vmatmul.bf16.gmra.mxu1 %v7581_v0 }
  0x55   :  { %805 = vmatmul.bf16.gmra.mxu2 %v7579_v63  ;;  %904 = vmatmul.bf16.gmra.mxu3 %v7581_v0 }
  0x63   :  { %612 = vmatmul.bf16.gmra.mxu0 %v7599_v5 }
  0x64   :  { %711 = vmatmul.bf16.gmra.mxu1 %v7601_v6 }
  0x65   :  { %810 = vmatmul.bf16.gmra.mxu2 %v7599_v5  ;;  %909 = vmatmul.bf16.gmra.mxu3 %v7601_v6 }
  0x73   :  { %617 = vmatmul.bf16.gmra.mxu0 %v7619_v11 }
  0x74   :  { %716 = vmatmul.bf16.gmra.mxu1 %v7621_v12 }
  0x75   :  { %815 = vmatmul.bf16.gmra.mxu2 %v7619_v11  ;;  %914 = vmatmul.bf16.gmra.mxu3 %v7621_v12 }
  0x83   :  { %622 = vmatmul.bf16.gmra.mxu0 %v7645_v20 }
  0x84   :  { %721 = vmatmul.bf16.gmra.mxu1 %v7647_v21 }
  0x85   :  { %820 = vmatmul.bf16.gmra.mxu2 %v7645_v20  ;;  %919 = vmatmul.bf16.gmra.mxu3 %v7647_v21 }
  0x93   :  { %627 = vmatmul.bf16.gmra.mxu0 %v7665_v26 }
  0x94   :  { %726 = vmatmul.bf16.gmra.mxu1 %v7667_v27 }
  0x95   :  { %825 = vmatmul.bf16.gmra.mxu2 %v7665_v26  ;;  %924 = vmatmul.bf16.gmra.mxu3 %v7667_v27 }
  0xa0   :  { %v593_v36 = vpop.f32.mrf.mxu0 }
  0xa1   :  { %v692_v42 = vpop.f32.mrf.mxu1 }
  0xa2   :  { %v693_v45 = vadd.f32 %v692_v42, %v593_v36  ;;  %v6834_v36 = vld [vmem:[%s9723_s0 + $0xa4] sm:$0xf] }
  0xa3   :  { %632 = vmatmul.bf16.gmra.mxu0 %v7685_v32 }
  0xa4   :  { %731 = vmatmul.bf16.gmra.mxu1 %v7696_v37  ;;  %v1186_v51 = vmul.f32 %v7708_v46, %v693_v45 }
  0xa5   :  { %830 = vmatmul.bf16.gmra.mxu2 %v7685_v32  ;;  %929 = vmatmul.bf16.gmra.mxu3 %v7696_v37 }
  0xa6   :  { %v1302_v60 = vadd.f32 %v7720_v52, %v1186_v51 }
  0xa8   :  { %v791_v50 = vpop.f32.mrf.mxu2  ;;  %v890_v53 = vpop.f32.mrf.mxu3  ;;  %v1410_v9 = vmax.f32 %v1302_v60, 0.0 }
  0xa9   :  { %v595_v56 = vpop.f32.mrf.mxu0  ;;  %v7722_v57 = vadd.f32 %v890_v53, %v791_v50  ;;  %v694_v58 = vpop.f32.mrf.mxu1  ;;  %v7771_v53 = vor.u32 %v6834_v36, %v5288_v38 }
  0xaa   :  { %v695_v59 = vadd.f32 %v694_v58, %v595_v56 }
  0xab   :  { %9760 = vst [vmem:[#allocation7_spill] sm:$0xff] %v7771_v53 }
  0xac   :  { %v1189_v61 = vmul.f32 %v7708_v46, %v695_v59 }
  0xae   :  { %v1305_v4 = vadd.f32 %v7720_v52, %v1189_v61 }
  0xb0   :  { %v793_v7 = vpop.f32.mrf.mxu2  ;;  %v1413_v10 = vmax.f32 %v1305_v4, 0.0  ;;  %v892_v13 = vpop.f32.mrf.mxu3  ;;  %v6894_v4 = vld [vmem:[%s9722_s1 + $0x160] sm:$0xf0] }
  0xb1   :  { %v598_v14 = vpop.f32.mrf.mxu0  ;;  %v7743_v16 = vadd.f32 %v892_v13, %v793_v7  ;;  %v697_v17 = vpop.f32.mrf.mxu1 }
  0xb2   :  { %v698_v18 = vadd.f32 %v697_v17, %v598_v14  ;;  %v7745_v19 = vpack.c.bf16 %v1413_v10, %v1410_v9  ;;  %v5527_v9 = vor.u32 %v6894_v4, %v5526_v2 }
  0xb3   :  { %637 = vmatmul.bf16.gmra.mxu0 %v7739_v8 }
  0xb4   :  { %736 = vmatmul.bf16.gmra.mxu1 %v7741_v15  ;;  %v1192_v23 = vmul.f32 %v7708_v46, %v698_v18 }
  0xb5   :  { %835 = vmatmul.bf16.gmra.mxu2 %v7739_v8  ;;  %934 = vmatmul.bf16.gmra.mxu3 %v7741_v15 }
  0xb6   :  { %v1308_v31 = vadd.f32 %v7720_v52, %v1192_v23  ;;  %1080 = vmatpush.bf16.msrb.mxu1 %v5527_v9 }
  0xb8   :  { %v796_v22 = vpop.f32.mrf.mxu2  ;;  %v895_v24 = vpop.f32.mrf.mxu3  ;;  %v1416_v45 = vmax.f32 %v1308_v31, 0.0  ;;  %v5296_v31 = vld [vmem:[%s9723_s0 + $0xb8] sm:$0xf0] }
  0xb9   :  { %v600_v25 = vpop.f32.mrf.mxu0  ;;  %v7752_v28 = vadd.f32 %v895_v24, %v796_v22  ;;  %v699_v29 = vpop.f32.mrf.mxu1 }
  0xba   :  { %v700_v30 = vadd.f32 %v699_v29, %v600_v25  ;;  %v5294_v25 = vld [vmem:[%s9723_s0 + $0xb0] sm:$0xf]  ;;  %v6837_v29 = vld [vmem:[%s9723_s0 + $0xb4] sm:$0xf0] }
  0xbb   :  { %v7811_v35 = vor.u32 %v6837_v29, %v5294_v25 }
  0xbc   :  { %v1195_v33 = vmul.f32 %v7708_v46, %v700_v30  ;;  %v6836_v30 = vld [vmem:[%s9723_s0 + $0xb4] sm:$0xf] }
  0xbd   :  { %9761 = vst [vmem:[#allocation8_spill] sm:$0xff] %v7811_v35 }
  0xbe   :  { %v1311_v41 = vadd.f32 %v7720_v52, %v1195_v33 }
  0xc0   :  { %v798_v42 = vpop.f32.mrf.mxu2  ;;  %v897_v50 = vpop.f32.mrf.mxu3  ;;  %v1419_v56 = vmax.f32 %v1311_v41, 0.0 }
  0xc1   :  { %v603_v51 = vpop.f32.mrf.mxu0  ;;  %v7773_v58 = vadd.f32 %v897_v50, %v798_v42  ;;  %v702_v59 = vpop.f32.mrf.mxu1  ;;  %v7813_v42 = vor.u32 %v6836_v30, %v5296_v31 }
  0xc2   :  { %v703_v60 = vadd.f32 %v702_v59, %v603_v51  ;;  %v7775_v61 = vpack.c.bf16 %v1419_v56, %v1416_v45 }
  0xc3   :  { %642 = vmatmul.bf16.gmra.mxu0 %v7769_v44  ;;  %9762 = vst [vmem:[#allocation9_spill] sm:$0xff] %v7813_v42 }
  0xc4   :  { %741 = vmatmul.bf16.gmra.mxu1 %v7771_v53  ;;  %v1198_v10 = vmul.f32 %v7708_v46, %v703_v60 }
  0xc5   :  { %840 = vmatmul.bf16.gmra.mxu2 %v7769_v44  ;;  %939 = vmatmul.bf16.gmra.mxu3 %v7771_v53 }
  0xc6   :  { %v1314_v23 = vadd.f32 %v7720_v52, %v1198_v10 }
  0xc8   :  { %v801_v7 = vpop.f32.mrf.mxu2  ;;  %v900_v13 = vpop.f32.mrf.mxu3  ;;  %v1422_v36 = vmax.f32 %v1314_v23, 0.0 }
  0xc9   :  { %v605_v14 = vpop.f32.mrf.mxu0  ;;  %v7794_v17 = vadd.f32 %v900_v13, %v801_v7  ;;  %v704_v18 = vpop.f32.mrf.mxu1  ;;  %v5302_v13 = vld [vmem:[%s9723_s0 + $0xc0] sm:$0xf] }
  0xca   :  { %v705_v22 = vadd.f32 %v704_v18, %v605_v14  ;;  %v6839_v14 = vld [vmem:[%s9723_s0 + $0xc4] sm:$0xf0]  ;;  %v6838_v18 = vld [vmem:[%s9723_s0 + $0xc4] sm:$0xf] }
  0xcb   :  { %v7841_v25 = vor.u32 %v6839_v14, %v5302_v13  ;;  %v6891_v13 = vld [vmem:[%s9722_s1 + $0x148] sm:$0xf0] }
  0xcc   :  { %v1201_v24 = vmul.f32 %v7708_v46, %v705_v22  ;;  %v5304_v22 = vld [vmem:[%s9723_s0 + $0xc8] sm:$0xf0] }
  0xcd   :  { %9763 = vst [vmem:[#allocation10_spill] sm:$0xff] %v7841_v25 }
  0xce   :  { %v1317_v33 = vadd.f32 %v7720_v52, %v1201_v24 }
  0xd0   :  { %v803_v34 = vpop.f32.mrf.mxu2  ;;  %v902_v38 = vpop.f32.mrf.mxu3  ;;  %v1425_v45 = vmax.f32 %v1317_v33, 0.0  ;;  %v7843_v33 = vor.u32 %v6838_v18, %v5304_v22 }
  0xd1   :  { %v608_v41 = vpop.f32.mrf.mxu0  ;;  %v7815_v50 = vadd.f32 %v902_v38, %v803_v34  ;;  %v707_v51 = vpop.f32.mrf.mxu1 }
  0xd2   :  { %v708_v56 = vadd.f32 %v707_v51, %v608_v41  ;;  %v7817_v59 = vpack.c.bf16 %v1425_v45, %v1422_v36  ;;  %9764 = vst [vmem:[#allocation11_spill] sm:$0xff] %v7843_v33 }
  0xd3   :  { %647 = vmatmul.bf16.gmra.mxu0 %v7811_v35 }
  0xd4   :  { %746 = vmatmul.bf16.gmra.mxu1 %v7813_v42  ;;  %v1204_v62 = vmul.f32 %v7708_v46, %v708_v56 }
  0xd5   :  { %845 = vmatmul.bf16.gmra.mxu2 %v7811_v35  ;;  %944 = vmatmul.bf16.gmra.mxu3 %v7813_v42 }
  0xd6   :  { %v1320_v9 = vadd.f32 %v7720_v52, %v1204_v62 }
  0xd8   :  { %v806_v60 = vpop.f32.mrf.mxu2  ;;  %v905_v1 = vpop.f32.mrf.mxu3  ;;  %v1428_v29 = vmax.f32 %v1320_v9, 0.0 }
  0xd9   :  { %v610_v2 = vpop.f32.mrf.mxu0  ;;  %v7824_v3 = vadd.f32 %v905_v1, %v806_v60  ;;  %v709_v4 = vpop.f32.mrf.mxu1  ;;  %v5370_v1 = vld [vmem:[%s9722_s1 + $0x20] sm:$0xf] }
  0xda   :  { %v710_v7 = vadd.f32 %v709_v4, %v610_v2  ;;  %v6855_v2 = vld [vmem:[%s9722_s1 + $0x28] sm:$0xf0] }
  0xdb   :  { %v5371_v9 = vor.u32 %v6855_v2, %v5370_v1 }
  0xdc   :  { %v1207_v10 = vmul.f32 %v7708_v46, %v710_v7 }
  0xdd   :  { %986 = vmatpush.bf16.msrb.mxu0 %v5371_v9 }
  0xde   :  { %v1323_v23 = vadd.f32 %v7720_v52, %v1207_v10  ;;  %v5514_v10 = vld [vmem:[%s9722_s1 + $0x140] sm:$0xf] }
  0xdf   :  { %v5515_v18 = vor.u32 %v6891_v13, %v5514_v10 }
  0xe0   :  { %v808_v24 = vpop.f32.mrf.mxu2  ;;  %v907_v30 = vpop.f32.mrf.mxu3  ;;  %v1431_v34 = vmax.f32 %v1323_v23, 0.0 }
  0xe1   :  { %v613_v31 = vpop.f32.mrf.mxu0  ;;  %v7845_v36 = vadd.f32 %v907_v30, %v808_v24  ;;  %v712_v38 = vpop.f32.mrf.mxu1  ;;  %v5310_v24 = vld [vmem:[%s9723_s0 + $0xd0] sm:$0xf]  ;;  %1081 = vmatpush.bf16.msrb.mxu1 %v5515_v18  ;;  %v6840_v30 = vld [vmem:[%s9723_s0 + $0xd4] sm:$0xf] }
  0xe2   :  { %v713_v41 = vadd.f32 %v712_v38, %v613_v31  ;;  %v7847_v45 = vpack.c.bf16 %v1431_v34, %v1428_v29  ;;  %v6841_v29 = vld [vmem:[%s9723_s0 + $0xd4] sm:$0xf0]  ;;  %v5312_v31 = vld [vmem:[%s9723_s0 + $0xd8] sm:$0xf0] }
  0xe3   :  { %652 = vmatmul.bf16.gmra.mxu0 %v7841_v25 }
  0xe4   :  { %751 = vmatmul.bf16.gmra.mxu1 %v7843_v33  ;;  %v1210_v56 = vmul.f32 %v7708_v46, %v713_v41  ;;  %v7883_v41 = vor.u32 %v6841_v29, %v5310_v24 }
  0xe5   :  { %850 = vmatmul.bf16.gmra.mxu2 %v7841_v25  ;;  %949 = vmatmul.bf16.gmra.mxu3 %v7843_v33 }
  0xe6   :  { %v1326_v22 = vadd.f32 %v7720_v52, %v1210_v56  ;;  %9765 = vst [vmem:[#allocation12_spill] sm:$0xff] %v7883_v41 }
  0xe8   :  { %v811_v51 = vpop.f32.mrf.mxu2  ;;  %v910_v60 = vpop.f32.mrf.mxu3 }
  0xe9   :  { %v615_v62 = vpop.f32.mrf.mxu0  ;;  %v7860_v4 = vadd.f32 %v910_v60, %v811_v51  ;;  %v714_v7 = vpop.f32.mrf.mxu1  ;;  %v1434_v51 = vmax.f32 %v1326_v22, 0.0 }
  0xea   :  { %v715_v14 = vadd.f32 %v714_v7, %v615_v62  ;;  %v7885_v62 = vor.u32 %v6840_v30, %v5312_v31 }
  0xec   :  { %v1213_v23 = vmul.f32 %v7708_v46, %v715_v14  ;;  %9766 = vst [vmem:[#allocation13_spill] sm:$0xff] %v7885_v62 }
  0xee   :  { %v1329_v34 = vadd.f32 %v7720_v52, %v1213_v23 }
  0xf0   :  { %v813_v38 = vpop.f32.mrf.mxu2  ;;  %v912_v56 = vpop.f32.mrf.mxu3  ;;  %v1437_v1 = vmax.f32 %v1329_v34, 0.0  ;;  %v5318_v34 = vld [vmem:[%s9723_s0 + $0xe0] sm:$0xf] }
  0xf1   :  { %v618_v60 = vpop.f32.mrf.mxu0  ;;  %v7887_v2 = vadd.f32 %v912_v56, %v813_v38  ;;  %v717_v7 = vpop.f32.mrf.mxu1  ;;  %v6843_v38 = vld [vmem:[%s9723_s0 + $0xe4] sm:$0xf0]  ;;  %v5320_v56 = vld [vmem:[%s9723_s0 + $0xe8] sm:$0xf0] }
  0xf2   :  { %v718_v9 = vadd.f32 %v717_v7, %v618_v60  ;;  %v7889_v10 = vpack.c.bf16 %v1437_v1, %v1434_v51  ;;  %v6842_v51 = vld [vmem:[%s9723_s0 + $0xe4] sm:$0xf]  ;;  %v7913_v7 = vor.u32 %v6843_v38, %v5318_v34 }
  0xf3   :  { %657 = vmatmul.bf16.gmra.mxu0 %v7883_v41 }
  0xf4   :  { %756 = vmatmul.bf16.gmra.mxu1 %v7885_v62  ;;  %v1216_v14 = vmul.f32 %v7708_v46, %v718_v9  ;;  %9767 = vst [vmem:[#allocation14_spill] sm:$0xff] %v7913_v7 }
  0xf5   :  { %855 = vmatmul.bf16.gmra.mxu2 %v7883_v41  ;;  %954 = vmatmul.bf16.gmra.mxu3 %v7885_v62 }
  0xf6   :  { %v1332_v30 = vadd.f32 %v7720_v52, %v1216_v14 }
  0xf8   :  { %v816_v13 = vpop.f32.mrf.mxu2  ;;  %v915_v18 = vpop.f32.mrf.mxu3  ;;  %v1440_v9 = vmax.f32 %v1332_v30, 0.0  ;;  %v6905_v30 = vld [vmem:[%s9726_s2 + $0x38] sm:$0xff] }
  0xf9   :  { %v620_v22 = vpop.f32.mrf.mxu0  ;;  %v7896_v23 = vadd.f32 %v915_v18, %v816_v13  ;;  %v719_v24 = vpop.f32.mrf.mxu1  ;;  %v7915_v18 = vor.u32 %v6842_v51, %v5320_v56  ;;  %1771 = vmatpush.bf16.msrb.mxu2 %v6905_v30  ;;  %v6845_v30 = vld [vmem:[%s9723_s0 + $0xf4] sm:$0xf0] }
  0xfa   :  { %v720_v29 = vadd.f32 %v719_v24, %v620_v22 }
  0xfb   :  { %9768 = vst [vmem:[#allocation15_spill] sm:$0xff] %v7915_v18 }
  0xfc   :  { %v1219_v31 = vmul.f32 %v7708_v46, %v720_v29 }
  0xfe   :  { %v1335_v60 = vadd.f32 %v7720_v52, %v1219_v31  ;;  %v6913_v31 = vld [vmem:[%s9726_s2 + $0x78] sm:$0xff] }
  0xff   :  { %1870 = vmatpush.bf16.msrb.mxu3 %v6913_v31  ;;  %v6903_v31 = vld [vmem:[%s9726_s2 + $0x28] sm:$0xff] }
 0x100   :  { %v818_v1 = vpop.f32.mrf.mxu2  ;;  %v917_v13 = vpop.f32.mrf.mxu3  ;;  %v1443_v22 = vmax.f32 %v1335_v60, 0.0  ;;  %v6904_v60 = vld [vmem:[%s9726_s2 + $0x30] sm:$0xff] }
 0x101   :  { %v623_v14 = vpop.f32.mrf.mxu0  ;;  %v7917_v24 = vadd.f32 %v917_v13, %v818_v1  ;;  %v722_v29 = vpop.f32.mrf.mxu1  ;;  %v6912_v1 = vld [vmem:[%s9726_s2 + $0x70] sm:$0xff]  ;;  %1772 = vmatpush.bf16.msrb.mxu2 %v6904_v60 }
 0x102   :  { %v723_v62 = vadd.f32 %v722_v29, %v623_v14  ;;  %v7919_v41 = vpack.c.bf16 %v1443_v22, %v1440_v9 }
 0x103   :  { %662 = vmatmul.bf16.gmra.mxu0 %v7913_v7  ;;  %1871 = vmatpush.bf16.msrb.mxu3 %v6912_v1 }
 0x104   :  { %761 = vmatmul.bf16.gmra.mxu1 %v7915_v18  ;;  %v1222_v34 = vmul.f32 %v7708_v46, %v723_v62  ;;  %v5326_v62 = vld [vmem:[%s9723_s0 + $0xf0] sm:$0xf] }
 0x105   :  { %860 = vmatmul.bf16.gmra.mxu2 %v7913_v7  ;;  %959 = vmatmul.bf16.gmra.mxu3 %v7915_v18  ;;  %v6852_v18 = vld [vmem:[%s9722_s1 + $0x10] sm:$0xf0] }
 0x106   :  { %v1338_v22 = vadd.f32 %v7720_v52, %v1222_v34  ;;  %v6844_v34 = vld [vmem:[%s9723_s0 + $0xf4] sm:$0xf]  ;;  %1773 = vmatpush.bf16.msrb.mxu2 %v6903_v31 }
 0x108   :  { %v821_v38 = vpop.f32.mrf.mxu2  ;;  %v920_v51 = vpop.f32.mrf.mxu3  ;;  %v1446_v60 = vmax.f32 %v1338_v22, 0.0  ;;  %v5502_v22 = vld [vmem:[%s9722_s1 + $0x128] sm:$0xf] }
 0x109   :  { %v625_v56 = vpop.f32.mrf.mxu0  ;;  %v7938_v9 = vadd.f32 %v920_v51, %v821_v38  ;;  %v724_v13 = vpop.f32.mrf.mxu1  ;;  %v6911_v38 = vld [vmem:[%s9726_s2 + $0x68] sm:$0xff]  ;;  %v5328_v51 = vld [vmem:[%s9723_s0 + $0xf8] sm:$0xf0] }
 0x10a   :  { %v725_v14 = vadd.f32 %v724_v13, %v625_v56  ;;  %1872 = vmatpush.bf16.msrb.mxu3 %v6911_v38  ;;  %v7961_v13 = vor.u32 %v6845_v30, %v5326_v62  ;;  %v7969_v25 = vor.u32 %v6844_v34, %v5328_v51  ;;  %v6888_v62 = vld [vmem:[%s9722_s1 + $0x130] sm:$0xf0] }
 0x10b   :  { %v5503_v35 = vor.u32 %v6888_v62, %v5502_v22  ;;  %v5478_v62 = vld [vmem:[%s9722_s1 + $0xf8] sm:$0xf] }
 0x10c   :  { %v1225_v29 = vmul.f32 %v7708_v46, %v725_v14  ;;  %9769 = vst [vmem:[#allocation16_spill] sm:$0xff] %v7961_v13  ;;  %v5358_v14 = vld [vmem:[%s9722_s1 + $0x8] sm:$0xf] }
 0x10d   :  { %9770 = vst [vmem:[#allocation17_spill] sm:$0xff] %v7969_v25  ;;  %v5359_v42 = vor.u32 %v6852_v18, %v5358_v14  ;;  %v6910_v18 = vld [vmem:[%s9726_s2 + $0x60] sm:$0xff]  ;;  %v7988_v14 = vperm.slane %v7704_v43, 1  ;;  %1082 = vmatpush.bf16.msrb.mxu1 %v5503_v35  ;;  %v6901_v43 = vld [vmem:[%s9726_s2 + $0x18] sm:$0xff] }
 0x10e   :  { %v1341_v56 = vadd.f32 %v7720_v52, %v1225_v29  ;;  %v6902_v29 = vld [vmem:[%s9726_s2 + $0x20] sm:$0xff]  ;;  %1873 = vmatpush.bf16.msrb.mxu3 %v6910_v18  ;;  %v6909_v35 = vld [vmem:[%s9726_s2 + $0x58] sm:$0xff] }
 0x10f   :  { %987 = vmatpush.bf16.msrb.mxu0 %v5359_v42  ;;  %1774 = vmatpush.bf16.msrb.mxu2 %v6902_v29  ;;  %v6885_v42 = vld [vmem:[%s9722_s1 + $0x118] sm:$0xf0]  ;;  %v6882_v29 = vld [vmem:[%s9722_s1 + $0x100] sm:$0xf0] }
 0x110   :  { %v823_v1 = vpop.f32.mrf.mxu2  ;;  %v922_v7 = vpop.f32.mrf.mxu3  ;;  %v1449_v30 = vmax.f32 %v1341_v56, 0.0  ;;  %v1187_v56 = vmul.f32 %v7988_v14, %v7722_v57  ;;  %v5479_v18 = vor.u32 %v6882_v29, %v5478_v62  ;;  %v5466_v62 = vld [vmem:[%s9722_s1 + $0xe0] sm:$0xf] }
 0x111   :  { %v628_v33 = vpop.f32.mrf.mxu0  ;;  %v7980_v31 = vadd.f32 %v922_v7, %v823_v1  ;;  %v727_v38 = vpop.f32.mrf.mxu1  ;;  %v5490_v7 = vld [vmem:[%s9722_s1 + $0x110] sm:$0xf]  ;;  %v1190_v1 = vmul.f32 %v7988_v14, %v7743_v16 }
 0x112   :  { %v728_v34 = vadd.f32 %v727_v38, %v628_v33  ;;  %v7985_v51 = vpack.c.bf16 %v1449_v30, %v1446_v60  ;;  %v5491_v33 = vor.u32 %v6885_v42, %v5490_v7  ;;  %v8009_v60 = vperm.slane %v7715_v47, 1  ;;  %v6900_v47 = vld [vmem:[%s9726_s2 + $0x10] sm:$0xff]  ;;  %1874 = vmatpush.bf16.msrb.mxu3 %v6909_v35 }
 0x113   :  { %667 = vmatmul.bf16.gmra.mxu0 %v7961_v13  ;;  %1775 = vmatpush.bf16.msrb.mxu2 %v6901_v43 }
 0x114   :  { %766 = vmatmul.bf16.gmra.mxu1 %v7969_v25  ;;  %v1228_v30 = vmul.f32 %v7708_v46, %v728_v34  ;;  %v1303_v43 = vadd.f32 %v8009_v60, %v1187_v56  ;;  %v1306_v34 = vadd.f32 %v8009_v60, %v1190_v1  ;;  %v6847_v56 = vld [vmem:[%s9723_s0 + $0x104] sm:$0xf0] }
 0x115   :  { %865 = vmatmul.bf16.gmra.mxu2 %v7961_v13  ;;  %964 = vmatmul.bf16.gmra.mxu3 %v7969_v25  ;;  %v5454_v13 = vld [vmem:[%s9722_s1 + $0xc8] sm:$0xf] }
 0x116   :  { %1083 = vmatpush.bf16.msrb.mxu1 %v5491_v33  ;;  %v6908_v33 = vld [vmem:[%s9726_s2 + $0x50] sm:$0xff]  ;;  %v1344_v35 = vadd.f32 %v7720_v52, %v1228_v30  ;;  %v5336_v30 = vld [vmem:[%s9723_s0 + $0x108] sm:$0xf0] }
 0x117   :  { %1776 = vmatpush.bf16.msrb.mxu2 %v6900_v47  ;;  %1875 = vmatpush.bf16.msrb.mxu3 %v6908_v33 }
 0x118   :  { %v826_v22 = vpop.f32.mrf.mxu2  ;;  %v925_v38 = vpop.f32.mrf.mxu3  ;;  %v1452_v33 = vmax.f32 %v1344_v35, 0.0  ;;  %v6906_v35 = vld [vmem:[%s9726_s2 + $0x40] sm:$0xff] }
 0x119   :  { %v630_v57 = vpop.f32.mrf.mxu0  ;;  %v8023_v16 = vadd.f32 %v925_v38, %v826_v22  ;;  %v729_v7 = vpop.f32.mrf.mxu1  ;;  %v6879_v22 = vld [vmem:[%s9722_s1 + $0xe8] sm:$0xf0]  ;;  %v5334_v38 = vld [vmem:[%s9723_s0 + $0x100] sm:$0xf] }
 0x11a   :  { %v730_v42 = vadd.f32 %v729_v7, %v630_v57  ;;  %1084 = vmatpush.bf16.msrb.mxu1 %v5479_v18  ;;  %v5467_v1 = vor.u32 %v6879_v22, %v5466_v62  ;;  %v6899_v57 = vld [vmem:[%s9726_s2 + $0x8] sm:$0xff]  ;;  %v6846_v18 = vld [vmem:[%s9723_s0 + $0x104] sm:$0xf]  ;;  %v1414_v62 = vmax.f32 %v1306_v34, 0.0  ;;  %v8057_v25 = vor.u32 %v6847_v56, %v5334_v38 }
 0x11b   :  { %1777 = vmatpush.bf16.msrb.mxu2 %v6899_v57  ;;  %v6907_v7 = vld [vmem:[%s9726_s2 + $0x48] sm:$0xff]  ;;  %v8065_v44 = vor.u32 %v6846_v18, %v5336_v30 }
 0x11c   :  { %v1231_v29 = vmul.f32 %v7708_v46, %v730_v42  ;;  %v1411_v42 = vmax.f32 %v1303_v43, 0.0  ;;  %9771 = vst [vmem:[#allocation18_spill] sm:$0xff] %v8057_v25  ;;  %v6898_v43 = vld [vmem:[%s9726_s2] sm:$0xff]  ;;  %1876 = vmatpush.bf16.msrb.mxu3 %v6907_v7 }
 0x11d   :  { %9772 = vst [vmem:[#allocation19_spill] sm:$0xff] %v8065_v44 }
 0x11e   :  { %v1347_v47 = vadd.f32 %v7720_v52, %v1231_v29  ;;  %1085 = vmatpush.bf16.msrb.mxu1 %v5467_v1  ;;  %v6876_v29 = vld [vmem:[%s9722_s1 + $0xd0] sm:$0xf0] }
 0x11f   :  { %v5455_v15 = vor.u32 %v6876_v29, %v5454_v13  ;;  %1778 = vmatpush.bf16.msrb.mxu2 %v6898_v43  ;;  %v8078_v13 = vpack.c.bf16 %v1414_v62, %v1411_v42  ;;  %v6849_v43 = vld [vmem:[%s9723_s0 + $0x114] sm:$0xf0] }
 0x120   :  { %v828_v22 = vpop.f32.mrf.mxu2  ;;  %v927_v57 = vpop.f32.mrf.mxu3  ;;  %v1455_v34 = vmax.f32 %v1347_v47, 0.0  ;;  %1877 = vmatpush.bf16.msrb.mxu3 %v6906_v35 }
 0x121   :  { %v633_v53 = vpop.f32.mrf.mxu0  ;;  %v8070_v38 = vadd.f32 %v927_v57, %v828_v22  ;;  %v732_v56 = vpop.f32.mrf.mxu1 }
 0x122   :  { %v733_v1 = vadd.f32 %v732_v56, %v633_v53  ;;  %v8075_v8 = vpack.c.bf16 %v1455_v34, %v1452_v33  ;;  %1086 = vmatpush.bf16.msrb.mxu1 %v5455_v15  ;;  %v1193_v53 = vmul.f32 %v7988_v14, %v7752_v28  ;;  %v1196_v15 = vmul.f32 %v7988_v14, %v7773_v58  ;;  %v5342_v28 = vld [vmem:[%s9723_s0 + $0x110] sm:$0xf]  ;;  %v6848_v34 = vld [vmem:[%s9723_s0 + $0x114] sm:$0xf]  ;;  %v5344_v56 = vld [vmem:[%s9723_s0 + $0x118] sm:$0xf0] }
 0x123   :  { %672 = vmatmul.bf16.gmra.mxu0 %v8057_v25 }
 0x124   :  { %771 = vmatmul.bf16.gmra.mxu1 %v8065_v44  ;;  %v1234_v30 = vmul.f32 %v7708_v46, %v733_v1  ;;  %v1309_v29 = vadd.f32 %v8009_v60, %v1193_v53  ;;  %v1312_v58 = vadd.f32 %v8009_v60, %v1196_v15 }
 0x125   :  { %870 = vmatmul.bf16.gmra.mxu2 %v8057_v25  ;;  %969 = vmatmul.bf16.gmra.mxu3 %v8065_v44 }
 0x126   :  { %v1350_v33 = vadd.f32 %v7720_v52, %v1234_v30  ;;  %v1417_v35 = vmax.f32 %v1309_v29, 0.0  ;;  %v6915_v30 = vld [vmem:[%s9726_s2 + $0x88] sm:$0xff]  ;;  %v1420_v37 = vmax.f32 %v1312_v58, 0.0 }
 0x127   :  { %1975 = vmatpush.bf16.msra.mxu0 %v6915_v30 }
 0x128   :  { %v831_v18 = vpop.f32.mrf.mxu2  ;;  %v930_v47 = vpop.f32.mrf.mxu3 }
 0x129   :  { %v635_v7 = vpop.f32.mrf.mxu0  ;;  %v8088_v42 = vadd.f32 %v930_v47, %v831_v18  ;;  %v734_v62 = vpop.f32.mrf.mxu1  ;;  %v8107_v18 = vor.u32 %v6849_v43, %v5342_v28  ;;  %v1458_v47 = vmax.f32 %v1350_v33, 0.0  ;;  %v1522_v28 = vpack.c.bf16 %v1420_v37, %v1417_v35 }
 0x12a   :  { %v735_v22 = vadd.f32 %v734_v62, %v635_v7  ;;  %v8112_v62 = vor.u32 %v6848_v34, %v5344_v56  ;;  %v1199_v33 = vmul.f32 %v7988_v14, %v7794_v17 }
 0x12b   :  { %9773 = vst [vmem:[#allocation20_spill] sm:$0xff] %v8107_v18 }
 0x12c   :  { %v1237_v57 = vmul.f32 %v7708_v46, %v735_v22  ;;  %9774 = vst [vmem:[#allocation21_spill] sm:$0xff] %v8112_v62 }
 0x12e   :  { %v1353_v1 = vadd.f32 %v7720_v52, %v1237_v57 }
 0x130   :  { %v833_v53 = vpop.f32.mrf.mxu2  ;;  %v932_v7 = vpop.f32.mrf.mxu3  ;;  %v1461_v22 = vmax.f32 %v1353_v1, 0.0 }
 0x131   :  { %v638_v15 = vpop.f32.mrf.mxu0  ;;  %v8114_v44 = vadd.f32 %v932_v7, %v833_v53  ;;  %v737_v25 = vpop.f32.mrf.mxu1  ;;  %v1315_v53 = vadd.f32 %v8009_v60, %v1199_v33 }
 0x132   :  { %v738_v57 = vadd.f32 %v737_v25, %v638_v15  ;;  %v8116_v29 = vpack.c.bf16 %v1461_v22, %v1458_v47  ;;  %v1202_v25 = vmul.f32 %v7988_v14, %v7815_v50 }
 0x133   :  { %677 = vmatmul.bf16.gmra.mxu0 %v8107_v18  ;;  %v1423_v15 = vmax.f32 %v1315_v53, 0.0 }
 0x134   :  { %776 = vmatmul.bf16.gmra.mxu1 %v8112_v62  ;;  %v1240_v34 = vmul.f32 %v7708_v46, %v738_v57  ;;  %v1318_v17 = vadd.f32 %v8009_v60, %v1202_v25  ;;  %v1205_v25 = vmul.f32 %v7988_v14, %v7824_v3 }
 0x135   :  { %875 = vmatmul.bf16.gmra.mxu2 %v8107_v18  ;;  %974 = vmatmul.bf16.gmra.mxu3 %v8112_v62 }
 0x136   :  { %v1356_v30 = vadd.f32 %v7720_v52, %v1240_v34 }
 0x138   :  { %v836_v43 = vpop.f32.mrf.mxu2  ;;  %v935_v56 = vpop.f32.mrf.mxu3  ;;  %v1464_v57 = vmax.f32 %v1356_v30, 0.0 }
 0x139   :  { %v640_v58 = vpop.f32.mrf.mxu0  ;;  %v8127_v1 = vadd.f32 %v935_v56, %v836_v43  ;;  %v739_v37 = vpop.f32.mrf.mxu1 }
 0x13a   :  { %v740_v35 = vadd.f32 %v739_v37, %v640_v58  ;;  %v1426_v58 = vmax.f32 %v1318_v17, 0.0 }
 0x13c   :  { %v1243_v47 = vmul.f32 %v7708_v46, %v740_v35  ;;  %v1525_v34 = vpack.c.bf16 %v1426_v58, %v1423_v15 }
 0x13e   :  { %v1359_v7 = vadd.f32 %v7720_v52, %v1243_v47 }
 0x140   :  { %v838_v22 = vpop.f32.mrf.mxu2  ;;  %v937_v62 = vpop.f32.mrf.mxu3  ;;  %v1467_v50 = vmax.f32 %v1359_v7, 0.0 }
 0x141   :  { %v643_v18 = vpop.f32.mrf.mxu0  ;;  %v8134_v43 = vadd.f32 %v937_v62, %v838_v22  ;;  %v742_v56 = vpop.f32.mrf.mxu1 }
 0x142   :  { %v743_v37 = vadd.f32 %v742_v56, %v643_v18  ;;  %v8136_v33 = vpack.c.bf16 %v1467_v50, %v1464_v57  ;;  %v1208_v18 = vmul.f32 %v7988_v14, %v7845_v36 }
 0x143   :  { %988 = vmatmul.bf16.vlgmr.msrb.gmra.mxu0 %v7507_v39 }
 0x144   :  { %1087 = vmatmul.bf16.vlgmr.msrb.gmra.mxu1 %v7509_v40  ;;  %v1246_v62 = vmul.f32 %v7708_v46, %v743_v37  ;;  %v1321_v40 = vadd.f32 %v8009_v60, %v1205_v25  ;;  %v1324_v3 = vadd.f32 %v8009_v60, %v1208_v18 }
 0x145   :  { %1779 = vmatmul.bf16.vlgmr.msrb.gmra.mxu2 %v7745_v19  ;;  %1878 = vmatmul.bf16.vlgmr.msrb.gmra.mxu3 %v8078_v13 }
 0x146   :  { %v1362_v19 = vadd.f32 %v7720_v52, %v1246_v62  ;;  %v1429_v15 = vmax.f32 %v1321_v40, 0.0 }
 0x148   :  { %v841_v35 = vpop.f32.mrf.mxu2  ;;  %v940_v53 = vpop.f32.mrf.mxu3  ;;  %v1470_v57 = vmax.f32 %v1362_v19, 0.0  ;;  %v1214_v19 = vmul.f32 %v7988_v14, %v7887_v2 }
 0x149   :  { %v645_v30 = vpop.f32.mrf.mxu0  ;;  %v8147_v47 = vadd.f32 %v940_v53, %v841_v35  ;;  %v744_v39 = vpop.f32.mrf.mxu1  ;;  %v1432_v35 = vmax.f32 %v1324_v3, 0.0 }
 0x14a   :  { %v745_v17 = vadd.f32 %v744_v39, %v645_v30  ;;  %v1211_v30 = vmul.f32 %v7988_v14, %v7860_v4  ;;  %v1330_v4 = vadd.f32 %v8009_v60, %v1214_v19 }
 0x14b   :  { %v1528_v62 = vpack.c.bf16 %v1432_v35, %v1429_v15 }
 0x14c   :  { %v1249_v13 = vmul.f32 %v7708_v46, %v745_v17  ;;  %v1438_v35 = vmax.f32 %v1330_v4, 0.0 }
 0x14e   :  { %v1365_v7 = vadd.f32 %v7720_v52, %v1249_v13 }
 0x150   :  { %v843_v22 = vpop.f32.mrf.mxu2  ;;  %v942_v50 = vpop.f32.mrf.mxu3  ;;  %v1473_v36 = vmax.f32 %v1365_v7, 0.0 }
 0x151   :  { %v648_v56 = vpop.f32.mrf.mxu0  ;;  %v8154_v58 = vadd.f32 %v942_v50, %v843_v22  ;;  %v747_v37 = vpop.f32.mrf.mxu1 }
 0x152   :  { %v748_v53 = vadd.f32 %v747_v37, %v648_v56  ;;  %v8156_v25 = vpack.c.bf16 %v1473_v36, %v1470_v57 }
 0x153   :  { %993 = vmatmul.bf16.gmra.mxu0 %v7533_v48 }
 0x154   :  { %1092 = vmatmul.bf16.gmra.mxu1 %v7535_v49  ;;  %v1252_v39 = vmul.f32 %v7708_v46, %v748_v53  ;;  %v1327_v49 = vadd.f32 %v8009_v60, %v1211_v30 }
 0x155   :  { %1784 = vmatmul.bf16.gmra.mxu2 %v7775_v61  ;;  %1883 = vmatmul.bf16.gmra.mxu3 %v1522_v28 }
 0x156   :  { %v1368_v61 = vadd.f32 %v7720_v52, %v1252_v39  ;;  %v1435_v15 = vmax.f32 %v1327_v49, 0.0  ;;  %v1217_v39 = vmul.f32 %v7988_v14, %v7896_v23 }
 0x158   :  { %v846_v18 = vpop.f32.mrf.mxu2  ;;  %v945_v17 = vpop.f32.mrf.mxu3  ;;  %v1476_v57 = vmax.f32 %v1368_v61, 0.0 }
 0x159   :  { %v650_v40 = vpop.f32.mrf.mxu0  ;;  %v8166_v13 = vadd.f32 %v945_v17, %v846_v18  ;;  %v749_v48 = vpop.f32.mrf.mxu1  ;;  %v1531_v18 = vpack.c.bf16 %v1438_v35, %v1435_v15 }
 0x15a   :  { %v750_v3 = vadd.f32 %v749_v48, %v650_v40 }
 0x15c   :  { %v1255_v28 = vmul.f32 %v7708_v46, %v750_v3  ;;  %v1220_v3 = vmul.f32 %v7988_v14, %v7917_v24 }
 0x15e   :  { %v1371_v7 = vadd.f32 %v7720_v52, %v1255_v28  ;;  %v1336_v23 = vadd.f32 %v8009_v60, %v1220_v3  ;;  %v1226_v3 = vmul.f32 %v7988_v14, %v7980_v31 }
 0x160   :  { %v848_v22 = vpop.f32.mrf.mxu2  ;;  %v947_v50 = vpop.f32.mrf.mxu3  ;;  %v1479_v2 = vmax.f32 %v1371_v7, 0.0 }
 0x161   :  { %v653_v56 = vpop.f32.mrf.mxu0  ;;  %v8173_v36 = vadd.f32 %v947_v50, %v848_v22  ;;  %v752_v37 = vpop.f32.mrf.mxu1 }
 0x162   :  { %v753_v53 = vadd.f32 %v752_v37, %v653_v56  ;;  %v8175_v30 = vpack.c.bf16 %v1479_v2, %v1476_v57  ;;  %v1444_v2 = vmax.f32 %v1336_v23, 0.0 }
 0x163   :  { %998 = vmatmul.bf16.gmra.mxu0 %v7553_v54 }
 0x164   :  { %1097 = vmatmul.bf16.gmra.mxu1 %v7555_v55  ;;  %v1258_v40 = vmul.f32 %v7708_v46, %v753_v53  ;;  %v1333_v55 = vadd.f32 %v8009_v60, %v1217_v39  ;;  %v1223_v39 = vmul.f32 %v7988_v14, %v7938_v9  ;;  %v1342_v9 = vadd.f32 %v8009_v60, %v1226_v3 }
 0x165   :  { %1789 = vmatmul.bf16.gmra.mxu2 %v7817_v59  ;;  %1888 = vmatmul.bf16.gmra.mxu3 %v1525_v34 }
 0x166   :  { %v1374_v59 = vadd.f32 %v7720_v52, %v1258_v40  ;;  %v1441_v4 = vmax.f32 %v1333_v55, 0.0 }
 0x168   :  { %v851_v17 = vpop.f32.mrf.mxu2  ;;  %v950_v19 = vpop.f32.mrf.mxu3  ;;  %v1482_v15 = vmax.f32 %v1374_v59, 0.0  ;;  %v1534_v53 = vpack.c.bf16 %v1444_v2, %v1441_v4  ;;  %v1229_v2 = vmul.f32 %v7988_v14, %v8023_v16 }
 0x169   :  { %v655_v48 = vpop.f32.mrf.mxu0  ;;  %v8185_v49 = vadd.f32 %v950_v19, %v851_v17  ;;  %v754_v54 = vpop.f32.mrf.mxu1 }
 0x16a   :  { %v755_v61 = vadd.f32 %v754_v54, %v655_v48 }
 0x16c   :  { %v1261_v34 = vmul.f32 %v7708_v46, %v755_v61 }
 0x16e   :  { %v1377_v28 = vadd.f32 %v7720_v52, %v1261_v34 }
 0x170   :  { %v853_v7 = vpop.f32.mrf.mxu2  ;;  %v952_v22 = vpop.f32.mrf.mxu3  ;;  %v1485_v24 = vmax.f32 %v1377_v28, 0.0 }
 0x171   :  { %v658_v57 = vpop.f32.mrf.mxu0  ;;  %v8192_v50 = vadd.f32 %v952_v22, %v853_v7  ;;  %v757_v56 = vpop.f32.mrf.mxu1  ;;  %v1450_v22 = vmax.f32 %v1342_v9, 0.0 }
 0x172   :  { %v758_v37 = vadd.f32 %v757_v56, %v658_v57  ;;  %v8194_v35 = vpack.c.bf16 %v1485_v24, %v1482_v15 }
 0x173   :  { %1003 = vmatmul.bf16.gmra.mxu0 %v7579_v63 }
 0x174   :  { %1102 = vmatmul.bf16.gmra.mxu1 %v7581_v0  ;;  %v1264_v40 = vmul.f32 %v7708_v46, %v758_v37  ;;  %v1339_v0 = vadd.f32 %v8009_v60, %v1223_v39 }
 0x175   :  { %1794 = vmatmul.bf16.gmra.mxu2 %v7847_v45  ;;  %1893 = vmatmul.bf16.gmra.mxu3 %v1528_v62 }
 0x176   :  { %v1380_v45 = vadd.f32 %v7720_v52, %v1264_v40  ;;  %v1447_v59 = vmax.f32 %v1339_v0, 0.0 }
 0x178   :  { %v856_v17 = vpop.f32.mrf.mxu2  ;;  %v955_v19 = vpop.f32.mrf.mxu3  ;;  %v1488_v23 = vmax.f32 %v1380_v45, 0.0  ;;  %v1537_v56 = vpack.c.bf16 %v1450_v22, %v1447_v59 }
 0x179   :  { %v660_v48 = vpop.f32.mrf.mxu0  ;;  %v8204_v54 = vadd.f32 %v955_v19, %v856_v17  ;;  %v759_v63 = vpop.f32.mrf.mxu1  ;;  %v1232_v19 = vmul.f32 %v7988_v14, %v8070_v38 }
 0x17a   :  { %v760_v61 = vadd.f32 %v759_v63, %v660_v48 }
 0x17b   :  { %v1348_v16 = vadd.f32 %v8009_v60, %v1232_v19 }
 0x17c   :  { %v1267_v62 = vmul.f32 %v7708_v46, %v760_v61 }
 0x17e   :  { %v1383_v55 = vadd.f32 %v7720_v52, %v1267_v62 }
 0x180   :  { %v858_v34 = vpop.f32.mrf.mxu2  ;;  %v957_v28 = vpop.f32.mrf.mxu3  ;;  %v1491_v31 = vmax.f32 %v1383_v55, 0.0 }
 0x181   :  { %v663_v4 = vpop.f32.mrf.mxu0  ;;  %v8211_v7 = vadd.f32 %v957_v28, %v858_v34  ;;  %v762_v15 = vpop.f32.mrf.mxu1  ;;  %v1456_v34 = vmax.f32 %v1348_v16, 0.0 }
 0x182   :  { %v763_v57 = vadd.f32 %v762_v15, %v663_v4  ;;  %v8213_v24 = vpack.c.bf16 %v1491_v31, %v1488_v23  ;;  %v1235_v31 = vmul.f32 %v7988_v14, %v8088_v42 }
 0x183   :  { %1008 = vmatmul.bf16.gmra.mxu0 %v7599_v5 }
 0x184   :  { %1107 = vmatmul.bf16.gmra.mxu1 %v7601_v6  ;;  %v1270_v39 = vmul.f32 %v7708_v46, %v763_v57  ;;  %v1345_v6 = vadd.f32 %v8009_v60, %v1229_v2 }
 0x185   :  { %1799 = vmatmul.bf16.gmra.mxu2 %v7889_v10  ;;  %1898 = vmatmul.bf16.gmra.mxu3 %v1531_v18 }
 0x186   :  { %v1386_v10 = vadd.f32 %v7720_v52, %v1270_v39  ;;  %v1453_v61 = vmax.f32 %v1345_v6, 0.0 }
 0x188   :  { %v861_v37 = vpop.f32.mrf.mxu2  ;;  %v960_v17 = vpop.f32.mrf.mxu3  ;;  %v1494_v45 = vmax.f32 %v1386_v10, 0.0  ;;  %v1540_v4 = vpack.c.bf16 %v1456_v34, %v1453_v61 }
 0x189   :  { %v665_v40 = vpop.f32.mrf.mxu0  ;;  %v8223_v48 = vadd.f32 %v960_v17, %v861_v37  ;;  %v764_v5 = vpop.f32.mrf.mxu1  ;;  %v1238_v37 = vmul.f32 %v7988_v14, %v8114_v44 }
 0x18a   :  { %v765_v3 = vadd.f32 %v764_v5, %v665_v40 }
 0x18b   :  { %v1354_v42 = vadd.f32 %v8009_v60, %v1238_v37 }
 0x18c   :  { %v1273_v18 = vmul.f32 %v7708_v46, %v765_v3 }
 0x18e   :  { %v1389_v63 = vadd.f32 %v7720_v52, %v1273_v18 }
 0x190   :  { %v863_v0 = vpop.f32.mrf.mxu2  ;;  %v962_v62 = vpop.f32.mrf.mxu3  ;;  %v1497_v38 = vmax.f32 %v1389_v63, 0.0  ;;  %v1462_v63 = vmax.f32 %v1354_v42, 0.0 }
 0x191   :  { %v668_v9 = vpop.f32.mrf.mxu0  ;;  %v8230_v55 = vadd.f32 %v962_v62, %v863_v0  ;;  %v767_v59 = vpop.f32.mrf.mxu1  ;;  %v1241_v62 = vmul.f32 %v7988_v14, %v8127_v1 }
 0x192   :  { %v768_v23 = vadd.f32 %v767_v59, %v668_v9  ;;  %v8232_v28 = vpack.c.bf16 %v1497_v38, %v1494_v45 }
 0x193   :  { %1013 = vmatmul.bf16.gmra.mxu0 %v7619_v11 }
 0x194   :  { %1112 = vmatmul.bf16.gmra.mxu1 %v7621_v12  ;;  %v1276_v22 = vmul.f32 %v7708_v46, %v768_v23  ;;  %v1351_v12 = vadd.f32 %v8009_v60, %v1235_v31  ;;  %v1244_v23 = vmul.f32 %v7988_v14, %v8134_v43 }
 0x195   :  { %1804 = vmatmul.bf16.gmra.mxu2 %v7919_v41  ;;  %1903 = vmatmul.bf16.gmra.mxu3 %v1534_v53 }
 0x196   :  { %v1392_v41 = vadd.f32 %v7720_v52, %v1276_v22  ;;  %v1459_v19 = vmax.f32 %v1351_v12, 0.0  ;;  %v1360_v1 = vadd.f32 %v8009_v60, %v1244_v23 }
 0x198   :  { %v866_v15 = vpop.f32.mrf.mxu2  ;;  %v965_v57 = vpop.f32.mrf.mxu3  ;;  %v1500_v3 = vmax.f32 %v1392_v41, 0.0  ;;  %v8254_v45 = vpack.c.bf16 %v1462_v63, %v1459_v19 }
 0x199   :  { %v670_v2 = vpop.f32.mrf.mxu0  ;;  %v8242_v39 = vadd.f32 %v965_v57, %v866_v15  ;;  %v769_v11 = vpop.f32.mrf.mxu1 }
 0x19a   :  { %v770_v17 = vadd.f32 %v769_v11, %v670_v2 }
 0x19c   :  { %v1279_v53 = vmul.f32 %v7708_v46, %v770_v17 }
 0x19e   :  { %v1395_v40 = vadd.f32 %v7720_v52, %v1279_v53  ;;  %v1468_v53 = vmax.f32 %v1360_v1, 0.0  ;;  %v7218_v1 = vld [vmem:[%s9724_s6] sm:$0x7] }
 0x1a0   :  { %v868_v5 = vpop.f32.mrf.mxu2  ;;  %v967_v6 = vpop.f32.mrf.mxu3  ;;  %v1503_v44 = vmax.f32 %v1395_v40, 0.0 }
 0x1a1   :  { %v673_v10 = vpop.f32.mrf.mxu0  ;;  %v8249_v18 = vadd.f32 %v967_v6, %v868_v5  ;;  %v772_v16 = vpop.f32.mrf.mxu1  ;;  %v1247_v5 = vmul.f32 %v7988_v14, %v8147_v47 }
 0x1a2   :  { %v773_v61 = vadd.f32 %v772_v16, %v673_v10  ;;  %v8251_v0 = vpack.c.bf16 %v1503_v44, %v1500_v3  ;;  %v1250_v16 = vmul.f32 %v7988_v14, %v8154_v58  ;;  %v6914_v58 = vld [vmem:[%s9726_s2 + $0x80] sm:$0xff] }
 0x1a3   :  { %1018 = vmatmul.bf16.gmra.mxu0 %v7645_v20 }
 0x1a4   :  { %1117 = vmatmul.bf16.gmra.mxu1 %v7647_v21  ;;  %v1282_v38 = vmul.f32 %v7708_v46, %v773_v61  ;;  %v1357_v21 = vadd.f32 %v8009_v60, %v1241_v62  ;;  %v1366_v47 = vadd.f32 %v8009_v60, %v1250_v16  ;;  %1976 = vmatpush.bf16.msra.mxu0 %v6914_v58 }
 0x1a5   :  { %1809 = vmatmul.bf16.gmra.mxu2 %v7985_v51  ;;  %1908 = vmatmul.bf16.gmra.mxu3 %v1537_v56 }
 0x1a6   :  { %v1398_v51 = vadd.f32 %v7720_v52, %v1282_v38  ;;  %v1465_v57 = vmax.f32 %v1357_v21, 0.0 }
 0x1a8   :  { %v871_v9 = vpop.f32.mrf.mxu2  ;;  %v970_v59 = vpop.f32.mrf.mxu3  ;;  %v1506_v37 = vmax.f32 %v1398_v51, 0.0  ;;  %v8275_v19 = vpack.c.bf16 %v1468_v53, %v1465_v57  ;;  %v1474_v51 = vmax.f32 %v1366_v47, 0.0  ;;  %v9775_v57 = vld [vmem:[#allocation3_spill] sm:$0xff]  ;;  %v1256_v53 = vmul.f32 %v7988_v14, %v8173_v36 }
 0x1a9   :  { %v675_v34 = vpop.f32.mrf.mxu0  ;;  %v8263_v31 = vadd.f32 %v970_v59, %v871_v9  ;;  %v774_v20 = vpop.f32.mrf.mxu1 }
 0x1aa   :  { %v775_v15 = vadd.f32 %v774_v20, %v675_v34 }
 0x1ac   :  { %v1285_v56 = vmul.f32 %v7708_v46, %v775_v15 }
 0x1ae   :  { %v1401_v22 = vadd.f32 %v7720_v52, %v1285_v56 }
 0x1b0   :  { %v873_v2 = vpop.f32.mrf.mxu2  ;;  %v972_v11 = vpop.f32.mrf.mxu3  ;;  %v1509_v43 = vmax.f32 %v1401_v22, 0.0  ;;  %v8304_v22 = vperm.slane %v7218_v1, 2 }
 0x1b1   :  { %v678_v17 = vpop.f32.mrf.mxu0  ;;  %v8270_v12 = vadd.f32 %v972_v11, %v873_v2  ;;  %v777_v41 = vpop.f32.mrf.mxu1  ;;  %v1253_v2 = vmul.f32 %v7988_v14, %v8166_v13  ;;  %v7219_v11 = vld [vmem:[%s9725_s7] sm:$0x7] }
 0x1b2   :  { %v778_v42 = vadd.f32 %v777_v41, %v678_v17  ;;  %v8272_v40 = vpack.c.bf16 %v1509_v43, %v1506_v37  ;;  %v8315_v17 = vperm.slane %v7219_v11, 2 }
 0x1b3   :  { %1023 = vmatmul.bf16.gmra.mxu0 %v7665_v26  ;;  %v1369_v13 = vadd.f32 %v8009_v60, %v1253_v2 }
 0x1b4   :  { %1122 = vmatmul.bf16.gmra.mxu1 %v7667_v27  ;;  %v1288_v6 = vmul.f32 %v7708_v46, %v778_v42  ;;  %v1363_v27 = vadd.f32 %v8009_v60, %v1247_v5 }
 0x1b5   :  { %1814 = vmatmul.bf16.gmra.mxu2 %v8075_v8  ;;  %1913 = vmatmul.bf16.gmra.mxu3 %v1540_v4 }
 0x1b6   :  { %v1404_v8 = vadd.f32 %v7720_v52, %v1288_v6  ;;  %v1471_v9 = vmax.f32 %v1363_v27, 0.0  ;;  %v1372_v6 = vadd.f32 %v8009_v60, %v1256_v53 }
 0x1b8   :  { %v876_v3 = vpop.f32.mrf.mxu2  ;;  %v975_v10 = vpop.f32.mrf.mxu3  ;;  %v1512_v59 = vmax.f32 %v1404_v8, 0.0  ;;  %v1480_v47 = vmax.f32 %v1372_v6, 0.0 }
 0x1b9   :  { %v680_v44 = vpop.f32.mrf.mxu0  ;;  %v8284_v63 = vadd.f32 %v975_v10, %v876_v3  ;;  %v779_v26 = vpop.f32.mrf.mxu1 }
 0x1ba   :  { %v780_v61 = vadd.f32 %v779_v26, %v680_v44  ;;  %v1477_v44 = vmax.f32 %v1369_v13, 0.0 }
 0x1bc   :  { %v1291_v4 = vmul.f32 %v7708_v46, %v780_v61 }
 0x1be   :  { %v1407_v62 = vadd.f32 %v7720_v52, %v1291_v4  ;;  %v8299_v52 = vpack.c.bf16 %v1474_v51, %v1471_v9 }
 0x1c0   :  { %v878_v38 = vpop.f32.mrf.mxu2  ;;  %v977_v34 = vpop.f32.mrf.mxu3  ;;  %v1515_v20 = vmax.f32 %v1407_v62, 0.0 }
 0x1c1   :  { %v989_v23 = vpop.f32.mrf.mxu0  ;;  %v8294_v15 = vadd.f32 %v977_v34, %v878_v38  ;;  %v1088_v21 = vpop.f32.mrf.mxu1  ;;  %v9776_v38 = vld [vmem:[#allocation4_spill] sm:$0xff]  ;;  %v9777_v34 = vld [vmem:[#allocation5_spill] sm:$0xff] }
 0x1c2   :  { %v1089_v56 = vadd.f32 %v1088_v21, %v989_v23  ;;  %v8296_v46 = vpack.c.bf16 %v1515_v20, %v1512_v59  ;;  %v1552_v59 = vpack.c.bf16 %v1480_v47, %v1477_v44  ;;  %v1259_v23 = vmul.f32 %v7988_v14, %v8185_v49 }
 0x1c3   :  { %1028 = vmatmul.bf16.gmra.mxu0 %v7685_v32  ;;  %v1268_v47 = vmul.f32 %v7988_v14, %v8211_v7 }
 0x1c4   :  { %1127 = vmatmul.bf16.gmra.mxu1 %v9775_v57  ;;  %v1188_v32 = vmul.f32 %v8304_v22, %v1089_v56  ;;  %v1262_v56 = vmul.f32 %v7988_v14, %v8192_v50 }
 0x1c5   :  { %1819 = vmatmul.bf16.gmra.mxu2 %v8116_v29  ;;  %1918 = vmatmul.bf16.gmra.mxu3 %v8254_v45 }
 0x1c6   :  { %v1304_v5 = vadd.f32 %v8315_v17, %v1188_v32  ;;  %v1378_v49 = vadd.f32 %v8009_v60, %v1262_v56 }
 0x1c8   :  { %v1780_v37 = vpop.f32.mrf.mxu2  ;;  %v1879_v43 = vpop.f32.mrf.mxu3  ;;  %v1412_v26 = vmax.f32 %v1304_v5, 0.0  ;;  %v1486_v5 = vmax.f32 %v1378_v49, 0.0 }
 0x1c9   :  { %v991_v41 = vpop.f32.mrf.mxu0  ;;  %v8319_v29 = vadd.f32 %v1879_v43, %v1780_v37  ;;  %v1090_v45 = vpop.f32.mrf.mxu1  ;;  %v1375_v37 = vadd.f32 %v8009_v60, %v1259_v23 }
 0x1ca   :  { %v1091_v42 = vadd.f32 %v1090_v45, %v991_v41 }
 0x1cb   :  { %v1483_v11 = vmax.f32 %v1375_v37, 0.0 }
 0x1cc   :  { %v1191_v3 = vmul.f32 %v8304_v22, %v1091_v42 }
 0x1cd   :  { %v1555_v44 = vpack.c.bf16 %v1486_v5, %v1483_v11  ;;  %v1274_v5 = vmul.f32 %v7988_v14, %v8230_v55 }
 0x1ce   :  { %v1307_v10 = vadd.f32 %v8315_v17, %v1191_v3 }
 0x1d0   :  { %v1782_v16 = vpop.f32.mrf.mxu2  ;;  %v1415_v61 = vmax.f32 %v1307_v10, 0.0  ;;  %v1881_v27 = vpop.f32.mrf.mxu3  ;;  %v9778_v10 = vld [vmem:[#allocation6_spill] sm:$0xff] }
 0x1d1   :  { %v994_v36 = vpop.f32.mrf.mxu0  ;;  %v8326_v8 = vadd.f32 %v1881_v27, %v1782_v16  ;;  %v1093_v4 = vpop.f32.mrf.mxu1  ;;  %v9779_v16 = vld [vmem:[#allocation7_spill] sm:$0xff] }
 0x1d2   :  { %v8328_v62 = vpack.c.bf16 %v1415_v61, %v1412_v26  ;;  %v1094_v9 = vadd.f32 %v1093_v4, %v994_v36  ;;  %v1265_v26 = vmul.f32 %v7988_v14, %v8204_v54  ;;  %v1384_v54 = vadd.f32 %v8009_v60, %v1268_v47 }
 0x1d3   :  { %1033 = vmatmul.bf16.gmra.mxu0 %v9776_v38 }
 0x1d4   :  { %1132 = vmatmul.bf16.gmra.mxu1 %v9777_v34  ;;  %v1194_v20 = vmul.f32 %v8304_v22, %v1094_v9  ;;  %v1381_v23 = vadd.f32 %v8009_v60, %v1265_v26 }
 0x1d5   :  { %1824 = vmatmul.bf16.gmra.mxu2 %v8136_v33  ;;  %1923 = vmatmul.bf16.gmra.mxu3 %v8275_v19 }
 0x1d6   :  { %v1310_v33 = vadd.f32 %v8315_v17, %v1194_v20  ;;  %v1489_v20 = vmax.f32 %v1381_v23, 0.0 }
 0x1d8   :  { %v1785_v58 = vpop.f32.mrf.mxu2  ;;  %v1884_v21 = vpop.f32.mrf.mxu3  ;;  %v1418_v41 = vmax.f32 %v1310_v33, 0.0  ;;  %v1492_v33 = vmax.f32 %v1384_v54, 0.0 }
 0x1d9   :  { %v996_v51 = vpop.f32.mrf.mxu0  ;;  %v8339_v1 = vadd.f32 %v1884_v21, %v1785_v58  ;;  %v1095_v57 = vpop.f32.mrf.mxu1 }
 0x1da   :  { %v1096_v2 = vadd.f32 %v1095_v57, %v996_v51  ;;  %v1558_v11 = vpack.c.bf16 %v1492_v33, %v1489_v20  ;;  %v1280_v33 = vmul.f32 %v7988_v14, %v8249_v18 }
 0x1dc   :  { %v1197_v19 = vmul.f32 %v8304_v22, %v1096_v2 }
 0x1de   :  { %v1313_v32 = vadd.f32 %v8315_v17, %v1197_v19 }
 0x1e0   :  { %v1787_v43 = vpop.f32.mrf.mxu2  ;;  %v1421_v53 = vmax.f32 %v1313_v32, 0.0  ;;  %v1886_v45 = vpop.f32.mrf.mxu3  ;;  %v9780_v32 = vld [vmem:[#allocation8_spill] sm:$0xff] }
 0x1e1   :  { %v999_v50 = vpop.f32.mrf.mxu0  ;;  %v8346_v42 = vadd.f32 %v1886_v45, %v1787_v43  ;;  %v1098_v13 = vpop.f32.mrf.mxu1  ;;  %v9781_v43 = vld [vmem:[#allocation9_spill] sm:$0xff] }
 0x1e2   :  { %v1099_v3 = vadd.f32 %v1098_v13, %v999_v50  ;;  %v8348_v6 = vpack.c.bf16 %v1421_v53, %v1418_v41  ;;  %v1271_v41 = vmul.f32 %v7988_v14, %v8223_v48  ;;  %v1390_v48 = vadd.f32 %v8009_v60, %v1274_v5 }
 0x1e3   :  { %1038 = vmatmul.bf16.gmra.mxu0 %v9778_v10 }
 0x1e4   :  { %1137 = vmatmul.bf16.gmra.mxu1 %v9779_v16  ;;  %v1200_v27 = vmul.f32 %v8304_v22, %v1099_v3  ;;  %v1387_v26 = vadd.f32 %v8009_v60, %v1271_v41 }
 0x1e5   :  { %1829 = vmatmul.bf16.gmra.mxu2 %v8156_v25  ;;  %1928 = vmatmul.bf16.gmra.mxu3 %v8299_v52 }
 0x1e6   :  { %v1316_v25 = vadd.f32 %v8315_v17, %v1200_v27  ;;  %v1495_v27 = vmax.f32 %v1387_v26, 0.0 }
 0x1e8   :  { %v1790_v61 = vpop.f32.mrf.mxu2  ;;  %v1889_v36 = vpop.f32.mrf.mxu3  ;;  %v1424_v51 = vmax.f32 %v1316_v25, 0.0  ;;  %v1498_v25 = vmax.f32 %v1390_v48, 0.0 }
 0x1e9   :  { %v1001_v4 = vpop.f32.mrf.mxu0  ;;  %v8359_v9 = vadd.f32 %v1889_v36, %v1790_v61  ;;  %v1100_v38 = vpop.f32.mrf.mxu1 }
 0x1ea   :  { %v1101_v34 = vadd.f32 %v1100_v38, %v1001_v4  ;;  %v1561_v20 = vpack.c.bf16 %v1498_v25, %v1495_v27  ;;  %v1286_v25 = vmul.f32 %v7988_v14, %v8270_v12 }
 0x1ec   :  { %v1203_v52 = vmul.f32 %v8304_v22, %v1101_v34 }
 0x1ee   :  { %v1319_v58 = vadd.f32 %v8315_v17, %v1203_v52 }
 0x1f0   :  { %v1792_v21 = vpop.f32.mrf.mxu2  ;;  %v1427_v56 = vmax.f32 %v1319_v58, 0.0  ;;  %v1891_v57 = vpop.f32.mrf.mxu3  ;;  %v9782_v58 = vld [vmem:[#allocation10_spill] sm:$0xff] }
 0x1f1   :  { %v1004_v7 = vpop.f32.mrf.mxu0  ;;  %v8366_v2 = vadd.f32 %v1891_v57, %v1792_v21  ;;  %v1103_v37 = vpop.f32.mrf.mxu1  ;;  %v9783_v21 = vld [vmem:[#allocation11_spill] sm:$0xff] }
 0x1f2   :  { %v1104_v19 = vadd.f32 %v1103_v37, %v1004_v7  ;;  %v8368_v49 = vpack.c.bf16 %v1427_v56, %v1424_v51  ;;  %v1277_v51 = vmul.f32 %v7988_v14, %v8242_v39  ;;  %v1396_v39 = vadd.f32 %v8009_v60, %v1280_v33 }
 0x1f3   :  { %1043 = vmatmul.bf16.gmra.mxu0 %v9780_v32 }
 0x1f4   :  { %1142 = vmatmul.bf16.gmra.mxu1 %v9781_v43  ;;  %v1206_v45 = vmul.f32 %v8304_v22, %v1104_v19  ;;  %v1393_v41 = vadd.f32 %v8009_v60, %v1277_v51 }
 0x1f5   :  { %1834 = vmatmul.bf16.gmra.mxu2 %v8175_v30  ;;  %1933 = vmatmul.bf16.gmra.mxu3 %v1552_v59 }
 0x1f6   :  { %v1322_v30 = vadd.f32 %v8315_v17, %v1206_v45  ;;  %v1501_v45 = vmax.f32 %v1393_v41, 0.0 }
 0x1f8   :  { %v1795_v53 = vpop.f32.mrf.mxu2  ;;  %v1894_v50 = vpop.f32.mrf.mxu3  ;;  %v1430_v4 = vmax.f32 %v1322_v30, 0.0  ;;  %v1504_v30 = vmax.f32 %v1396_v39, 0.0  ;;  %v9786_v39 = vld [vmem:[#allocation14_spill] sm:$0xff] }
 0x1f9   :  { %v1006_v13 = vpop.f32.mrf.mxu0  ;;  %v8378_v3 = vadd.f32 %v1894_v50, %v1795_v53  ;;  %v1105_v10 = vpop.f32.mrf.mxu1 }
 0x1fa   :  { %v1106_v16 = vadd.f32 %v1105_v10, %v1006_v13  ;;  %v8409_v27 = vpack.c.bf16 %v1504_v30, %v1501_v45  ;;  %v6931_v30 = vld [vmem:[%s9727_s3 + $0x78] sm:$0xff] }
 0x1fb   :  { %4609 = vmatpush.bf16.msra.mxu2 %v6931_v30 }
 0x1fc   :  { %v1209_v59 = vmul.f32 %v8304_v22, %v1106_v16 }
 0x1fe   :  { %v1325_v61 = vadd.f32 %v8315_v17, %v1209_v59 }
 0x200   :  { %v1797_v36 = vpop.f32.mrf.mxu2  ;;  %v1433_v47 = vmax.f32 %v1325_v61, 0.0  ;;  %v1896_v38 = vpop.f32.mrf.mxu3  ;;  %v9784_v61 = vld [vmem:[#allocation12_spill] sm:$0xff] }
 0x201   :  { %v1009_v55 = vpop.f32.mrf.mxu0  ;;  %v8385_v34 = vadd.f32 %v1896_v38, %v1797_v36  ;;  %v1108_v23 = vpop.f32.mrf.mxu1  ;;  %v9785_v36 = vld [vmem:[#allocation13_spill] sm:$0xff] }
 0x202   :  { %v1109_v52 = vadd.f32 %v1108_v23, %v1009_v55  ;;  %v8387_v54 = vpack.c.bf16 %v1433_v47, %v1430_v4  ;;  %v1283_v4 = vmul.f32 %v7988_v14, %v8263_v31  ;;  %v1402_v31 = vadd.f32 %v8009_v60, %v1286_v25 }
 0x203   :  { %1048 = vmatmul.bf16.gmra.mxu0 %v9782_v58 }
 0x204   :  { %1147 = vmatmul.bf16.gmra.mxu1 %v9783_v21  ;;  %v1212_v57 = vmul.f32 %v8304_v22, %v1109_v52  ;;  %v1399_v51 = vadd.f32 %v8009_v60, %v1283_v4 }
 0x205   :  { %1839 = vmatmul.bf16.gmra.mxu2 %v8194_v35  ;;  %1938 = vmatmul.bf16.gmra.mxu3 %v1555_v44 }
 0x206   :  { %v1328_v35 = vadd.f32 %v8315_v17, %v1212_v57  ;;  %v1507_v57 = vmax.f32 %v1399_v51, 0.0 }
 0x208   :  { %v1800_v56 = vpop.f32.mrf.mxu2  ;;  %v1899_v7 = vpop.f32.mrf.mxu3  ;;  %v1436_v13 = vmax.f32 %v1328_v35, 0.0  ;;  %v1510_v35 = vmax.f32 %v1402_v31, 0.0 }
 0x209   :  { %v1011_v37 = vpop.f32.mrf.mxu0  ;;  %v8397_v19 = vadd.f32 %v1899_v7, %v1800_v56  ;;  %v1110_v32 = vpop.f32.mrf.mxu1 }
 0x20a   :  { %v1111_v43 = vadd.f32 %v1110_v32, %v1011_v37 }
 0x20c   :  { %v1215_v44 = vmul.f32 %v8304_v22, %v1111_v43 }
 0x20e   :  { %v1331_v53 = vadd.f32 %v8315_v17, %v1215_v44 }
 0x210   :  { %v1802_v50 = vpop.f32.mrf.mxu2  ;;  %v1439_v5 = vmax.f32 %v1331_v53, 0.0  ;;  %v1901_v10 = vpop.f32.mrf.mxu3  ;;  %v1567_v53 = vpack.c.bf16 %v1510_v35, %v1507_v57 }
 0x211   :  { %v1014_v18 = vpop.f32.mrf.mxu0  ;;  %v8404_v16 = vadd.f32 %v1901_v10, %v1802_v50  ;;  %v1113_v26 = vpop.f32.mrf.mxu1  ;;  %v9787_v50 = vld [vmem:[#allocation15_spill] sm:$0xff] }
 0x212   :  { %v1114_v59 = vadd.f32 %v1113_v26, %v1014_v18  ;;  %v8406_v48 = vpack.c.bf16 %v1439_v5, %v1436_v13  ;;  %v1289_v13 = vmul.f32 %v7988_v14, %v8284_v63  ;;  %v1292_v63 = vmul.f32 %v7988_v14, %v8294_v15 }
 0x213   :  { %1053 = vmatmul.bf16.gmra.mxu0 %v9784_v61 }
 0x214   :  { %1152 = vmatmul.bf16.gmra.mxu1 %v9785_v36  ;;  %v1218_v38 = vmul.f32 %v8304_v22, %v1114_v59  ;;  %v6939_v59 = vld [vmem:[%s9727_s3 + $0xb8] sm:$0xff]  ;;  %v1405_v4 = vadd.f32 %v8009_v60, %v1289_v13 }
 0x215   :  { %1844 = vmatmul.bf16.gmra.mxu2 %v8213_v24  ;;  %1943 = vmatmul.bf16.gmra.mxu3 %v1558_v11 }
 0x216   :  { %v1334_v24 = vadd.f32 %v8315_v17, %v1218_v38  ;;  %4622 = vmatpush.bf16.msra.mxu3 %v6939_v59  ;;  %v1513_v25 = vmax.f32 %v1405_v4, 0.0  ;;  %v9790_v59 = vld [vmem:[#allocation18_spill] sm:$0xff] }
 0x218   :  { %v1805_v47 = vpop.f32.mrf.mxu2  ;;  %v1904_v55 = vpop.f32.mrf.mxu3  ;;  %v1442_v37 = vmax.f32 %v1334_v24, 0.0 }
 0x219   :  { %v1016_v23 = vpop.f32.mrf.mxu0  ;;  %v8418_v52 = vadd.f32 %v1904_v55, %v1805_v47  ;;  %v1115_v58 = vpop.f32.mrf.mxu1  ;;  %v1408_v55 = vadd.f32 %v8009_v60, %v1292_v63  ;;  %v9791_v63 = vld [vmem:[#allocation19_spill] sm:$0xff] }
 0x21a   :  { %v1116_v21 = vadd.f32 %v1115_v58, %v1016_v23 }
 0x21c   :  { %v1221_v11 = vmul.f32 %v8304_v22, %v1116_v21 }
 0x21e   :  { %v1337_v56 = vadd.f32 %v8315_v17, %v1221_v11  ;;  %v1516_v11 = vmax.f32 %v1408_v55, 0.0 }
 0x220   :  { %v1807_v7 = vpop.f32.mrf.mxu2  ;;  %v1445_v33 = vmax.f32 %v1337_v56, 0.0  ;;  %v1906_v32 = vpop.f32.mrf.mxu3  ;;  %v9788_v56 = vld [vmem:[#allocation16_spill] sm:$0xff]  ;;  %v1570_v57 = vpack.c.bf16 %v1516_v11, %v1513_v25  ;;  %v6938_v25 = vld [vmem:[%s9727_s3 + $0xb0] sm:$0xff] }
 0x221   :  { %v1019_v12 = vpop.f32.mrf.mxu0  ;;  %v8425_v43 = vadd.f32 %v1906_v32, %v1807_v7  ;;  %v1118_v41 = vpop.f32.mrf.mxu1  ;;  %4623 = vmatpush.bf16.msra.mxu3 %v6938_v25 }
 0x222   :  { %v8427_v44 = vpack.c.bf16 %v1445_v33, %v1442_v37  ;;  %v1119_v45 = vadd.f32 %v1118_v41, %v1019_v12  ;;  %v9789_v37 = vld [vmem:[#allocation17_spill] sm:$0xff] }
 0x223   :  { %1058 = vmatmul.bf16.gmra.mxu0 %v9786_v39 }
 0x224   :  { %1157 = vmatmul.bf16.gmra.mxu1 %v9787_v50  ;;  %v1224_v10 = vmul.f32 %v8304_v22, %v1119_v45 }
 0x225   :  { %1849 = vmatmul.bf16.gmra.mxu2 %v8232_v28  ;;  %1948 = vmatmul.bf16.gmra.mxu3 %v1561_v20  ;;  %v6923_v28 = vld [vmem:[%s9727_s3 + $0x38] sm:$0xff] }
 0x226   :  { %4596 = vmatpush.bf16.msra.mxu1 %v6923_v28  ;;  %v1340_v47 = vadd.f32 %v8315_v17, %v1224_v10 }
 0x228   :  { %v1810_v5 = vpop.f32.mrf.mxu2  ;;  %v1909_v18 = vpop.f32.mrf.mxu3  ;;  %v1448_v14 = vmax.f32 %v1340_v47, 0.0 }
 0x229   :  { %v1021_v26 = vpop.f32.mrf.mxu0  ;;  %v8446_v20 = vadd.f32 %v1909_v18, %v1810_v5  ;;  %v1120_v61 = vpop.f32.mrf.mxu1 }
 0x22a   :  { %v1121_v36 = vadd.f32 %v1120_v61, %v1021_v26 }
 0x22c   :  { %v1227_v38 = vmul.f32 %v8304_v22, %v1121_v36 }
 0x22e   :  { %v1343_v23 = vadd.f32 %v8315_v17, %v1227_v38  ;;  %v6930_v38 = vld [vmem:[%s9727_s3 + $0x70] sm:$0xff] }
 0x22f   :  { %4610 = vmatpush.bf16.msra.mxu2 %v6930_v38 }
 0x230   :  { %v8453_v58 = vpop.f32.mrf.mxu2  ;;  %v1451_v15 = vmax.f32 %v1343_v23, 0.0  ;;  %v8455_v21 = vpop.f32.mrf.mxu3 }
 0x231   :  { %v1024_v51 = vpop.f32.mrf.mxu0  ;;  %v1123_v24 = vpop.f32.mrf.mxu1 }
 0x232   :  { %v8457_v31 = vpack.c.bf16 %v1451_v15, %v1448_v14  ;;  %v1124_v7 = vadd.f32 %v1123_v24, %v1024_v51 }
 0x233   :  { %1063 = vmatmul.bf16.gmra.mxu0 %v9788_v56 }
 0x234   :  { %1162 = vmatmul.bf16.gmra.mxu1 %v9789_v37  ;;  %v1230_v33 = vmul.f32 %v8304_v22, %v1124_v7  ;;  %v6922_v37 = vld [vmem:[%s9727_s3 + $0x30] sm:$0xff] }
 0x235   :  { %1854 = vmatmul.bf16.gmra.mxu2 %v8251_v0  ;;  %1953 = vmatmul.bf16.gmra.mxu3 %v8409_v27 }
 0x236   :  { %v1346_v45 = vadd.f32 %v8315_v17, %v1230_v33  ;;  %4597 = vmatpush.bf16.msra.mxu1 %v6922_v37 }
 0x238   :  { %v1815_v60 = vpop.f32.mrf.mxu2  ;;  %v1914_v32 = vpop.f32.mrf.mxu3  ;;  %v1454_v0 = vmax.f32 %v1346_v45, 0.0 }
 0x239   :  { %v1026_v12 = vpop.f32.mrf.mxu0  ;;  %v8464_v41 = vadd.f32 %v1914_v32, %v1815_v60  ;;  %v1125_v35 = vpop.f32.mrf.mxu1  ;;  %v9792_v32 = vld [vmem:[#allocation20_spill] sm:$0xff] }
 0x23a   :  { %v1126_v39 = vadd.f32 %v1125_v35, %v1026_v12  ;;  %v9793_v35 = vld [vmem:[#allocation21_spill] sm:$0xff] }
 0x23c   :  { %v1233_v50 = vmul.f32 %v8304_v22, %v1126_v39 }
 0x23e   :  { %v1349_v13 = vadd.f32 %v8315_v17, %v1233_v50 }
 0x240   :  { %v8469_v5 = vpop.f32.mrf.mxu2  ;;  %v1457_v10 = vmax.f32 %v1349_v13, 0.0  ;;  %v8471_v27 = vpop.f32.mrf.mxu3 }
 0x241   :  { %v1029_v18 = vpop.f32.mrf.mxu0  ;;  %v1128_v26 = vpop.f32.mrf.mxu1 }
 0x242   :  { %v8473_v30 = vpack.c.bf16 %v1457_v10, %v1454_v0  ;;  %v1129_v28 = vadd.f32 %v1128_v26, %v1029_v18 }
 0x243   :  { %1068 = vmatmul.bf16.gmra.mxu0 %v9790_v59 }
 0x244   :  { %1167 = vmatmul.bf16.gmra.mxu1 %v9791_v63  ;;  %v1236_v36 = vmul.f32 %v8304_v22, %v1129_v28 }
 0x245   :  { %1859 = vmatmul.bf16.gmra.mxu2 %v8272_v40  ;;  %1958 = vmatmul.bf16.gmra.mxu3 %v1567_v53 }
 0x246   :  { %v1352_v40 = vadd.f32 %v8315_v17, %v1236_v36 }
 0x248   :  { %v1820_v61 = vpop.f32.mrf.mxu2  ;;  %v1919_v4 = vpop.f32.mrf.mxu3  ;;  %v1460_v24 = vmax.f32 %v1352_v40, 0.0 }
 0x249   :  { %v1031_v47 = vpop.f32.mrf.mxu0  ;;  %v8482_v55 = vadd.f32 %v1919_v4, %v1820_v61  ;;  %v1130_v23 = vpop.f32.mrf.mxu1 }
 0x24a   :  { %v1131_v14 = vadd.f32 %v1130_v23, %v1031_v47 }
 0x24c   :  { %v1239_v53 = vmul.f32 %v8304_v22, %v1131_v14 }
 0x24e   :  { %v1355_v15 = vadd.f32 %v8315_v17, %v1239_v53 }
 0x250   :  { %v8490_v51 = vpop.f32.mrf.mxu2  ;;  %v1463_v11 = vmax.f32 %v1355_v15, 0.0  ;;  %v8492_v56 = vpop.f32.mrf.mxu3 }
 0x251   :  { %v1034_v7 = vpop.f32.mrf.mxu0  ;;  %v1133_v60 = vpop.f32.mrf.mxu1 }
 0x252   :  { %v8497_v33 = vpack.c.bf16 %v1463_v11, %v1460_v24  ;;  %v1134_v12 = vadd.f32 %v1133_v60, %v1034_v7 }
 0x253   :  { %1073 = vmatmul.bf16.gmra.mxu0 %v9792_v32 }
 0x254   :  { %1172 = vmatmul.bf16.gmra.mxu1 %v9793_v35  ;;  %v1242_v45 = vmul.f32 %v8304_v22, %v1134_v12 }
 0x255   :  { %1864 = vmatmul.bf16.gmra.mxu2 %v8296_v46  ;;  %1963 = vmatmul.bf16.gmra.mxu3 %v1570_v57 }
 0x256   :  { %v1358_v26 = vadd.f32 %v8315_v17, %v1242_v45  ;;  %v6937_v45 = vld [vmem:[%s9727_s3 + $0xa8] sm:$0xff] }
 0x257   :  { %4624 = vmatpush.bf16.msra.mxu3 %v6937_v45 }
 0x258   :  { %v1825_v39 = vpop.f32.mrf.mxu2  ;;  %v1924_v50 = vpop.f32.mrf.mxu3  ;;  %v1466_v61 = vmax.f32 %v1358_v26, 0.0 }
 0x259   :  { %v1036_v13 = vpop.f32.mrf.mxu0  ;;  %v8503_v0 = vadd.f32 %v1924_v50, %v1825_v39  ;;  %v1135_v10 = vpop.f32.mrf.mxu1  ;;  %v6929_v39 = vld [vmem:[%s9727_s3 + $0x68] sm:$0xff] }
 0x25a   :  { %v1136_v18 = vadd.f32 %v1135_v10, %v1036_v13  ;;  %v6921_v50 = vld [vmem:[%s9727_s3 + $0x28] sm:$0xff]  ;;  %4611 = vmatpush.bf16.msra.mxu2 %v6929_v39 }
 0x25b   :  { %4598 = vmatpush.bf16.msra.mxu1 %v6921_v50 }
 0x25c   :  { %v1245_v59 = vmul.f32 %v8304_v22, %v1136_v18 }
 0x25e   :  { %v1361_v28 = vadd.f32 %v8315_v17, %v1245_v59 }
 0x260   :  { %v8508_v63 = vpop.f32.mrf.mxu2  ;;  %v1469_v46 = vmax.f32 %v1361_v28, 0.0  ;;  %v8510_v57 = vpop.f32.mrf.mxu3 }
 0x261   :  { %v1039_v36 = vpop.f32.mrf.mxu0  ;;  %v1138_v4 = vpop.f32.mrf.mxu1 }
 0x262   :  { %v8512_v47 = vpack.c.bf16 %v1469_v46, %v1466_v61  ;;  %v1139_v38 = vadd.f32 %v1138_v4, %v1039_v36 }
 0x263   :  { %5612 = vmatmul.msk.bf16.vlgmr.msra.gmra.mxu0 %vm1716_vm0, %v8328_v62 }
 0x264   :  { %v1248_v25 = vmul.f32 %v8304_v22, %v1139_v38 }
 0x266   :  { %v1364_v11 = vadd.f32 %v8315_v17, %v1248_v25 }
 0x268   :  { %v1830_v23 = vpop.f32.mrf.mxu2  ;;  %v1929_v14 = vpop.f32.mrf.mxu3  ;;  %v1472_v32 = vmax.f32 %v1364_v11, 0.0 }
 0x269   :  { %v1041_v40 = vpop.f32.mrf.mxu0  ;;  %v8517_v53 = vadd.f32 %v1929_v14, %v1830_v23  ;;  %v1140_v15 = vpop.f32.mrf.mxu1 }
 0x26a   :  { %v1141_v24 = vadd.f32 %v1140_v15, %v1041_v40 }
 0x26c   :  { %v1251_v7 = vmul.f32 %v8304_v22, %v1141_v24 }
 0x26e   :  { %v1367_v37 = vadd.f32 %v8315_v17, %v1251_v7 }
 0x270   :  { %v8522_v60 = vpop.f32.mrf.mxu2  ;;  %v1475_v62 = vmax.f32 %v1367_v37, 0.0  ;;  %v8524_v12 = vpop.f32.mrf.mxu3 }
 0x271   :  { %v1044_v35 = vpop.f32.mrf.mxu0  ;;  %v1143_v13 = vpop.f32.mrf.mxu1 }
 0x272   :  { %v8535_v10 = vpack.c.bf16 %v1475_v62, %v1472_v32  ;;  %v1144_v18 = vadd.f32 %v1143_v13, %v1044_v35 }
 0x273   :  { %5613 = vmatmul.msk.bf16.gmra.mxu0 %vm1716_vm0, %v8348_v6 }
 0x274   :  { %v1254_v59 = vmul.f32 %v8304_v22, %v1144_v18 }
 0x276   :  { %v1370_v38 = vadd.f32 %v8315_v17, %v1254_v59 }
 0x278   :  { %v1835_v26 = vpop.f32.mrf.mxu2  ;;  %v1934_v28 = vpop.f32.mrf.mxu3  ;;  %v1478_v6 = vmax.f32 %v1370_v38, 0.0  ;;  %v6928_v38 = vld [vmem:[%s9727_s3 + $0x60] sm:$0xff] }
 0x279   :  { %v1046_v61 = vpop.f32.mrf.mxu0  ;;  %v8540_v46 = vadd.f32 %v1934_v28, %v1835_v26  ;;  %v1145_v36 = vpop.f32.mrf.mxu1  ;;  %4612 = vmatpush.bf16.msra.mxu2 %v6928_v38 }
 0x27a   :  { %v1146_v4 = vadd.f32 %v1145_v36, %v1046_v61 }
 0x27c   :  { %v1257_v23 = vmul.f32 %v8304_v22, %v1146_v4 }
 0x27e   :  { %v1373_v25 = vadd.f32 %v8315_v17, %v1257_v23 }
 0x280   :  { %v8545_v14 = vpop.f32.mrf.mxu2  ;;  %v1481_v40 = vmax.f32 %v1373_v25, 0.0  ;;  %v8547_v15 = vpop.f32.mrf.mxu3  ;;  %v6936_v25 = vld [vmem:[%s9727_s3 + $0xa0] sm:$0xff] }
 0x281   :  { %v1049_v24 = vpop.f32.mrf.mxu0  ;;  %v1148_v11 = vpop.f32.mrf.mxu1  ;;  %4625 = vmatpush.bf16.msra.mxu3 %v6936_v25 }
 0x282   :  { %v8549_v7 = vpack.c.bf16 %v1481_v40, %v1478_v6  ;;  %v1149_v37 = vadd.f32 %v1148_v11, %v1049_v24 }
 0x283   :  { %5614 = vmatmul.msk.bf16.gmra.mxu0 %vm1716_vm0, %v8368_v49 }
 0x284   :  { %v1260_v62 = vmul.f32 %v8304_v22, %v1149_v37 }
 0x286   :  { %v1376_v18 = vadd.f32 %v8315_v17, %v1260_v62  ;;  %v6920_v62 = vld [vmem:[%s9727_s3 + $0x20] sm:$0xff] }
 0x287   :  { %4599 = vmatpush.bf16.msra.mxu1 %v6920_v62 }
 0x288   :  { %v1840_v32 = vpop.f32.mrf.mxu2  ;;  %v1939_v35 = vpop.f32.mrf.mxu3  ;;  %v1484_v61 = vmax.f32 %v1376_v18, 0.0 }
 0x289   :  { %v1051_v39 = vpop.f32.mrf.mxu0  ;;  %v8554_v45 = vadd.f32 %v1939_v35, %v1840_v32  ;;  %v1150_v50 = vpop.f32.mrf.mxu1 }
 0x28a   :  { %v1151_v13 = vadd.f32 %v1150_v50, %v1051_v39 }
 0x28c   :  { %v1263_v26 = vmul.f32 %v8304_v22, %v1151_v13 }
 0x28e   :  { %v1379_v59 = vadd.f32 %v8315_v17, %v1263_v26 }
 0x290   :  { %v8559_v28 = vpop.f32.mrf.mxu2  ;;  %v1487_v49 = vmax.f32 %v1379_v59, 0.0  ;;  %v8561_v36 = vpop.f32.mrf.mxu3 }
 0x291   :  { %v1054_v4 = vpop.f32.mrf.mxu0  ;;  %v1153_v23 = vpop.f32.mrf.mxu1 }
 0x292   :  { %v8569_v6 = vpack.c.bf16 %v1487_v49, %v1484_v61  ;;  %v1154_v40 = vadd.f32 %v1153_v23, %v1054_v4  ;;  %v6919_v23 = vld [vmem:[%s9727_s3 + $0x18] sm:$0xff] }
 0x293   :  { %5615 = vmatmul.msk.bf16.gmra.mxu0 %vm1716_vm0, %v8387_v54  ;;  %4600 = vmatpush.bf16.msra.mxu1 %v6919_v23  ;;  %v6947_v23 = vld [vmem:[%s9727_s3 + $0xf8] sm:$0xff] }
 0x294   :  { %v1266_v11 = vmul.f32 %v8304_v22, %v1154_v40 }
 0x296   :  { %v1382_v13 = vadd.f32 %v8315_v17, %v1266_v11 }
 0x298   :  { %v1845_v24 = vpop.f32.mrf.mxu2  ;;  %v1944_v37 = vpop.f32.mrf.mxu3  ;;  %v1490_v59 = vmax.f32 %v1382_v13, 0.0  ;;  %v6917_v13 = vld [vmem:[%s9727_s3 + $0x8] sm:$0xff] }
 0x299   :  { %v1056_v32 = vpop.f32.mrf.mxu0  ;;  %v8577_v35 = vadd.f32 %v1944_v37, %v1845_v24  ;;  %v1155_v39 = vpop.f32.mrf.mxu1  ;;  %v6918_v24 = vld [vmem:[%s9727_s3 + $0x10] sm:$0xff] }
 0x29a   :  { %v1156_v50 = vadd.f32 %v1155_v39, %v1056_v32  ;;  %4601 = vmatpush.bf16.msra.mxu1 %v6918_v24 }
 0x29c   :  { %v1269_v54 = vmul.f32 %v8304_v22, %v1156_v50 }
 0x29e   :  { %v1385_v18 = vadd.f32 %v8315_v17, %v1269_v54  ;;  %4602 = vmatpush.bf16.msra.mxu1 %v6917_v13  ;;  %v6925_v13 = vld [vmem:[%s9727_s3 + $0x48] sm:$0xff] }
 0x2a0   :  { %v8582_v26 = vpop.f32.mrf.mxu2  ;;  %v1493_v61 = vmax.f32 %v1385_v18, 0.0  ;;  %v8584_v49 = vpop.f32.mrf.mxu3 }
 0x2a1   :  { %v1059_v4 = vpop.f32.mrf.mxu0  ;;  %v1158_v38 = vpop.f32.mrf.mxu1 }
 0x2a2   :  { %v8589_v25 = vpack.c.bf16 %v1493_v61, %v1490_v59  ;;  %v1159_v40 = vadd.f32 %v1158_v38, %v1059_v4  ;;  %v6916_v61 = vld [vmem:[%s9727_s3] sm:$0xff]  ;;  %v6926_v4 = vld [vmem:[%s9727_s3 + $0x50] sm:$0xff] }
 0x2a3   :  { %5616 = vmatmul.msk.bf16.gmra.mxu0 %vm1716_vm0, %v8406_v48  ;;  %v6927_v48 = vld [vmem:[%s9727_s3 + $0x58] sm:$0xff]  ;;  %4603 = vmatpush.bf16.msra.mxu1 %v6916_v61  ;;  %v6924_v61 = vld [vmem:[%s9727_s3 + $0x40] sm:$0xff] }
 0x2a4   :  { %v1272_v37 = vmul.f32 %v8304_v22, %v1159_v40  ;;  %4613 = vmatpush.bf16.msra.mxu2 %v6927_v48  ;;  %v6935_v48 = vld [vmem:[%s9727_s3 + $0x98] sm:$0xff] }
 0x2a5   :  { %4626 = vmatpush.bf16.msra.mxu3 %v6935_v48 }
 0x2a6   :  { %v1388_v18 = vadd.f32 %v8315_v17, %v1272_v37 }
 0x2a7   :  { %4635 = vmatpush.bf16.msrb.mxu1 %v6947_v23 }
 0x2a8   :  { %v1850_v11 = vpop.f32.mrf.mxu2  ;;  %v1949_v32 = vpop.f32.mrf.mxu3  ;;  %4614 = vmatpush.bf16.msra.mxu2 %v6926_v4  ;;  %v1496_v24 = vmax.f32 %v1388_v18, 0.0  ;;  %v6934_v4 = vld [vmem:[%s9727_s3 + $0x90] sm:$0xff] }
 0x2a9   :  { %v1061_v62 = vpop.f32.mrf.mxu0  ;;  %v8597_v39 = vadd.f32 %v1949_v32, %v1850_v11  ;;  %v1160_v50 = vpop.f32.mrf.mxu1  ;;  %4627 = vmatpush.bf16.msra.mxu3 %v6934_v4 }
 0x2aa   :  { %v1161_v54 = vadd.f32 %v1160_v50, %v1061_v62  ;;  %v7139_v62 = vld [vmem:[%s9727_s3 + $0x6f8] sm:$0xff] }
 0x2ab   :  { %4947 = vmatpush.bf16.msrb.mxu0 %v7139_v62 }
 0x2ac   :  { %v1275_v59 = vmul.f32 %v8304_v22, %v1161_v54  ;;  %v6946_v54 = vld [vmem:[%s9727_s3 + $0xf0] sm:$0xff]  ;;  %4615 = vmatpush.bf16.msra.mxu2 %v6925_v13  ;;  %v6933_v13 = vld [vmem:[%s9727_s3 + $0x88] sm:$0xff] }
 0x2ad   :  { %4636 = vmatpush.bf16.msrb.mxu1 %v6946_v54  ;;  %v6944_v54 = vld [vmem:[%s9727_s3 + $0xe0] sm:$0xff]  ;;  %4628 = vmatpush.bf16.msra.mxu3 %v6933_v13 }
 0x2ae   :  { %v1391_v38 = vadd.f32 %v8315_v17, %v1275_v59 }
 0x2b0   :  { %v8617_v40 = vpop.f32.mrf.mxu2  ;;  %v1499_v11 = vmax.f32 %v1391_v38, 0.0  ;;  %v8619_v37 = vpop.f32.mrf.mxu3  ;;  %v6945_v38 = vld [vmem:[%s9727_s3 + $0xe8] sm:$0xff]  ;;  %4616 = vmatpush.bf16.msra.mxu2 %v6924_v61 }
 0x2b1   :  { %v1064_v32 = vpop.f32.mrf.mxu0  ;;  %v1163_v50 = vpop.f32.mrf.mxu1  ;;  %4637 = vmatpush.bf16.msrb.mxu1 %v6945_v38  ;;  %v6932_v38 = vld [vmem:[%s9727_s3 + $0x80] sm:$0xff] }
 0x2b2   :  { %v8633_v18 = vpack.c.bf16 %v1499_v11, %v1496_v24  ;;  %v1164_v59 = vadd.f32 %v1163_v50, %v1064_v32  ;;  %4629 = vmatpush.bf16.msra.mxu3 %v6932_v38 }
 0x2b3   :  { %5617 = vmatmul.msk.bf16.gmra.mxu0 %vm1716_vm0, %v8427_v44  ;;  %v6955_v44 = vld [vmem:[%s9727_s3 + $0x138] sm:$0xff] }
 0x2b4   :  { %v1278_v24 = vmul.f32 %v8304_v22, %v1164_v59  ;;  %4648 = vmatpush.bf16.msrb.mxu2 %v6955_v44  ;;  %v6954_v59 = vld [vmem:[%s9727_s3 + $0x130] sm:$0xff] }
 0x2b5   :  { %4638 = vmatpush.bf16.msrb.mxu1 %v6944_v54 }
 0x2b6   :  { %v1394_v61 = vadd.f32 %v8315_v17, %v1278_v24  ;;  %v6963_v24 = vld [vmem:[%s9727_s3 + $0x178] sm:$0xff] }
 0x2b7   :  { %4661 = vmatpush.bf16.msrb.mxu3 %v6963_v24  ;;  %v6961_v24 = vld [vmem:[%s9727_s3 + $0x168] sm:$0xff] }
 0x2b8   :  { %v1855_v23 = vpop.f32.mrf.mxu2  ;;  %v1954_v11 = vpop.f32.mrf.mxu3  ;;  %4649 = vmatpush.bf16.msrb.mxu2 %v6954_v59 }
 0x2b9   :  { %v1066_v32 = vpop.f32.mrf.mxu0  ;;  %v8650_v62 = vadd.f32 %v1954_v11, %v1855_v23  ;;  %v1165_v50 = vpop.f32.mrf.mxu1  ;;  %v6943_v23 = vld [vmem:[%s9727_s3 + $0xd8] sm:$0xff]  ;;  %v6953_v11 = vld [vmem:[%s9727_s3 + $0x128] sm:$0xff] }
 0x2ba   :  { %v1166_v48 = vadd.f32 %v1165_v50, %v1066_v32  ;;  %v1502_v50 = vmax.f32 %v1394_v61, 0.0  ;;  %4639 = vmatpush.bf16.msrb.mxu1 %v6943_v23  ;;  %v6962_v61 = vld [vmem:[%s9727_s3 + $0x170] sm:$0xff]  ;;  %v6941_v23 = vld [vmem:[%s9727_s3 + $0xc8] sm:$0xff] }
 0x2bb   :  { %9794 = vst [vmem:[#allocation3_spill] sm:$0xff] %v8650_v62  ;;  %v6952_v62 = vld [vmem:[%s9727_s3 + $0x120] sm:$0xff]  ;;  %4662 = vmatpush.bf16.msrb.mxu3 %v6962_v61 }
 0x2bc   :  { %v1281_v4 = vmul.f32 %v8304_v22, %v1166_v48  ;;  %4650 = vmatpush.bf16.msrb.mxu2 %v6953_v11  ;;  %v6951_v11 = vld [vmem:[%s9727_s3 + $0x118] sm:$0xff]  ;;  %v6940_v61 = vld [vmem:[%s9727_s3 + $0xc0] sm:$0xff] }
 0x2be   :  { %v1397_v44 = vadd.f32 %v8315_v17, %v1281_v4  ;;  %v6942_v4 = vld [vmem:[%s9727_s3 + $0xd0] sm:$0xff] }
 0x2bf   :  { %4640 = vmatpush.bf16.msrb.mxu1 %v6942_v4  ;;  %4663 = vmatpush.bf16.msrb.mxu3 %v6961_v24  ;;  %v6949_v24 = vld [vmem:[%s9727_s3 + $0x108] sm:$0xff] }
 0x2c0   :  { %v8676_v32 = vpop.f32.mrf.mxu2  ;;  %v1505_v13 = vmax.f32 %v1397_v44, 0.0  ;;  %v8678_v48 = vpop.f32.mrf.mxu3  ;;  %4651 = vmatpush.bf16.msrb.mxu2 %v6952_v62 }
 0x2c1   :  { %9795 = vst [vmem:[#allocation4_spill] sm:$0xff] %v8676_v32  ;;  %v1069_v54 = vpop.f32.mrf.mxu0  ;;  %v1168_v59 = vpop.f32.mrf.mxu1 }
 0x2c2   :  { %9796 = vst [vmem:[#allocation5_spill] sm:$0xff] %v8678_v48  ;;  %v8689_v44 = vpack.c.bf16 %v1505_v13, %v1502_v50  ;;  %v1169_v38 = vadd.f32 %v1168_v59, %v1069_v54  ;;  %v6950_v48 = vld [vmem:[%s9727_s3 + $0x110] sm:$0xff] }
 0x2c3   :  { %5618 = vmatmul.msk.bf16.gmra.mxu0 %vm1716_vm0, %v8457_v31  ;;  %4641 = vmatpush.bf16.msrb.mxu1 %v6941_v23 }
 0x2c4   :  { %v1284_v13 = vmul.f32 %v8304_v22, %v1169_v38  ;;  %4652 = vmatpush.bf16.msrb.mxu2 %v6951_v11  ;;  %v6960_v38 = vld [vmem:[%s9727_s3 + $0x160] sm:$0xff] }
 0x2c5   :  { %4664 = vmatpush.bf16.msrb.mxu3 %v6960_v38 }
 0x2c6   :  { %v1400_v23 = vadd.f32 %v8315_v17, %v1284_v13  ;;  %v6948_v13 = vld [vmem:[%s9727_s3 + $0x100] sm:$0xff] }
 0x2c7   :  { %4642 = vmatpush.bf16.msrb.mxu1 %v6940_v61 }
 0x2c8   :  { %v1860_v50 = vpop.f32.mrf.mxu2  ;;  %v1959_v31 = vpop.f32.mrf.mxu3  ;;  %4653 = vmatpush.bf16.msrb.mxu2 %v6950_v48  ;;  %v7138_v48 = vld [vmem:[%s9727_s3 + $0x6f0] sm:$0xff] }
 0x2c9   :  { %v1071_v54 = vpop.f32.mrf.mxu0  ;;  %v8703_v62 = vadd.f32 %v1959_v31, %v1860_v50  ;;  %v1170_v59 = vpop.f32.mrf.mxu1  ;;  %v6959_v31 = vld [vmem:[%s9727_s3 + $0x158] sm:$0xff]  ;;  %4948 = vmatpush.bf16.msrb.mxu0 %v7138_v48 }
 0x2ca   :  { %v1171_v4 = vadd.f32 %v1170_v59, %v1071_v54  ;;  %v1508_v54 = vmax.f32 %v1400_v23, 0.0  ;;  %4665 = vmatpush.bf16.msrb.mxu3 %v6959_v31  ;;  %v6957_v23 = vld [vmem:[%s9727_s3 + $0x148] sm:$0xff] }
 0x2cb   :  { %9797 = vst [vmem:[#allocation6_spill] sm:$0xff] %v8703_v62 }
 0x2cc   :  { %v1287_v50 = vmul.f32 %v8304_v22, %v1171_v4  ;;  %4654 = vmatpush.bf16.msrb.mxu2 %v6949_v24  ;;  %v6958_v4 = vld [vmem:[%s9727_s3 + $0x150] sm:$0xff] }
 0x2ce   :  { %v1403_v11 = vadd.f32 %v8315_v17, %v1287_v50  ;;  %4666 = vmatpush.bf16.msrb.mxu3 %v6958_v4 }
 0x2d0   :  { %v1511_v59 = vmax.f32 %v1403_v11, 0.0  ;;  %4655 = vmatpush.bf16.msrb.mxu2 %v6948_v13 }
 0x2d1   :  { %v1074_v62 = vpop.f32.mrf.mxu0  ;;  %v1173_v32 = vpop.f32.mrf.mxu1 }
 0x2d2   :  { %v8732_v61 = vpack.c.bf16 %v1511_v59, %v1508_v54  ;;  %v1174_v38 = vadd.f32 %v1173_v32, %v1074_v62  ;;  %4667 = vmatpush.bf16.msrb.mxu3 %v6957_v23  ;;  %v6956_v54 = vld [vmem:[%s9727_s3 + $0x140] sm:$0xff] }
 0x2d3   :  { %5619 = vmatmul.msk.bf16.gmra.mxu0 %vm1716_vm0, %v8473_v30  ;;  %v8749_v59 = vld [vmem:[%s9728_s8] ss:$0 sm:$0xff] }
 0x2d4   :  { %v1290_v50 = vmul.f32 %v8304_v22, %v1174_v38  ;;  %v8755_v23 = vld [vmem:[%s9729_s9] ss:$0 sm:$0xff] }
 0x2d6   :  { %v1406_v30 = vadd.f32 %v8315_v17, %v1290_v50  ;;  %4668 = vmatpush.bf16.msrb.mxu3 %v6956_v54 }
 0x2d8   :  { %v1514_v48 = vmax.f32 %v1406_v30, 0.0 }
 0x2d9   :  { %v1076_v11 = vpop.f32.mrf.mxu0  ;;  %v1175_v24 = vpop.f32.mrf.mxu1 }
 0x2da   :  { %v1176_v31 = vadd.f32 %v1175_v24, %v1076_v11 }
 0x2dc   :  { %v1293_v32 = vmul.f32 %v8304_v22, %v1176_v31 }
 0x2de   :  { %v1409_v62 = vadd.f32 %v8315_v17, %v1293_v32  ;;  %v6970_v32 = vld [vmem:[%s9727_s3 + $0x1b0] sm:$0xff] }
 0x2e0   :  { %v1517_v13 = vmax.f32 %v1409_v62, 0.0 }
 0x2e1   :  { %v1978_v4 = vpop.f32.mrf.mxu0 }
 0x2e2   :  { %v1979_v38 = vadd.f32 %v1978_v4, %v8319_v29  ;;  %v8757_v50 = vpack.c.bf16 %v1517_v13, %v1514_v48  ;;  %v6971_v29 = vld [vmem:[%s9727_s3 + $0x1b8] sm:$0xff]  ;;  %v6969_v13 = vld [vmem:[%s9727_s3 + $0x1a8] sm:$0xff] }
 0x2e3   :  { %5620 = vmatmul.msk.bf16.gmra.mxu0 %vm1716_vm0, %v8497_v33 }
 0x2e4   :  { %v2072_v22 = vmul.f32 %v8749_v59, %v1979_v38 }
 0x2e6   :  { %v2112_v17 = vadd.f32 %v8755_v23, %v2072_v22 }
 0x2e8   :  { %v2148_v11 = vmax.f32 %v2112_v17, 0.0  ;;  %v6968_v17 = vld [vmem:[%s9727_s3 + $0x1a0] sm:$0xff] }
 0x2e9   :  { %v1980_v24 = vpop.f32.mrf.mxu0 }
 0x2ea   :  { %v2256_v31 = vpack.c.bf16 %v2148_v11, %v2148_v11  ;;  %v1981_v54 = vadd.f32 %v1980_v24, %v8326_v8  ;;  %v6979_v8 = vld [vmem:[%s9727_s3 + $0x1f8] sm:$0xff]  ;;  %v6978_v11 = vld [vmem:[%s9727_s3 + $0x1f0] sm:$0xff] }
 0x2ec   :  { %v2073_v30 = vmul.f32 %v8749_v59, %v1981_v54  ;;  %4604 = vmatmul.bf16.vlgmr.msra.gmra.mxu1 %v2256_v31  ;;  %v6977_v31 = vld [vmem:[%s9727_s3 + $0x1e8] sm:$0xff] }
 0x2ed   :  { %4674 = vmatpush.bf16.msra.mxu1 %v6971_v29 }
 0x2ee   :  { %v2113_v33 = vadd.f32 %v8755_v23, %v2073_v30 }
 0x2f0   :  { %v2149_v62 = vmax.f32 %v2113_v33, 0.0  ;;  %v7137_v33 = vld [vmem:[%s9727_s3 + $0x6e8] sm:$0xff] }
 0x2f1   :  { %4675 = vmatpush.bf16.msra.mxu1 %v6970_v32  ;;  %v1983_v48 = vpop.f32.mrf.mxu0  ;;  %v6987_v32 = vld [vmem:[%s9727_s3 + $0x238] sm:$0xff]  ;;  %4949 = vmatpush.bf16.msrb.mxu0 %v7137_v33  ;;  %v6973_v33 = vld [vmem:[%s9727_s3 + $0x1c8] sm:$0xff] }
 0x2f2   :  { %v2257_v4 = vpack.c.bf16 %v2149_v62, %v2149_v62  ;;  %v1984_v38 = vadd.f32 %v1983_v48, %v8339_v1  ;;  %v6966_v48 = vld [vmem:[%s9727_s3 + $0x190] sm:$0xff] }
 0x2f3   :  { %5621 = vmatmul.msk.bf16.gmra.mxu0 %vm1716_vm0, %v8512_v47  ;;  %v6967_v47 = vld [vmem:[%s9727_s3 + $0x198] sm:$0xff] }
 0x2f4   :  { %v2074_v22 = vmul.f32 %v8749_v59, %v1984_v38  ;;  %4617 = vmatmul.bf16.vlgmr.msra.gmra.mxu2 %v2257_v4 }
 0x2f5   :  { %4676 = vmatpush.bf16.msra.mxu1 %v6969_v13  ;;  %4687 = vmatpush.bf16.msra.mxu2 %v6979_v8  ;;  %v6986_v8 = vld [vmem:[%s9727_s3 + $0x230] sm:$0xff] }
 0x2f6   :  { %v2114_v24 = vadd.f32 %v8755_v23, %v2074_v22  ;;  %v6965_v22 = vld [vmem:[%s9727_s3 + $0x188] sm:$0xff] }
 0x2f8   :  { %v2150_v29 = vmax.f32 %v2114_v24, 0.0 }
 0x2f9   :  { %4677 = vmatpush.bf16.msra.mxu1 %v6968_v17  ;;  %4688 = vmatpush.bf16.msra.mxu2 %v6978_v11  ;;  %v1985_v1 = vpop.f32.mrf.mxu0  ;;  %v6975_v17 = vld [vmem:[%s9727_s3 + $0x1d8] sm:$0xff] }
 0x2fa   :  { %v2258_v54 = vpack.c.bf16 %v2150_v29, %v2150_v29  ;;  %v1986_v30 = vadd.f32 %v1985_v1, %v8346_v42  ;;  %v6976_v42 = vld [vmem:[%s9727_s3 + $0x1e0] sm:$0xff]  ;;  %v6985_v29 = vld [vmem:[%s9727_s3 + $0x228] sm:$0xff] }
 0x2fc   :  { %v2075_v62 = vmul.f32 %v8749_v59, %v1986_v30  ;;  %4630 = vmatmul.bf16.vlgmr.msra.gmra.mxu3 %v2258_v54  ;;  %v6984_v54 = vld [vmem:[%s9727_s3 + $0x220] sm:$0xff] }
 0x2fd   :  { %4678 = vmatpush.bf16.msra.mxu1 %v6967_v47  ;;  %4689 = vmatpush.bf16.msra.mxu2 %v6977_v31  ;;  %v6964_v47 = vld [vmem:[%s9727_s3 + $0x180] sm:$0xff] }
 0x2fe   :  { %v2115_v13 = vadd.f32 %v8755_v23, %v2075_v62  ;;  %4700 = vmatpush.bf16.msra.mxu3 %v6987_v32 }
 0x300   :  { %v2151_v4 = vmax.f32 %v2115_v13, 0.0  ;;  %v6994_v13 = vld [vmem:[%s9727_s3 + $0x270] sm:$0xff] }
 0x301   :  { %4679 = vmatpush.bf16.msra.mxu1 %v6966_v48  ;;  %4690 = vmatpush.bf16.msra.mxu2 %v6976_v42  ;;  %v1988_v38 = vpop.f32.mrf.mxu0  ;;  %v6983_v42 = vld [vmem:[%s9727_s3 + $0x218] sm:$0xff] }
 0x302   :  { %v2259_v11 = vpack.c.bf16 %v2151_v4, %v2151_v4  ;;  %4701 = vmatpush.bf16.msra.mxu3 %v6986_v8  ;;  %v1989_v24 = vadd.f32 %v1988_v38, %v8359_v9  ;;  %v6974_v9 = vld [vmem:[%s9727_s3 + $0x1d0] sm:$0xff]  ;;  %v6972_v4 = vld [vmem:[%s9727_s3 + $0x1c0] sm:$0xff] }
 0x303   :  { %5622 = vmatmul.msk.bf16.gmra.mxu0 %vm1716_vm0, %v8535_v10  ;;  %v6995_v10 = vld [vmem:[%s9727_s3 + $0x278] sm:$0xff] }
 0x304   :  { %v2076_v1 = vmul.f32 %v8749_v59, %v1989_v24  ;;  %4643 = vmatmul.bf16.vlgmr.msrb.gmra.mxu1 %v2259_v11 }
 0x305   :  { %4680 = vmatpush.bf16.msra.mxu1 %v6965_v22  ;;  %4691 = vmatpush.bf16.msra.mxu2 %v6975_v17  ;;  %v6993_v22 = vld [vmem:[%s9727_s3 + $0x268] sm:$0xff]  ;;  %v7003_v17 = vld [vmem:[%s9727_s3 + $0x2b8] sm:$0xff] }
 0x306   :  { %v2116_v31 = vadd.f32 %v8755_v23, %v2076_v1  ;;  %4702 = vmatpush.bf16.msra.mxu3 %v6985_v29 }
 0x308   :  { %v2152_v30 = vmax.f32 %v2116_v31, 0.0  ;;  %v7002_v31 = vld [vmem:[%s9727_s3 + $0x2b0] sm:$0xff] }
 0x309   :  { %4681 = vmatpush.bf16.msra.mxu1 %v6964_v47  ;;  %4692 = vmatpush.bf16.msra.mxu2 %v6974_v9  ;;  %v1990_v32 = vpop.f32.mrf.mxu0  ;;  %v6981_v47 = vld [vmem:[%s9727_s3 + $0x208] sm:$0xff]  ;;  %v6992_v9 = vld [vmem:[%s9727_s3 + $0x260] sm:$0xff] }
 0x30a   :  { %v2260_v62 = vpack.c.bf16 %v2152_v30, %v2152_v30  ;;  %4703 = vmatpush.bf16.msra.mxu3 %v6984_v54  ;;  %v1991_v48 = vadd.f32 %v1990_v32, %v8366_v2  ;;  %v6982_v2 = vld [vmem:[%s9727_s3 + $0x210] sm:$0xff]  ;;  %v6991_v30 = vld [vmem:[%s9727_s3 + $0x258] sm:$0xff]  ;;  %v7001_v32 = vld [vmem:[%s9727_s3 + $0x2a8] sm:$0xff] }
 0x30c   :  { %v2077_v8 = vmul.f32 %v8749_v59, %v1991_v48  ;;  %4656 = vmatmul.bf16.vlgmr.msrb.gmra.mxu2 %v2260_v62 }
 0x30d   :  { %4713 = vmatpush.bf16.msrb.mxu1 %v6995_v10  ;;  %4693 = vmatpush.bf16.msra.mxu2 %v6973_v33  ;;  %v6980_v10 = vld [vmem:[%s9727_s3 + $0x200] sm:$0xff] }
 0x30e   :  { %v2117_v38 = vadd.f32 %v8755_v23, %v2077_v8  ;;  %4704 = vmatpush.bf16.msra.mxu3 %v6983_v42  ;;  %v7136_v8 = vld [vmem:[%s9727_s3 + $0x6e0] sm:$0xff] }
 0x30f   :  { %4950 = vmatpush.bf16.msrb.mxu0 %v7136_v8 }
 0x310   :  { %v2153_v11 = vmax.f32 %v2117_v38, 0.0  ;;  %v7010_v38 = vld [vmem:[%s9727_s3 + $0x2f0] sm:$0xff] }
 0x311   :  { %4714 = vmatpush.bf16.msrb.mxu1 %v6994_v13  ;;  %4694 = vmatpush.bf16.msra.mxu2 %v6972_v4  ;;  %v1993_v24 = vpop.f32.mrf.mxu0  ;;  %v6990_v13 = vld [vmem:[%s9727_s3 + $0x250] sm:$0xff]  ;;  %v7000_v4 = vld [vmem:[%s9727_s3 + $0x2a0] sm:$0xff] }
 0x312   :  { %v2261_v29 = vpack.c.bf16 %v2153_v11, %v2153_v11  ;;  %4705 = vmatpush.bf16.msra.mxu3 %v6982_v2  ;;  %v1994_v1 = vadd.f32 %v1993_v24, %v8378_v3  ;;  %v7009_v11 = vld [vmem:[%s9727_s3 + $0x2e8] sm:$0xff] }
 0x313   :  { %5623 = vmatmul.msk.bf16.gmra.mxu0 %vm1716_vm0, %v8549_v7  ;;  %v7011_v7 = vld [vmem:[%s9727_s3 + $0x2f8] sm:$0xff] }
 0x314   :  { %v2078_v54 = vmul.f32 %v8749_v59, %v1994_v1  ;;  %4669 = vmatmul.bf16.vlgmr.msrb.gmra.mxu3 %v2261_v29 }
 0x315   :  { %4715 = vmatpush.bf16.msrb.mxu1 %v6993_v22  ;;  %4726 = vmatpush.bf16.msrb.mxu2 %v7003_v17  ;;  %v6989_v22 = vld [vmem:[%s9727_s3 + $0x248] sm:$0xff]  ;;  %v6999_v17 = vld [vmem:[%s9727_s3 + $0x298] sm:$0xff] }
 0x316   :  { %v2118_v3 = vadd.f32 %v8755_v23, %v2078_v54  ;;  %4706 = vmatpush.bf16.msra.mxu3 %v6981_v47  ;;  %v7008_v54 = vld [vmem:[%s9727_s3 + $0x2e0] sm:$0xff] }
 0x318   :  { %v2154_v33 = vmax.f32 %v2118_v3, 0.0 }
 0x319   :  { %4716 = vmatpush.bf16.msrb.mxu1 %v6992_v9  ;;  %4727 = vmatpush.bf16.msrb.mxu2 %v7002_v31  ;;  %v1995_v62 = vpop.f32.mrf.mxu0  ;;  %v6988_v9 = vld [vmem:[%s9727_s3 + $0x240] sm:$0xff]  ;;  %v6998_v31 = vld [vmem:[%s9727_s3 + $0x290] sm:$0xff] }
 0x31a   :  { %v2262_v48 = vpack.c.bf16 %v2154_v33, %v2154_v33  ;;  %4707 = vmatpush.bf16.msra.mxu3 %v6980_v10  ;;  %v1996_v42 = vadd.f32 %v1995_v62, %v8385_v34 }
 0x31c   :  { %v2079_v34 = vmul.f32 %v8749_v59, %v1996_v42  ;;  %4682 = vmatmul.bf16.vlgmr.msra.gmra.mxu1 %v2262_v48  ;;  %v6996_v42 = vld [vmem:[%s9727_s3 + $0x280] sm:$0xff] }
 0x31d   :  { %4717 = vmatpush.bf16.msrb.mxu1 %v6991_v30  ;;  %4728 = vmatpush.bf16.msrb.mxu2 %v7001_v32  ;;  %v6997_v30 = vld [vmem:[%s9727_s3 + $0x288] sm:$0xff]  ;;  %v7007_v32 = vld [vmem:[%s9727_s3 + $0x2d8] sm:$0xff] }
 0x31e   :  { %4739 = vmatpush.bf16.msrb.mxu3 %v7011_v7  ;;  %v2119_v2 = vadd.f32 %v8755_v23, %v2079_v34  ;;  %v7005_v34 = vld [vmem:[%s9727_s3 + $0x2c8] sm:$0xff] }
 0x320   :  { %v2155_v24 = vmax.f32 %v2119_v2, 0.0 }
 0x321   :  { %4718 = vmatpush.bf16.msrb.mxu1 %v6990_v13  ;;  %4729 = vmatpush.bf16.msrb.mxu2 %v7000_v4  ;;  %v1998_v29 = vpop.f32.mrf.mxu0  ;;  %v7006_v13 = vld [vmem:[%s9727_s3 + $0x2d0] sm:$0xff]  ;;  %v7017_v4 = vld [vmem:[%s9727_s3 + $0x328] sm:$0xff] }
 0x322   :  { %4740 = vmatpush.bf16.msrb.mxu3 %v7010_v38  ;;  %v2263_v1 = vpack.c.bf16 %v2155_v24, %v2155_v24  ;;  %v1999_v47 = vadd.f32 %v1998_v29, %v8397_v19  ;;  %v7019_v19 = vld [vmem:[%s9727_s3 + $0x338] sm:$0xff] }
 0x323   :  { %5624 = vmatmul.msk.bf16.gmra.mxu0 %vm1716_vm0, %v8569_v6  ;;  %v7018_v6 = vld [vmem:[%s9727_s3 + $0x330] sm:$0xff] }
 0x324   :  { %v2080_v3 = vmul.f32 %v8749_v59, %v1999_v47  ;;  %4695 = vmatmul.bf16.vlgmr.msra.gmra.mxu2 %v2263_v1  ;;  %v7004_v1 = vld [vmem:[%s9727_s3 + $0x2c0] sm:$0xff] }
 0x325   :  { %4719 = vmatpush.bf16.msrb.mxu1 %v6989_v22  ;;  %4730 = vmatpush.bf16.msrb.mxu2 %v6999_v17  ;;  %v7016_v22 = vld [vmem:[%s9727_s3 + $0x320] sm:$0xff]  ;;  %v7026_v17 = vld [vmem:[%s9727_s3 + $0x370] sm:$0xff] }
 0x326   :  { %4741 = vmatpush.bf16.msrb.mxu3 %v7009_v11  ;;  %v2120_v10 = vadd.f32 %v8755_v23, %v2080_v3 }
 0x328   :  { %v2156_v7 = vmax.f32 %v2120_v10, 0.0  ;;  %v7024_v10 = vld [vmem:[%s9727_s3 + $0x360] sm:$0xff] }
 0x329   :  { %4720 = vmatpush.bf16.msrb.mxu1 %v6988_v9  ;;  %4731 = vmatpush.bf16.msrb.mxu2 %v6998_v31  ;;  %v2000_v33 = vpop.f32.mrf.mxu0  ;;  %v7015_v9 = vld [vmem:[%s9727_s3 + $0x318] sm:$0xff]  ;;  %v7025_v31 = vld [vmem:[%s9727_s3 + $0x368] sm:$0xff] }
 0x32a   :  { %4742 = vmatpush.bf16.msrb.mxu3 %v7008_v54  ;;  %v2264_v62 = vpack.c.bf16 %v2156_v7, %v2156_v7  ;;  %v2001_v48 = vadd.f32 %v2000_v33, %v8404_v16  ;;  %v7027_v16 = vld [vmem:[%s9727_s3 + $0x378] sm:$0xff]  ;;  %v7013_v33 = vld [vmem:[%s9727_s3 + $0x308] sm:$0xff] }
 0x32c   :  { %v2081_v8 = vmul.f32 %v8749_v59, %v2001_v48  ;;  %4708 = vmatmul.bf16.vlgmr.msra.gmra.mxu3 %v2264_v62  ;;  %v7023_v62 = vld [vmem:[%s9727_s3 + $0x358] sm:$0xff]  ;;  %v7033_v48 = vld [vmem:[%s9727_s3 + $0x3a8] sm:$0xff] }
 0x32d   :  { %4752 = vmatpush.bf16.msra.mxu1 %v7019_v19  ;;  %4732 = vmatpush.bf16.msrb.mxu2 %v6997_v30  ;;  %v7014_v19 = vld [vmem:[%s9727_s3 + $0x310] sm:$0xff] }
 0x32e   :  { %4743 = vmatpush.bf16.msrb.mxu3 %v7007_v32  ;;  %v2121_v38 = vadd.f32 %v8755_v23, %v2081_v8  ;;  %v7034_v30 = vld [vmem:[%s9727_s3 + $0x3b0] sm:$0xff] }
 0x32f   :  { %v7022_v8 = vld [vmem:[%s9727_s3 + $0x350] sm:$0xff] }
 0x330   :  { %v2157_v2 = vmax.f32 %v2121_v38, 0.0  ;;  %v7043_v38 = vld [vmem:[%s9727_s3 + $0x3f8] sm:$0xff] }
 0x331   :  { %4753 = vmatpush.bf16.msra.mxu1 %v7018_v6  ;;  %4733 = vmatpush.bf16.msrb.mxu2 %v6996_v42  ;;  %v2003_v11 = vpop.f32.mrf.mxu0 }
 0x332   :  { %4744 = vmatpush.bf16.msrb.mxu3 %v7006_v13  ;;  %v2265_v24 = vpack.c.bf16 %v2157_v2, %v2157_v2  ;;  %v2004_v29 = vadd.f32 %v2003_v11, %v8418_v52  ;;  %v7035_v52 = vld [vmem:[%s9727_s3 + $0x3b8] sm:$0xff]  ;;  %v7012_v13 = vld [vmem:[%s9727_s3 + $0x300] sm:$0xff]  ;;  %v7021_v11 = vld [vmem:[%s9727_s3 + $0x348] sm:$0xff] }
 0x333   :  { %5625 = vmatmul.msk.bf16.gmra.mxu0 %vm1716_vm0, %v8589_v25 }
 0x334   :  { %v2082_v47 = vmul.f32 %v8749_v59, %v2004_v29  ;;  %4721 = vmatmul.bf16.vlgmr.msrb.gmra.mxu1 %v2265_v24  ;;  %v7031_v24 = vld [vmem:[%s9727_s3 + $0x398] sm:$0xff] }
 0x335   :  { %4754 = vmatpush.bf16.msra.mxu1 %v7017_v4  ;;  %4765 = vmatpush.bf16.msra.mxu2 %v7027_v16  ;;  %v7032_v16 = vld [vmem:[%s9727_s3 + $0x3a0] sm:$0xff] }
 0x336   :  { %4745 = vmatpush.bf16.msrb.mxu3 %v7005_v34  ;;  %v2122_v54 = vadd.f32 %v8755_v23, %v2082_v47 }
 0x338   :  { %v2158_v3 = vmax.f32 %v2122_v54, 0.0 }
 0x339   :  { %4755 = vmatpush.bf16.msra.mxu1 %v7016_v22  ;;  %4766 = vmatpush.bf16.msra.mxu2 %v7026_v17  ;;  %v2005_v25 = vpop.f32.mrf.mxu0  ;;  %v7135_v22 = vld [vmem:[%s9727_s3 + $0x6d8] sm:$0xff] }
 0x33a   :  { %4746 = vmatpush.bf16.msrb.mxu3 %v7004_v1  ;;  %v2266_v32 = vpack.c.bf16 %v2158_v3, %v2158_v3  ;;  %v2006_v7 = vadd.f32 %v2005_v25, %v8425_v43  ;;  %4951 = vmatpush.bf16.msrb.mxu0 %v7135_v22  ;;  %v1912_v1 = vadd.f32 %v8455_v21, %v8453_v58  ;;  %v7051_v58 = vld [vmem:[%s9727_s3 + $0x438] sm:$0xff]  ;;  %v7037_v22 = vld [vmem:[%s9727_s3 + $0x3c8] sm:$0xff] }
 0x33c   :  { %v2083_v6 = vmul.f32 %v8749_v59, %v2006_v7  ;;  %4734 = vmatmul.bf16.vlgmr.msrb.gmra.mxu2 %v2266_v32 }
 0x33d   :  { %4756 = vmatpush.bf16.msra.mxu1 %v7015_v9  ;;  %4767 = vmatpush.bf16.msra.mxu2 %v7025_v31  ;;  %v7020_v9 = vld [vmem:[%s9727_s3 + $0x340] sm:$0xff] }
 0x33e   :  { %4778 = vmatpush.bf16.msra.mxu3 %v7035_v52  ;;  %v2123_v43 = vadd.f32 %v8755_v23, %v2083_v6  ;;  %v7030_v52 = vld [vmem:[%s9727_s3 + $0x390] sm:$0xff]  ;;  %v7028_v6 = vld [vmem:[%s9727_s3 + $0x380] sm:$0xff] }
 0x340   :  { %v2159_v42 = vmax.f32 %v2123_v43, 0.0  ;;  %v7049_v43 = vld [vmem:[%s9727_s3 + $0x428] sm:$0xff] }
 0x341   :  { %4757 = vmatpush.bf16.msra.mxu1 %v7014_v19  ;;  %4768 = vmatpush.bf16.msra.mxu2 %v7024_v10  ;;  %v2008_v4 = vpop.f32.mrf.mxu0  ;;  %v7029_v19 = vld [vmem:[%s9727_s3 + $0x388] sm:$0xff]  ;;  %v7040_v10 = vld [vmem:[%s9727_s3 + $0x3e0] sm:$0xff] }
 0x342   :  { %4779 = vmatpush.bf16.msra.mxu3 %v7034_v30  ;;  %v2267_v34 = vpack.c.bf16 %v2159_v42, %v2159_v42  ;;  %v2009_v2 = vadd.f32 %v2008_v4, %v8446_v20  ;;  %v7042_v20 = vld [vmem:[%s9727_s3 + $0x3f0] sm:$0xff]  ;;  %v7059_v42 = vld [vmem:[%s9727_s3 + $0x478] sm:$0xff] }
 0x343   :  { %5626 = vmatmul.msk.bf16.gmra.mxu0 %vm1716_vm0, %v8633_v18  ;;  %v7041_v18 = vld [vmem:[%s9727_s3 + $0x3e8] sm:$0xff]  ;;  %v7050_v30 = vld [vmem:[%s9727_s3 + $0x430] sm:$0xff] }
 0x344   :  { %v2084_v17 = vmul.f32 %v8749_v59, %v2009_v2  ;;  %4747 = vmatmul.bf16.vlgmr.msrb.gmra.mxu3 %v2267_v34 }
 0x345   :  { %4758 = vmatpush.bf16.msra.mxu1 %v7013_v33  ;;  %4769 = vmatpush.bf16.msra.mxu2 %v7023_v62  ;;  %v7039_v33 = vld [vmem:[%s9727_s3 + $0x3d8] sm:$0xff] }
 0x346   :  { %4780 = vmatpush.bf16.msra.mxu3 %v7033_v48  ;;  %v2124_v29 = vadd.f32 %v8755_v23, %v2084_v17 }
 0x348   :  { %v2160_v47 = vmax.f32 %v2124_v29, 0.0 }
 0x349   :  { %4759 = vmatpush.bf16.msra.mxu1 %v7012_v13  ;;  %4770 = vmatpush.bf16.msra.mxu2 %v7022_v8  ;;  %v2010_v31 = vpop.f32.mrf.mxu0  ;;  %v7038_v8 = vld [vmem:[%s9727_s3 + $0x3d0] sm:$0xff] }
 0x34a   :  { %4781 = vmatpush.bf16.msra.mxu3 %v7032_v16  ;;  %v2268_v54 = vpack.c.bf16 %v2160_v47, %v2160_v47  ;;  %v2011_v3 = vadd.f32 %v2010_v31, %v1912_v1  ;;  %v7058_v16 = vld [vmem:[%s9727_s3 + $0x470] sm:$0xff]  ;;  %v7056_v47 = vld [vmem:[%s9727_s3 + $0x460] sm:$0xff] }
 0x34b   :  { %v7046_v1 = vld [vmem:[%s9727_s3 + $0x410] sm:$0xff] }
 0x34c   :  { %v2085_v21 = vmul.f32 %v8749_v59, %v2011_v3  ;;  %4760 = vmatmul.bf16.vlgmr.msra.gmra.mxu1 %v2268_v54  ;;  %v7045_v3 = vld [vmem:[%s9727_s3 + $0x408] sm:$0xff] }
 0x34d   :  { %4791 = vmatpush.bf16.msrb.mxu1 %v7043_v38  ;;  %4771 = vmatpush.bf16.msra.mxu2 %v7021_v11  ;;  %v1917_v38 = vadd.f32 %v8471_v27, %v8469_v5  ;;  %v9092_v5 = vpop.f32.mrf.mxu2 }
 0x34e   :  { %4782 = vmatpush.bf16.msra.mxu3 %v7031_v24  ;;  %v2125_v25 = vadd.f32 %v8755_v23, %v2085_v21  ;;  %v7047_v24 = vld [vmem:[%s9727_s3 + $0x418] sm:$0xff]  ;;  %v7134_v21 = vld [vmem:[%s9727_s3 + $0x6d0] sm:$0xff] }
 0x34f   :  { %4952 = vmatpush.bf16.msrb.mxu0 %v7134_v21 }
 0x350   :  { %v2161_v32 = vmax.f32 %v2125_v25, 0.0 }
 0x351   :  { %4792 = vmatpush.bf16.msrb.mxu1 %v7042_v20  ;;  %4772 = vmatpush.bf16.msra.mxu2 %v7020_v9  ;;  %v2013_v7 = vpop.f32.mrf.mxu0  ;;  %v7036_v20 = vld [vmem:[%s9727_s3 + $0x3c0] sm:$0xff]  ;;  %v7067_v9 = vld [vmem:[%s9727_s3 + $0x4b8] sm:$0xff] }
 0x352   :  { %4783 = vmatpush.bf16.msra.mxu3 %v7030_v52  ;;  %v2269_v62 = vpack.c.bf16 %v2161_v32, %v2161_v32  ;;  %v2014_v48 = vadd.f32 %v2013_v7, %v8464_v41  ;;  %v7048_v41 = vld [vmem:[%s9727_s3 + $0x420] sm:$0xff]  ;;  %v7054_v7 = vld [vmem:[%s9727_s3 + $0x450] sm:$0xff] }
 0x353   :  { %5627 = vmatmul.msk.bf16.gmra.mxu0 %vm1716_vm0, %v8689_v44  ;;  %v7057_v44 = vld [vmem:[%s9727_s3 + $0x468] sm:$0xff]  ;;  %v7044_v32 = vld [vmem:[%s9727_s3 + $0x400] sm:$0xff] }
 0x354   :  { %v2086_v13 = vmul.f32 %v8749_v59, %v2014_v48  ;;  %4773 = vmatmul.bf16.vlgmr.msra.gmra.mxu2 %v2269_v62  ;;  %v1922_v62 = vadd.f32 %v8492_v56, %v8490_v51  ;;  %v7074_v51 = vld [vmem:[%s9727_s3 + $0x4f0] sm:$0xff] }
 0x355   :  { %4793 = vmatpush.bf16.msrb.mxu1 %v7041_v18  ;;  %4804 = vmatpush.bf16.msrb.mxu2 %v7051_v58  ;;  %v7055_v58 = vld [vmem:[%s9727_s3 + $0x458] sm:$0xff]  ;;  %v9124_v25 = vpop.f32.mrf.mxu2 }
 0x356   :  { %4784 = vmatpush.bf16.msra.mxu3 %v7029_v19  ;;  %v2126_v4 = vadd.f32 %v8755_v23, %v2086_v13  ;;  %v9118_v19 = vpop.f32.mrf.mxu3 }
 0x358   :  { %v2162_v34 = vmax.f32 %v2126_v4, 0.0  ;;  %v7064_v4 = vld [vmem:[%s9727_s3 + $0x4a0] sm:$0xff] }
 0x359   :  { %4794 = vmatpush.bf16.msrb.mxu1 %v7040_v10  ;;  %4805 = vmatpush.bf16.msrb.mxu2 %v7050_v30  ;;  %v2015_v2 = vpop.f32.mrf.mxu0  ;;  %v7066_v10 = vld [vmem:[%s9727_s3 + $0x4b0] sm:$0xff] }
 0x35a   :  { %4785 = vmatpush.bf16.msra.mxu3 %v7028_v6  ;;  %v2270_v17 = vpack.c.bf16 %v2162_v34, %v2162_v34  ;;  %v2016_v11 = vadd.f32 %v2015_v2, %v1917_v38  ;;  %v7065_v6 = vld [vmem:[%s9727_s3 + $0x4a8] sm:$0xff]  ;;  %v7052_v38 = vld [vmem:[%s9727_s3 + $0x440] sm:$0xff]  ;;  %v7063_v2 = vld [vmem:[%s9727_s3 + $0x498] sm:$0xff] }
 0x35c   :  { %v2087_v27 = vmul.f32 %v8749_v59, %v2016_v11  ;;  %v7083_v11 = vld [vmem:[%s9727_s3 + $0x538] sm:$0xff] }
 0x35d   :  { %4795 = vmatpush.bf16.msrb.mxu1 %v7039_v33  ;;  %4806 = vmatpush.bf16.msrb.mxu2 %v7049_v43  ;;  %v7075_v33 = vld [vmem:[%s9727_s3 + $0x4f8] sm:$0xff]  ;;  %v9159_v34 = vpop.f32.mrf.mxu2 }
 0x35e   :  { %4817 = vmatpush.bf16.msrb.mxu3 %v7059_v42  ;;  %v2127_v29 = vadd.f32 %v8755_v23, %v2087_v27 }
 0x35f   :  { %4786 = vmatmul.bf16.vlgmr.msra.gmra.mxu3 %v2270_v17 }
 0x360   :  { %v2163_v31 = vmax.f32 %v2127_v29, 0.0  ;;  %v7062_v29 = vld [vmem:[%s9727_s3 + $0x490] sm:$0xff] }
 0x361   :  { %4796 = vmatpush.bf16.msrb.mxu1 %v7038_v8  ;;  %4807 = vmatpush.bf16.msrb.mxu2 %v7048_v41  ;;  %v2018_v52 = vpop.f32.mrf.mxu0  ;;  %v9153_v41 = vpop.f32.mrf.mxu3 }
 0x362   :  { %4818 = vmatpush.bf16.msrb.mxu3 %v7058_v16  ;;  %v2271_v18 = vpack.c.bf16 %v2163_v31, %v2163_v31  ;;  %v2019_v54 = vadd.f32 %v2018_v52, %v8482_v55  ;;  %v7061_v52 = vld [vmem:[%s9727_s3 + $0x488] sm:$0xff] }
 0x363   :  { %5628 = vmatmul.msk.bf16.gmra.mxu0 %vm1716_vm0, %v8732_v61  ;;  %v7053_v61 = vld [vmem:[%s9727_s3 + $0x448] sm:$0xff] }
 0x364   :  { %v2088_v55 = vmul.f32 %v8749_v59, %v2019_v54 }
 0x365   :  { %4797 = vmatpush.bf16.msrb.mxu1 %v7037_v22  ;;  %4808 = vmatpush.bf16.msrb.mxu2 %v7047_v24  ;;  %v7073_v22 = vld [vmem:[%s9727_s3 + $0x4e8] sm:$0xff] }
 0x366   :  { %4819 = vmatpush.bf16.msrb.mxu3 %v7057_v44  ;;  %v2128_v30 = vadd.f32 %v8755_v23, %v2088_v55  ;;  %v7070_v55 = vld [vmem:[%s9727_s3 + $0x4d0] sm:$0xff] }
 0x368   :  { %v2164_v48 = vmax.f32 %v2128_v30, 0.0  ;;  %v7080_v30 = vld [vmem:[%s9727_s3 + $0x520] sm:$0xff] }
 0x369   :  { %4798 = vmatpush.bf16.msrb.mxu1 %v7036_v20  ;;  %4809 = vmatpush.bf16.msrb.mxu2 %v7046_v1  ;;  %v2020_v43 = vpop.f32.mrf.mxu0  ;;  %v4605_v42 = vpop.f32.mrf.mxu1 }
 0x36a   :  { %4820 = vmatpush.bf16.msrb.mxu3 %v7056_v47  ;;  %v2272_v13 = vpack.c.bf16 %v2164_v48, %v2164_v48  ;;  %v2021_v8 = vadd.f32 %v2020_v43, %v1922_v62  ;;  %v7072_v47 = vld [vmem:[%s9727_s3 + $0x4e0] sm:$0xff]  ;;  %v9181_v31 = vpop.f32.mrf.mxu3  ;;  %v7069_v43 = vld [vmem:[%s9727_s3 + $0x4c8] sm:$0xff] }
 0x36c   :  { %4799 = vmatmul.bf16.vlgmr.msrb.gmra.mxu1 %v2271_v18  ;;  %v2089_v56 = vmul.f32 %v8749_v59, %v2021_v8  ;;  %v1927_v18 = vadd.f32 %v8510_v57, %v8508_v63  ;;  %v7060_v63 = vld [vmem:[%s9727_s3 + $0x480] sm:$0xff] }
 0x36d   :  { %4830 = vmatpush.bf16.msra.mxu1 %v7067_v9  ;;  %4810 = vmatpush.bf16.msrb.mxu2 %v7045_v3  ;;  %v7082_v9 = vld [vmem:[%s9727_s3 + $0x530] sm:$0xff] }
 0x36e   :  { %4821 = vmatpush.bf16.msrb.mxu3 %v7055_v58  ;;  %v2129_v16 = vadd.f32 %v8755_v23, %v2089_v56  ;;  %v7071_v58 = vld [vmem:[%s9727_s3 + $0x4d8] sm:$0xff] }
 0x370   :  { %v2165_v17 = vmax.f32 %v2129_v16, 0.0  ;;  %v7068_v16 = vld [vmem:[%s9727_s3 + $0x4c0] sm:$0xff] }
 0x371   :  { %4831 = vmatpush.bf16.msra.mxu1 %v7066_v10  ;;  %4811 = vmatpush.bf16.msrb.mxu2 %v7044_v32  ;;  %v2023_v24 = vpop.f32.mrf.mxu0  ;;  %v4607_v44 = vpop.f32.mrf.mxu1 }
 0x372   :  { %4822 = vmatpush.bf16.msrb.mxu3 %v7054_v7  ;;  %v2273_v27 = vpack.c.bf16 %v2165_v17, %v2165_v17  ;;  %v2024_v20 = vadd.f32 %v2023_v24, %v8503_v0  ;;  %v7091_v7 = vld [vmem:[%s9727_s3 + $0x578] sm:$0xff]  ;;  %v7089_v17 = vld [vmem:[%s9727_s3 + $0x568] sm:$0xff] }
 0x373   :  { %5629 = vmatmul.msk.bf16.gmra.mxu0 %vm1716_vm0, %v8757_v50  ;;  %v7081_v50 = vld [vmem:[%s9727_s3 + $0x528] sm:$0xff] }
 0x374   :  { %4812 = vmatmul.bf16.vlgmr.msrb.gmra.mxu2 %v2272_v13  ;;  %v2090_v1 = vmul.f32 %v8749_v59, %v2024_v20  ;;  %v7077_v24 = vld [vmem:[%s9727_s3 + $0x508] sm:$0xff] }
 0x375   :  { %4832 = vmatpush.bf16.msra.mxu1 %v7065_v6  ;;  %4843 = vmatpush.bf16.msra.mxu2 %v7075_v33 }
 0x376   :  { %4823 = vmatpush.bf16.msrb.mxu3 %v7053_v61  ;;  %v2130_v54 = vadd.f32 %v8755_v23, %v2090_v1  ;;  %v7088_v1 = vld [vmem:[%s9727_s3 + $0x560] sm:$0xff] }
 0x377   :  { %v4618_v0 = vpop.f32.mrf.mxu2 }
 0x378   :  { %v4619_v3 = vadd.f32 %v4618_v0, %v4605_v42  ;;  %v2166_v57 = vmax.f32 %v2130_v54, 0.0  ;;  %v7079_v42 = vld [vmem:[%s9727_s3 + $0x518] sm:$0xff]  ;;  %v1932_v0 = vadd.f32 %v8524_v12, %v8522_v60 }
 0x379   :  { %4833 = vmatpush.bf16.msra.mxu1 %v7064_v4  ;;  %4844 = vmatpush.bf16.msra.mxu2 %v7074_v51  ;;  %v2025_v21 = vpop.f32.mrf.mxu0  ;;  %v7090_v4 = vld [vmem:[%s9727_s3 + $0x570] sm:$0xff]  ;;  %v7087_v54 = vld [vmem:[%s9727_s3 + $0x558] sm:$0xff] }
 0x37a   :  { %4824 = vmatpush.bf16.msrb.mxu3 %v7052_v38  ;;  %v2026_v10 = vadd.f32 %v2025_v21, %v1927_v18  ;;  %v2274_v62 = vpack.c.bf16 %v2166_v57, %v2166_v57  ;;  %v7078_v38 = vld [vmem:[%s9727_s3 + $0x510] sm:$0xff]  ;;  %v7107_v60 = vld [vmem:[%s9727_s3 + $0x5f8] sm:$0xff]  ;;  %v7096_v57 = vld [vmem:[%s9727_s3 + $0x5a0] sm:$0xff] }
 0x37c   :  { %v2091_v32 = vmul.f32 %v8749_v59, %v2026_v10 }
 0x37d   :  { %4834 = vmatpush.bf16.msra.mxu1 %v7063_v2  ;;  %4845 = vmatpush.bf16.msra.mxu2 %v7073_v22 }
 0x37e   :  { %4856 = vmatpush.bf16.msra.mxu3 %v7083_v11  ;;  %v2131_v13 = vadd.f32 %v8755_v23, %v2091_v32  ;;  %v7085_v32 = vld [vmem:[%s9727_s3 + $0x548] sm:$0xff] }
 0x37f   :  { %4825 = vmatmul.bf16.vlgmr.msrb.gmra.mxu3 %v2273_v27  ;;  %v4620_v6 = vpop.f32.mrf.mxu2  ;;  %v4631_v33 = vpop.f32.mrf.mxu3 }
 0x380   :  { %v4632_v48 = vadd.f32 %v4631_v33, %v4619_v3  ;;  %v2167_v2 = vmax.f32 %v2131_v13, 0.0  ;;  %v7097_v3 = vld [vmem:[%s9727_s3 + $0x5a8] sm:$0xff] }
 0x381   :  { %4835 = vmatpush.bf16.msra.mxu1 %v7062_v29  ;;  %4846 = vmatpush.bf16.msra.mxu2 %v7072_v47  ;;  %v2028_v8 = vpop.f32.mrf.mxu0  ;;  %v4644_v61 = vpop.f32.mrf.mxu1  ;;  %v7098_v47 = vld [vmem:[%s9727_s3 + $0x5b0] sm:$0xff] }
 0x382   :  { %4857 = vmatpush.bf16.msra.mxu3 %v7082_v9  ;;  %v2029_v51 = vadd.f32 %v2028_v8, %v8517_v53  ;;  %v4645_v56 = vadd.f32 %v4644_v61, %v4632_v48  ;;  %v7099_v53 = vld [vmem:[%s9727_s3 + $0x5b8] sm:$0xff]  ;;  %v2275_v44 = vpack.c.bf16 %v2167_v2, %v2167_v2  ;;  %v7133_v9 = vld [vmem:[%s9727_s3 + $0x6c8] sm:$0xff]  ;;  %v7084_v61 = vld [vmem:[%s9727_s3 + $0x540] sm:$0xff]  ;;  %v1937_v2 = vadd.f32 %v8547_v15, %v8545_v14 }
 0x383   :  { %4953 = vmatpush.bf16.msrb.mxu0 %v7133_v9 }
 0x384   :  { %v2092_v22 = vmul.f32 %v8749_v59, %v2029_v51 }
 0x385   :  { %4836 = vmatpush.bf16.msra.mxu1 %v7061_v52  ;;  %4847 = vmatpush.bf16.msra.mxu2 %v7071_v58  ;;  %v7076_v52 = vld [vmem:[%s9727_s3 + $0x500] sm:$0xff] }
 0x386   :  { %4858 = vmatpush.bf16.msra.mxu3 %v7081_v50  ;;  %v2132_v27 = vadd.f32 %v8755_v23, %v2092_v22  ;;  %v7093_v22 = vld [vmem:[%s9727_s3 + $0x588] sm:$0xff] }
 0x387   :  { %v4633_v11 = vpop.f32.mrf.mxu3 }
 0x388   :  { %v2168_v18 = vmax.f32 %v2132_v27, 0.0  ;;  %v7103_v11 = vld [vmem:[%s9727_s3 + $0x5d8] sm:$0xff] }
 0x389   :  { %4837 = vmatpush.bf16.msra.mxu1 %v7060_v63  ;;  %4848 = vmatpush.bf16.msra.mxu2 %v7070_v55  ;;  %v2030_v20 = vpop.f32.mrf.mxu0  ;;  %v4646_v29 = vpop.f32.mrf.mxu1  ;;  %v7086_v63 = vld [vmem:[%s9727_s3 + $0x550] sm:$0xff] }
 0x38a   :  { %4859 = vmatpush.bf16.msra.mxu3 %v7080_v30  ;;  %v2031_v58 = vadd.f32 %v2030_v20, %v1932_v0  ;;  %v2276_v21 = vpack.c.bf16 %v2168_v18, %v2168_v18  ;;  %v7106_v30 = vld [vmem:[%s9727_s3 + $0x5f0] sm:$0xff]  ;;  %v7092_v20 = vld [vmem:[%s9727_s3 + $0x580] sm:$0xff]  ;;  %v7123_v0 = vld [vmem:[%s9727_s3 + $0x678] sm:$0xff] }
 0x38c   :  { %4838 = vmatmul.bf16.vlgmr.msra.gmra.mxu1 %v2274_v62  ;;  %v2093_v55 = vmul.f32 %v8749_v59, %v2031_v58  ;;  %v7105_v62 = vld [vmem:[%s9727_s3 + $0x5e8] sm:$0xff]  ;;  %v7122_v58 = vld [vmem:[%s9727_s3 + $0x670] sm:$0xff] }
 0x38d   :  { %4869 = vmatpush.bf16.msrb.mxu1 %v7091_v7  ;;  %4849 = vmatpush.bf16.msra.mxu2 %v7069_v43  ;;  %v7095_v7 = vld [vmem:[%s9727_s3 + $0x598] sm:$0xff] }
 0x38e   :  { %4860 = vmatpush.bf16.msra.mxu3 %v7079_v42  ;;  %v2133_v6 = vadd.f32 %v8755_v23, %v2093_v55  ;;  %v7121_v55 = vld [vmem:[%s9727_s3 + $0x668] sm:$0xff] }
 0x38f   :  { %v4657_v12 = vpop.f32.mrf.mxu2 }
 0x390   :  { %v4658_v50 = vadd.f32 %v4657_v12, %v4645_v56 }
 0x391   :  { %4870 = vmatpush.bf16.msrb.mxu1 %v7090_v4  ;;  %4850 = vmatpush.bf16.msra.mxu2 %v7068_v16  ;;  %v2033_v10 = vpop.f32.mrf.mxu0  ;;  %v2169_v4 = vmax.f32 %v2133_v6, 0.0  ;;  %v7104_v16 = vld [vmem:[%s9727_s3 + $0x5e0] sm:$0xff] }
 0x392   :  { %4861 = vmatpush.bf16.msra.mxu3 %v7078_v38  ;;  %v2034_v33 = vadd.f32 %v2033_v10, %v8540_v46  ;;  %v7094_v46 = vld [vmem:[%s9727_s3 + $0x590] sm:$0xff]  ;;  %v7115_v38 = vld [vmem:[%s9727_s3 + $0x638] sm:$0xff]  ;;  %v9358_v6 = vld [vmem:[%s9728_s8] ss:$0 sm:$0xff] }
 0x393   :  { %v7111_v10 = vld [vmem:[%s9727_s3 + $0x618] sm:$0xff] }
 0x394   :  { %4851 = vmatmul.bf16.vlgmr.msra.gmra.mxu2 %v2275_v44  ;;  %v2094_v51 = vmul.f32 %v8749_v59, %v2034_v33 }
 0x395   :  { %4871 = vmatpush.bf16.msrb.mxu1 %v7089_v17  ;;  %4882 = vmatpush.bf16.msrb.mxu2 %v7099_v53  ;;  %v2277_v17 = vpack.c.bf16 %v2169_v4, %v2169_v4 }
 0x396   :  { %4862 = vmatpush.bf16.msra.mxu3 %v7077_v24  ;;  %v2134_v53 = vadd.f32 %v8755_v23, %v2094_v51  ;;  %v7114_v24 = vld [vmem:[%s9727_s3 + $0x630] sm:$0xff]  ;;  %v7109_v51 = vld [vmem:[%s9727_s3 + $0x608] sm:$0xff] }
 0x397   :  { %v4659_v48 = vpop.f32.mrf.mxu2  ;;  %v4670_v43 = vpop.f32.mrf.mxu3 }
 0x398   :  { %v4671_v42 = vadd.f32 %v4670_v43, %v4658_v50  ;;  %v2170_v29 = vmax.f32 %v2134_v53, 0.0  ;;  %v7171_v50 = vld [vmem:[%s9727_s3 + $0x7f8] sm:$0xff]  ;;  %v7130_v48 = vld [vmem:[%s9727_s3 + $0x6b0] sm:$0xff] }
 0x399   :  { %4872 = vmatpush.bf16.msrb.mxu1 %v7088_v1  ;;  %4883 = vmatpush.bf16.msrb.mxu2 %v7098_v47  ;;  %v2035_v13 = vpop.f32.mrf.mxu0  ;;  %v4683_v8 = vpop.f32.mrf.mxu1  ;;  %v7102_v1 = vld [vmem:[%s9727_s3 + $0x5d0] sm:$0xff]  ;;  %v7113_v47 = vld [vmem:[%s9727_s3 + $0x628] sm:$0xff] }
 0x39a   :  { %4863 = vmatpush.bf16.msra.mxu3 %v7076_v52  ;;  %v4684_v56 = vadd.f32 %v4683_v8, %v4671_v42  ;;  %v2036_v14 = vadd.f32 %v2035_v13, %v1937_v2  ;;  %v7132_v52 = vld [vmem:[%s9727_s3 + $0x6c0] sm:$0xff]  ;;  %v2278_v18 = vpack.c.bf16 %v2170_v29, %v2170_v29  ;;  %v7169_v8 = vld [vmem:[%s9727_s3 + $0x7e8] sm:$0xff] }
 0x39b   :  { %4954 = vmatpush.bf16.msrb.mxu0 %v7132_v52  ;;  %v7127_v52 = vld [vmem:[%s9727_s3 + $0x698] sm:$0xff] }
 0x39c   :  { %v2095_v9 = vmul.f32 %v8749_v59, %v2036_v14  ;;  %v7112_v59 = vld [vmem:[%s9727_s3 + $0x620] sm:$0xff] }
 0x39d   :  { %4873 = vmatpush.bf16.msrb.mxu1 %v7087_v54  ;;  %4884 = vmatpush.bf16.msrb.mxu2 %v7097_v3  ;;  %v7101_v54 = vld [vmem:[%s9727_s3 + $0x5c8] sm:$0xff] }
 0x39e   :  { %4895 = vmatpush.bf16.msrb.mxu3 %v7107_v60  ;;  %v2135_v3 = vadd.f32 %v8755_v23, %v2095_v9  ;;  %v7100_v23 = vld [vmem:[%s9727_s3 + $0x5c0] sm:$0xff] }
 0x39f   :  { %4864 = vmatmul.bf16.vlgmr.msra.gmra.mxu3 %v2276_v21  ;;  %v4672_v15 = vpop.f32.mrf.mxu3  ;;  %4999 = vmatpush.bf16.msra.mxu0 %v7171_v50 }
 0x3a1   :  { %4874 = vmatpush.bf16.msrb.mxu1 %v7086_v63  ;;  %4885 = vmatpush.bf16.msrb.mxu2 %v7096_v57  ;;  %v2038_v44 = vpop.f32.mrf.mxu0  ;;  %v4685_v27 = vpop.f32.mrf.mxu1  ;;  %v2171_v63 = vmax.f32 %v2135_v3, 0.0 }
 0x3a2   :  { %4896 = vmatpush.bf16.msrb.mxu3 %v7106_v30  ;;  %v2039_v57 = vadd.f32 %v2038_v44, %v8554_v45  ;;  %v7131_v30 = vld [vmem:[%s9727_s3 + $0x6b8] sm:$0xff]  ;;  %v7110_v45 = vld [vmem:[%s9727_s3 + $0x610] sm:$0xff]  ;;  %v1947_v27 = vadd.f32 %v8584_v49, %v8582_v26 }
 0x3a3   :  { %v7147_v44 = vld [vmem:[%s9727_s3 + $0x738] sm:$0xff] }
 0x3a4   :  { %v2096_v33 = vmul.f32 %v9358_v6, %v2039_v57  ;;  %v7165_v57 = vld [vmem:[%s9727_s3 + $0x7c8] sm:$0xff] }
 0x3a5   :  { %4875 = vmatpush.bf16.msrb.mxu1 %v7085_v32  ;;  %4886 = vmatpush.bf16.msrb.mxu2 %v7095_v7  ;;  %v7170_v32 = vld [vmem:[%s9727_s3 + $0x7f0] sm:$0xff]  ;;  %v2279_v7 = vpack.c.bf16 %v2171_v63, %v2171_v63 }
 0x3a6   :  { %4897 = vmatpush.bf16.msrb.mxu3 %v7105_v62  ;;  %v7120_v62 = vld [vmem:[%s9727_s3 + $0x660] sm:$0xff]  ;;  %5000 = vmatpush.bf16.msra.mxu0 %v7170_v32  ;;  %v7125_v32 = vld [vmem:[%s9727_s3 + $0x688] sm:$0xff] }
 0x3a7   :  { %v4696_v60 = vpop.f32.mrf.mxu2 }
 0x3a8   :  { %v4697_v12 = vadd.f32 %v4696_v60, %v4684_v56  ;;  %v9378_v56 = vld [vmem:[%s9729_s9] ss:$0 sm:$0xff] }
 0x3a9   :  { %4876 = vmatpush.bf16.msrb.mxu1 %v7084_v61  ;;  %4887 = vmatpush.bf16.msrb.mxu2 %v7094_v46  ;;  %v2040_v21 = vpop.f32.mrf.mxu0  ;;  %v1942_v61 = vadd.f32 %v8561_v36, %v8559_v28  ;;  %v7119_v28 = vld [vmem:[%s9727_s3 + $0x658] sm:$0xff]  ;;  %v7129_v36 = vld [vmem:[%s9727_s3 + $0x6a8] sm:$0xff] }
 0x3aa   :  { %4898 = vmatpush.bf16.msrb.mxu3 %v7104_v16  ;;  %v2136_v16 = vadd.f32 %v9378_v56, %v2096_v33  ;;  %5001 = vmatpush.bf16.msra.mxu0 %v7169_v8  ;;  %v7144_v33 = vld [vmem:[%s9727_s3 + $0x720] sm:$0xff]  ;;  %v7143_v8 = vld [vmem:[%s9727_s3 + $0x718] sm:$0xff] }
 0x3ab   :  { %v2041_v2 = vadd.f32 %v2040_v21, %v1942_v61  ;;  %v7145_v21 = vld [vmem:[%s9727_s3 + $0x728] sm:$0xff] }
 0x3ac   :  { %4877 = vmatmul.bf16.vlgmr.msrb.gmra.mxu1 %v2277_v17  ;;  %v7108_v17 = vld [vmem:[%s9727_s3 + $0x600] sm:$0xff]  ;;  %v2172_v53 = vmax.f32 %v2136_v16, 0.0  ;;  %v7153_v61 = vld [vmem:[%s9727_s3 + $0x768] sm:$0xff] }
 0x3ad   :  { %4908 = vmatpush.bf16.msra.mxu1 %v7115_v38  ;;  %4888 = vmatpush.bf16.msrb.mxu2 %v7093_v22  ;;  %v7168_v22 = vld [vmem:[%s9727_s3 + $0x7e0] sm:$0xff]  ;;  %v2097_v15 = vmul.f32 %v9358_v6, %v2041_v2 }
 0x3ae   :  { %4899 = vmatpush.bf16.msrb.mxu3 %v7103_v11  ;;  %v7118_v11 = vld [vmem:[%s9727_s3 + $0x650] sm:$0xff]  ;;  %5002 = vmatpush.bf16.msra.mxu0 %v7168_v22 }
 0x3af   :  { %v4698_v43 = vpop.f32.mrf.mxu2  ;;  %v4709_v42 = vpop.f32.mrf.mxu3  ;;  %v2137_v26 = vadd.f32 %v9378_v56, %v2097_v15  ;;  %v7141_v15 = vld [vmem:[%s9727_s3 + $0x708] sm:$0xff] }
 0x3b0   :  { %v4710_v13 = vadd.f32 %v4709_v42, %v4697_v12  ;;  %v7124_v43 = vld [vmem:[%s9727_s3 + $0x680] sm:$0xff] }
 0x3b1   :  { %4909 = vmatpush.bf16.msra.mxu1 %v7114_v24  ;;  %4889 = vmatpush.bf16.msrb.mxu2 %v7092_v20  ;;  %v2043_v46 = vpop.f32.mrf.mxu0  ;;  %v4722_v4 = vpop.f32.mrf.mxu1  ;;  %v7128_v24 = vld [vmem:[%s9727_s3 + $0x6a0] sm:$0xff]  ;;  %v7167_v20 = vld [vmem:[%s9727_s3 + $0x7d8] sm:$0xff]  ;;  %v2173_v60 = vmax.f32 %v2137_v26, 0.0 }
 0x3b2   :  { %4900 = vmatpush.bf16.msrb.mxu3 %v7102_v1  ;;  %v4723_v38 = vadd.f32 %v4722_v4, %v4710_v13  ;;  %v2044_v49 = vadd.f32 %v2043_v46, %v8577_v35  ;;  %5003 = vmatpush.bf16.msra.mxu0 %v7167_v20  ;;  %v7116_v35 = vld [vmem:[%s9727_s3 + $0x640] sm:$0xff] }
 0x3b4   :  { %4890 = vmatmul.bf16.vlgmr.msrb.gmra.mxu2 %v2278_v18  ;;  %v7146_v18 = vld [vmem:[%s9727_s3 + $0x730] sm:$0xff]  ;;  %v2098_v12 = vmul.f32 %v9358_v6, %v2044_v49  ;;  %v7160_v49 = vld [vmem:[%s9727_s3 + $0x7a0] sm:$0xff] }
 0x3b5   :  { %4910 = vmatpush.bf16.msra.mxu1 %v7113_v47  ;;  %4921 = vmatpush.bf16.msra.mxu2 %v7123_v0  ;;  %v2280_v47 = vpack.c.bf16 %v2172_v53, %v2172_v53  ;;  %v7117_v0 = vld [vmem:[%s9727_s3 + $0x648] sm:$0xff] }
 0x3b6   :  { %4901 = vmatpush.bf16.msrb.mxu3 %v7101_v54 }
 0x3b7   :  { %v4711_v14 = vpop.f32.mrf.mxu3 }
 0x3b8   :  { %v1952_v14 = vadd.f32 %v8619_v37, %v8617_v40  ;;  %v7161_v40 = vld [vmem:[%s9727_s3 + $0x7a8] sm:$0xff] }
 0x3b9   :  { %4911 = vmatpush.bf16.msra.mxu1 %v7112_v59  ;;  %4922 = vmatpush.bf16.msra.mxu2 %v7122_v58  ;;  %v2045_v29 = vpop.f32.mrf.mxu0  ;;  %v4724_v1 = vpop.f32.mrf.mxu1  ;;  %v7166_v59 = vld [vmem:[%s9727_s3 + $0x7d0] sm:$0xff] }
 0x3ba   :  { %4902 = vmatpush.bf16.msrb.mxu3 %v7100_v23  ;;  %v2046_v9 = vadd.f32 %v2045_v29, %v1947_v27  ;;  %v7126_v58 = vld [vmem:[%s9727_s3 + $0x690] sm:$0xff]  ;;  %v7155_v23 = vld [vmem:[%s9727_s3 + $0x778] sm:$0xff]  ;;  %5004 = vmatpush.bf16.msra.mxu0 %v7166_v59  ;;  %v7201_v1 = vld [vmem:[%s9727_s3 + $0x8e8] sm:$0xff] }
 0x3bc   :  { %v2099_v54 = vmul.f32 %v9358_v6, %v2046_v9  ;;  %v7140_v9 = vld [vmem:[%s9727_s3 + $0x700] sm:$0xff] }
 0x3bd   :  { %4912 = vmatpush.bf16.msra.mxu1 %v7111_v10  ;;  %4923 = vmatpush.bf16.msra.mxu2 %v7121_v55 }
 0x3be   :  { %4934 = vmatpush.bf16.msra.mxu3 %v7131_v30  ;;  %v2139_v3 = vadd.f32 %v9378_v56, %v2099_v54  ;;  %5005 = vmatpush.bf16.msra.mxu0 %v7165_v57  ;;  %v7200_v54 = vld [vmem:[%s9727_s3 + $0x8e0] sm:$0xff]  ;;  %v9800_v57 = vld [vmem:[#allocation5_spill] sm:$0xff] }
 0x3bf   :  { %4903 = vmatmul.bf16.vlgmr.msrb.gmra.mxu3 %v2279_v7  ;;  %v4735_v50 = vpop.f32.mrf.mxu2  ;;  %v2138_v7 = vadd.f32 %v9378_v56, %v2098_v12  ;;  %v7159_v12 = vld [vmem:[%s9727_s3 + $0x798] sm:$0xff] }
 0x3c0   :  { %v2175_v10 = vmax.f32 %v2139_v3, 0.0  ;;  %v4736_v63 = vadd.f32 %v4735_v50, %v4723_v38  ;;  %v7203_v38 = vld [vmem:[%s9727_s3 + $0x8f8] sm:$0xff]  ;;  %v7178_v50 = vld [vmem:[%s9727_s3 + $0x830] sm:$0xff] }
 0x3c1   :  { %4913 = vmatpush.bf16.msra.mxu1 %v7110_v45  ;;  %4924 = vmatpush.bf16.msra.mxu2 %v7120_v62  ;;  %v2048_v30 = vpop.f32.mrf.mxu0  ;;  %v2281_v45 = vpack.c.bf16 %v2173_v60, %v2173_v60  ;;  %v7154_v62 = vld [vmem:[%s9727_s3 + $0x770] sm:$0xff]  ;;  %v2174_v42 = vmax.f32 %v2138_v7, 0.0 }
 0x3c2   :  { %4935 = vmatpush.bf16.msra.mxu3 %v7130_v48  ;;  %v2283_v55 = vpack.c.bf16 %v2175_v10, %v2175_v10  ;;  %v7164_v48 = vld [vmem:[%s9727_s3 + $0x7c0] sm:$0xff]  ;;  %v2049_v46 = vadd.f32 %v2048_v30, %v8597_v39  ;;  %v7142_v39 = vld [vmem:[%s9727_s3 + $0x710] sm:$0xff] }
 0x3c3   :  { %5006 = vmatpush.bf16.msra.mxu0 %v7164_v48  ;;  %v2282_v2 = vpack.c.bf16 %v2174_v42, %v2174_v42  ;;  %v7198_v48 = vld [vmem:[%s9727_s3 + $0x8d0] sm:$0xff]  ;;  %v7187_v42 = vld [vmem:[%s9727_s3 + $0x878] sm:$0xff] }
 0x3c4   :  { %4955 = vmatmul.bf16.vlgmr.msrb.gmra.mxu0 %v2283_v55  ;;  %v2100_v53 = vmul.f32 %v9358_v6, %v2049_v46 }
 0x3c5   :  { %4914 = vmatpush.bf16.msra.mxu1 %v7109_v51  ;;  %4925 = vmatpush.bf16.msra.mxu2 %v7119_v28  ;;  %v7163_v51 = vld [vmem:[%s9727_s3 + $0x7b8] sm:$0xff] }
 0x3c6   :  { %4936 = vmatpush.bf16.msra.mxu3 %v7129_v36  ;;  %v2140_v27 = vadd.f32 %v9378_v56, %v2100_v53 }
 0x3c7   :  { %v4737_v13 = vpop.f32.mrf.mxu2  ;;  %v4748_v4 = vpop.f32.mrf.mxu3  ;;  %5051 = vmatpush.bf16.msrb.mxu0 %v7203_v38  ;;  %v7176_v38 = vld [vmem:[%s9727_s3 + $0x820] sm:$0xff] }
 0x3c8   :  { %v4749_v28 = vadd.f32 %v4748_v4, %v4736_v63  ;;  %v9799_v63 = vld [vmem:[#allocation4_spill] sm:$0xff] }
 0x3c9   :  { %4915 = vmatpush.bf16.msra.mxu1 %v7108_v17  ;;  %4926 = vmatpush.bf16.msra.mxu2 %v7118_v11  ;;  %v4761_v16 = vpop.f32.mrf.mxu1  ;;  %v2050_v36 = vpop.f32.mrf.mxu0  ;;  %v7152_v17 = vld [vmem:[%s9727_s3 + $0x760] sm:$0xff]  ;;  %v7162_v11 = vld [vmem:[%s9727_s3 + $0x7b0] sm:$0xff]  ;;  %v1957_v55 = vadd.f32 %v9800_v57, %v9799_v63  ;;  %v1965_v63 = vadd.f32 %v9153_v41, %v9124_v25 }
 0x3ca   :  { %4937 = vmatpush.bf16.msra.mxu3 %v7128_v24  ;;  %v4762_v22 = vadd.f32 %v4761_v16, %v4749_v28  ;;  %v7202_v24 = vld [vmem:[%s9727_s3 + $0x8f0] sm:$0xff]  ;;  %v2051_v20 = vadd.f32 %v2050_v36, %v1952_v14  ;;  %v7157_v16 = vld [vmem:[%s9727_s3 + $0x788] sm:$0xff]  ;;  %v7175_v14 = vld [vmem:[%s9727_s3 + $0x818] sm:$0xff] }
 0x3cb   :  { %5052 = vmatpush.bf16.msrb.mxu0 %v7202_v24  ;;  %v7197_v36 = vld [vmem:[%s9727_s3 + $0x8c8] sm:$0xff]  ;;  %v7156_v24 = vld [vmem:[%s9727_s3 + $0x780] sm:$0xff]  ;;  %v7190_v41 = vld [vmem:[%s9727_s3 + $0x890] sm:$0xff] }
 0x3cc   :  { %4916 = vmatmul.bf16.vlgmr.msra.gmra.mxu1 %v2280_v47  ;;  %v2101_v26 = vmul.f32 %v9358_v6, %v2051_v20  ;;  %v7180_v25 = vld [vmem:[%s9727_s3 + $0x840] sm:$0xff] }
 0x3cd   :  { %4960 = vmatpush.bf16.msrb.mxu1 %v7147_v44  ;;  %4927 = vmatpush.bf16.msra.mxu2 %v7117_v0  ;;  %v7151_v44 = vld [vmem:[%s9727_s3 + $0x758] sm:$0xff]  ;;  %v7150_v0 = vld [vmem:[%s9727_s3 + $0x750] sm:$0xff] }
 0x3ce   :  { %4938 = vmatpush.bf16.msra.mxu3 %v7127_v52  ;;  %v2176_v52 = vmax.f32 %v2140_v27, 0.0  ;;  %v2141_v60 = vadd.f32 %v9378_v56, %v2101_v26  ;;  %v9801_v27 = vld [vmem:[#allocation6_spill] sm:$0xff]  ;;  %v7194_v26 = vld [vmem:[%s9727_s3 + $0x8b0] sm:$0xff] }
 0x3cf   :  { %v4750_v29 = vpop.f32.mrf.mxu3  ;;  %5053 = vmatpush.bf16.msrb.mxu0 %v7201_v1  ;;  %v7174_v1 = vld [vmem:[%s9727_s3 + $0x810] sm:$0xff] }
 0x3d0   :  { %v7185_v29 = vld [vmem:[%s9727_s3 + $0x868] sm:$0xff] }
 0x3d1   :  { %4961 = vmatpush.bf16.msrb.mxu1 %v7146_v18  ;;  %4928 = vmatpush.bf16.msra.mxu2 %v7116_v35  ;;  %v4763_v37 = vpop.f32.mrf.mxu1  ;;  %v2053_v47 = vpop.f32.mrf.mxu0  ;;  %v7179_v18 = vld [vmem:[%s9727_s3 + $0x838] sm:$0xff]  ;;  %v7149_v35 = vld [vmem:[%s9727_s3 + $0x748] sm:$0xff] }
 0x3d2   :  { %4939 = vmatpush.bf16.msra.mxu3 %v7126_v58  ;;  %v2284_v58 = vpack.c.bf16 %v2176_v52, %v2176_v52  ;;  %v7184_v52 = vld [vmem:[%s9727_s3 + $0x860] sm:$0xff] }
 0x3d3   :  { %5054 = vmatpush.bf16.msrb.mxu0 %v7200_v54  ;;  %v7173_v54 = vld [vmem:[%s9727_s3 + $0x808] sm:$0xff] }
 0x3d4   :  { %4929 = vmatmul.bf16.vlgmr.msra.gmra.mxu2 %v2281_v45  ;;  %v2177_v45 = vmax.f32 %v2141_v60, 0.0 }
 0x3d5   :  { %4962 = vmatpush.bf16.msrb.mxu1 %v7145_v21  ;;  %4973 = vmatpush.bf16.msrb.mxu2 %v7155_v23  ;;  %v7199_v21 = vld [vmem:[%s9727_s3 + $0x8d8] sm:$0xff]  ;;  %v9798_v23 = vld [vmem:[#allocation3_spill] sm:$0xff] }
 0x3d6   :  { %4940 = vmatpush.bf16.msra.mxu3 %v7125_v32  ;;  %v2054_v10 = vadd.f32 %v2053_v47, %v9798_v23  ;;  %v7148_v32 = vld [vmem:[%s9727_s3 + $0x740] sm:$0xff]  ;;  %v2285_v4 = vpack.c.bf16 %v2177_v45, %v2177_v45 }
 0x3d7   :  { %v4774_v59 = vpop.f32.mrf.mxu2  ;;  %5055 = vmatpush.bf16.msrb.mxu0 %v7199_v21  ;;  %v7192_v21 = vld [vmem:[%s9727_s3 + $0x8a0] sm:$0xff] }
 0x3d8   :  { %v4775_v3 = vadd.f32 %v4774_v59, %v4762_v22  ;;  %v7186_v22 = vld [vmem:[%s9727_s3 + $0x870] sm:$0xff] }
 0x3d9   :  { %4963 = vmatpush.bf16.msrb.mxu1 %v7144_v33  ;;  %4974 = vmatpush.bf16.msrb.mxu2 %v7154_v62  ;;  %v2055_v30 = vpop.f32.mrf.mxu0  ;;  %v7158_v33 = vld [vmem:[%s9727_s3 + $0x790] sm:$0xff]  ;;  %v7177_v62 = vld [vmem:[%s9727_s3 + $0x828] sm:$0xff] }
 0x3da   :  { %4941 = vmatpush.bf16.msra.mxu3 %v7124_v43  ;;  %v2056_v7 = vadd.f32 %v2055_v30, %v1957_v55  ;;  %v2102_v43 = vmul.f32 %v9358_v6, %v2054_v10  ;;  %v7181_v55 = vld [vmem:[%s9727_s3 + $0x848] sm:$0xff]  ;;  %v7191_v30 = vld [vmem:[%s9727_s3 + $0x898] sm:$0xff] }
 0x3db   :  { %5056 = vmatpush.bf16.msrb.mxu0 %v7198_v48  ;;  %v1967_v48 = vadd.f32 %v9181_v31, %v9159_v34  ;;  %v7188_v31 = vld [vmem:[%s9727_s3 + $0x880] sm:$0xff] }
 0x3dc   :  { %v2103_v13 = vmul.f32 %v9358_v6, %v2056_v7 }
 0x3dd   :  { %4964 = vmatpush.bf16.msrb.mxu1 %v7143_v8  ;;  %4975 = vmatpush.bf16.msrb.mxu2 %v7153_v61 }
 0x3de   :  { %4986 = vmatpush.bf16.msrb.mxu3 %v7163_v51  ;;  %v2143_v51 = vadd.f32 %v9378_v56, %v2103_v13 }
 0x3df   :  { %4942 = vmatmul.bf16.vlgmr.msra.gmra.mxu3 %v2282_v2  ;;  %v4776_v8 = vpop.f32.mrf.mxu2  ;;  %v2142_v2 = vadd.f32 %v9378_v56, %v2102_v43  ;;  %5057 = vmatpush.bf16.msrb.mxu0 %v7197_v36 }
 0x3e1   :  { %4965 = vmatpush.bf16.msrb.mxu1 %v7142_v39  ;;  %4976 = vmatpush.bf16.msrb.mxu2 %v7152_v17  ;;  %v2179_v17 = vmax.f32 %v2143_v51, 0.0  ;;  %v2058_v53 = vpop.f32.mrf.mxu0 }
 0x3e2   :  { %4987 = vmatpush.bf16.msrb.mxu3 %v7162_v11  ;;  %v4787_v61 = vpop.f32.mrf.mxu3  ;;  %v2059_v20 = vadd.f32 %v2058_v53, %v9801_v27 }
 0x3e3   :  { %v4788_v46 = vadd.f32 %v4787_v61, %v4775_v3  ;;  %v2287_v11 = vpack.c.bf16 %v2179_v17, %v2179_v17  ;;  %v7183_v3 = vld [vmem:[%s9727_s3 + $0x858] sm:$0xff]  ;;  %v7189_v61 = vld [vmem:[%s9727_s3 + $0x888] sm:$0xff] }
 0x3e5   :  { %4966 = vmatpush.bf16.msrb.mxu1 %v7141_v15  ;;  %4977 = vmatpush.bf16.msrb.mxu2 %v7151_v44  ;;  %v7196_v15 = vld [vmem:[%s9727_s3 + $0x8c0] sm:$0xff]  ;;  %v2178_v44 = vmax.f32 %v2142_v2, 0.0 }
 0x3e6   :  { %4988 = vmatpush.bf16.msrb.mxu3 %v7161_v40  ;;  %v7195_v40 = vld [vmem:[%s9727_s3 + $0x8b8] sm:$0xff]  ;;  %5007 = vmatmul.bf16.vlgmr.msra.gmra.mxu0 %v2287_v11 }
 0x3e7   :  { %5058 = vmatpush.bf16.msrb.mxu0 %v7196_v15 }
 0x3e9   :  { %4967 = vmatpush.bf16.msrb.mxu1 %v7140_v9  ;;  %4978 = vmatpush.bf16.msrb.mxu2 %v7150_v0  ;;  %v4800_v28 = vpop.f32.mrf.mxu1  ;;  %v2286_v9 = vpack.c.bf16 %v2178_v44, %v2178_v44  ;;  %v2104_v0 = vmul.f32 %v9358_v6, %v2059_v20 }
 0x3ea   :  { %4989 = vmatpush.bf16.msrb.mxu3 %v7160_v49  ;;  %v4801_v39 = vadd.f32 %v4800_v28, %v4788_v46  ;;  %v4789_v37 = vpop.f32.mrf.mxu3  ;;  %v2060_v49 = vpop.f32.mrf.mxu0 }
 0x3eb   :  { %v2144_v59 = vadd.f32 %v9378_v56, %v2104_v0 }
 0x3ec   :  { %4968 = vmatmul.bf16.vlgmr.msrb.gmra.mxu1 %v2284_v58 }
 0x3ed   :  { %5012 = vmatpush.bf16.msra.mxu1 %v7179_v18  ;;  %4979 = vmatpush.bf16.msrb.mxu2 %v7149_v35  ;;  %v1962_v18 = vadd.f32 %v9118_v19, %v9092_v5  ;;  %v7193_v35 = vld [vmem:[%s9727_s3 + $0x8a8] sm:$0xff]  ;;  %v7172_v19 = vld [vmem:[%s9727_s3 + $0x800] sm:$0xff] }
 0x3ee   :  { %4990 = vmatpush.bf16.msrb.mxu3 %v7159_v12  ;;  %v2180_v12 = vmax.f32 %v2144_v59, 0.0  ;;  %v7211_v59 = vld [vmem:[%s9733_s4 + $0x38] sm:$0xff] }
 0x3ef   :  { %v2061_v58 = vadd.f32 %v2060_v49, %v1962_v18 }
 0x3f0   :  { %v2288_v57 = vpack.c.bf16 %v2180_v12, %v2180_v12  ;;  %v7208_v12 = vld [vmem:[%s9733_s4 + $0x20] sm:$0xff] }
 0x3f1   :  { %5013 = vmatpush.bf16.msra.mxu1 %v7178_v50  ;;  %4980 = vmatpush.bf16.msrb.mxu2 %v7148_v32  ;;  %v4802_v47 = vpop.f32.mrf.mxu1  ;;  %v7182_v50 = vld [vmem:[%s9727_s3 + $0x850] sm:$0xff]  ;;  %v2105_v23 = vmul.f32 %v9358_v6, %v2061_v58 }
 0x3f2   :  { %4991 = vmatpush.bf16.msrb.mxu3 %v7158_v33  ;;  %v2063_v10 = vpop.f32.mrf.mxu0  ;;  %v7210_v58 = vld [vmem:[%s9733_s4 + $0x30] sm:$0xff] }
 0x3f3   :  { %v2145_v32 = vadd.f32 %v9378_v56, %v2105_v23  ;;  %v2064_v45 = vadd.f32 %v2063_v10, %v1965_v63  ;;  %v7206_v10 = vld [vmem:[%s9733_s4 + $0x10] sm:$0xff] }
 0x3f4   :  { %4981 = vmatmul.bf16.vlgmr.msrb.gmra.mxu2 %v2285_v4 }
 0x3f5   :  { %5014 = vmatpush.bf16.msra.mxu1 %v7177_v62  ;;  %5025 = vmatpush.bf16.msra.mxu2 %v7187_v42  ;;  %v2181_v43 = vmax.f32 %v2145_v32, 0.0  ;;  %v2106_v42 = vmul.f32 %v9358_v6, %v2064_v45 }
 0x3f6   :  { %4992 = vmatpush.bf16.msrb.mxu3 %v7157_v16 }
 0x3f7   :  { %v4813_v60 = vpop.f32.mrf.mxu2  ;;  %v2289_v46 = vpack.c.bf16 %v2181_v43, %v2181_v43  ;;  %v2146_v4 = vadd.f32 %v9378_v56, %v2106_v42 }
 0x3f8   :  { %v4814_v5 = vadd.f32 %v4813_v60, %v4801_v39  ;;  %v7209_v60 = vld [vmem:[%s9733_s4 + $0x28] sm:$0xff] }
 0x3f9   :  { %5015 = vmatpush.bf16.msra.mxu1 %v7176_v38  ;;  %5026 = vmatpush.bf16.msra.mxu2 %v7186_v22  ;;  %v2182_v36 = vmax.f32 %v2146_v4, 0.0  ;;  %v5168_v4 = vld [vmem:[%s9734_s5 + $0x50] sm:$0xff] }
 0x3fa   :  { %4993 = vmatpush.bf16.msrb.mxu3 %v7156_v24  ;;  %v2065_v13 = vpop.f32.mrf.mxu0 }
 0x3fb   :  { %v2066_v8 = vadd.f32 %v2065_v13, %v1967_v48  ;;  %v2290_v39 = vpack.c.bf16 %v2182_v36, %v2182_v36  ;;  %v5171_v48 = vld [vmem:[%s9734_s5 + $0x68] sm:$0xff]  ;;  %v5170_v13 = vld [vmem:[%s9734_s5 + $0x60] sm:$0xff]  ;;  %v5165_v36 = vld [vmem:[%s9734_s5 + $0x38] sm:$0xff] }
 0x3fd   :  { %5016 = vmatpush.bf16.msra.mxu1 %v7175_v14  ;;  %5027 = vmatpush.bf16.msra.mxu2 %v7185_v29  ;;  %v2107_v51 = vmul.f32 %v9358_v6, %v2066_v8 }
 0x3fe   :  { %5038 = vmatpush.bf16.msra.mxu3 %v7195_v40 }
 0x3ff   :  { %4994 = vmatmul.bf16.vlgmr.msrb.gmra.mxu3 %v2286_v9  ;;  %v4815_v7 = vpop.f32.mrf.mxu2  ;;  %v2147_v34 = vadd.f32 %v9378_v56, %v2107_v51 }
 0x401   :  { %5017 = vmatpush.bf16.msra.mxu1 %v7174_v1  ;;  %5028 = vmatpush.bf16.msra.mxu2 %v7184_v52  ;;  %v2183_v2 = vmax.f32 %v2147_v34, 0.0  ;;  %v5166_v34 = vld [vmem:[%s9734_s5 + $0x40] sm:$0xff] }
 0x402   :  { %5039 = vmatpush.bf16.msra.mxu3 %v7194_v26  ;;  %v4826_v33 = vpop.f32.mrf.mxu3 }
 0x403   :  { %v4827_v62 = vadd.f32 %v4826_v33, %v4814_v5  ;;  %v2291_v22 = vpack.c.bf16 %v2183_v2, %v2183_v2 }
 0x405   :  { %5018 = vmatpush.bf16.msra.mxu1 %v7173_v54  ;;  %5029 = vmatpush.bf16.msra.mxu2 %v7183_v3 }
 0x406   :  { %5040 = vmatpush.bf16.msra.mxu3 %v7193_v35  ;;  %5059 = vmatmul.bf16.vlgmr.msrb.gmra.mxu0 %v2291_v22  ;;  %v5164_v22 = vld [vmem:[%s9734_s5 + $0x30] sm:$0xff] }
 0x409   :  { %5019 = vmatpush.bf16.msra.mxu1 %v7172_v19  ;;  %5030 = vmatpush.bf16.msra.mxu2 %v7182_v50  ;;  %v4839_v16 = vpop.f32.mrf.mxu1 }
 0x40a   :  { %5041 = vmatpush.bf16.msra.mxu3 %v7192_v21  ;;  %v4840_v38 = vadd.f32 %v4839_v16, %v4827_v62  ;;  %v4828_v28 = vpop.f32.mrf.mxu3  ;;  %v7207_v21 = vld [vmem:[%s9733_s4 + $0x18] sm:$0xff]  ;;  %v5167_v16 = vld [vmem:[%s9734_s5 + $0x48] sm:$0xff] }
 0x40c   :  { %5020 = vmatmul.bf16.vlgmr.msra.gmra.mxu1 %v2288_v57 }
 0x40d   :  { %5031 = vmatpush.bf16.msra.mxu2 %v7181_v55  ;;  %5144 = vmatpush.bf16.msrb.mxu1 %v7211_v59  ;;  %v7205_v55 = vld [vmem:[%s9733_s4 + $0x8] sm:$0xff]  ;;  %v7217_v59 = vld [vmem:[%s9735_s13] ss:$0 sm:$0xff] }
 0x40e   :  { %5042 = vmatpush.bf16.msra.mxu3 %v7191_v30  ;;  %v7204_v30 = vld [vmem:[%s9733_s4] sm:$0xff] }
 0x411   :  { %5032 = vmatpush.bf16.msra.mxu2 %v7180_v25  ;;  %v4841_v17 = vpop.f32.mrf.mxu1  ;;  %5145 = vmatpush.bf16.msrb.mxu1 %v7210_v58  ;;  %v5173_v25 = vld [vmem:[%s9734_s5 + $0x78] sm:$0xff] }
 0x412   :  { %5043 = vmatpush.bf16.msra.mxu3 %v7190_v41  ;;  %v5172_v41 = vld [vmem:[%s9734_s5 + $0x70] sm:$0xff]  ;;  %v5163_v17 = vld [vmem:[%s9734_s5 + $0x28] sm:$0xff] }
 0x414   :  { %5033 = vmatmul.bf16.vlgmr.msra.gmra.mxu2 %v2289_v46 }
 0x415   :  { %5146 = vmatpush.bf16.msrb.mxu1 %v7209_v60  ;;  %5178 = vmatpush.msrb.mxu2 %v5173_v25 }
 0x416   :  { %5044 = vmatpush.bf16.msra.mxu3 %v7189_v61  ;;  %v5169_v61 = vld [vmem:[%s9734_s5 + $0x58] sm:$0xff] }
 0x417   :  { %v4852_v6 = vpop.f32.mrf.mxu2  ;;  %5179 = vmatpush.msrb.mxu2 %v5172_v41 }
 0x418   :  { %v4853_v53 = vadd.f32 %v4852_v6, %v4840_v38 }
 0x419   :  { %5147 = vmatpush.bf16.msrb.mxu1 %v7208_v12  ;;  %5180 = vmatpush.msrb.mxu2 %v5171_v48 }
 0x41a   :  { %5045 = vmatpush.bf16.msra.mxu3 %v7188_v31 }
 0x41b   :  { %5181 = vmatpush.msrb.mxu2 %v5170_v13 }
 0x41d   :  { %5046 = vmatmul.bf16.vlgmr.msra.gmra.mxu3 %v2290_v39  ;;  %5148 = vmatpush.bf16.msrb.mxu1 %v7207_v21 }
 0x41e   :  { %5182 = vmatpush.msrb.mxu2 %v5169_v61 }
 0x41f   :  { %v4854_v11 = vpop.f32.mrf.mxu2 }
 0x420   :  { %5183 = vmatpush.msrb.mxu2 %v5168_v4 }
 0x421   :  { %5149 = vmatpush.bf16.msrb.mxu1 %v7206_v10 }
 0x422   :  { %v4865_v24 = vpop.f32.mrf.mxu3  ;;  %5184 = vmatpush.msrb.mxu2 %v5167_v16 }
 0x423   :  { %v4866_v14 = vadd.f32 %v4865_v24, %v4853_v53  ;;  %v7214_v24 = vld [vmem:[%s9730_s10] ss:$0 sm:$0xff] }
 0x424   :  { %5185 = vmatpush.msrb.mxu2 %v5166_v34 }
 0x425   :  { %5150 = vmatpush.bf16.msrb.mxu1 %v7205_v55 }
 0x426   :  { %5186 = vmatpush.msrb.mxu2 %v5165_v36 }
 0x428   :  { %5187 = vmatpush.msrb.mxu2 %v5164_v22 }
 0x429   :  { %v4878_v56 = vpop.f32.mrf.mxu1  ;;  %5151 = vmatpush.bf16.msrb.mxu1 %v7204_v30 }
 0x42a   :  { %v4879_v15 = vadd.f32 %v4878_v56, %v4866_v14  ;;  %v4867_v44 = vpop.f32.mrf.mxu3  ;;  %v5162_v56 = vld [vmem:[%s9734_s5 + $0x20] sm:$0xff]  ;;  %5188 = vmatpush.msrb.mxu2 %v5163_v17 }
 0x42b   :  { %v7215_v44 = vld [vmem:[%s9731_s11] ss:$0 sm:$0xff] }
 0x42c   :  { %5189 = vmatpush.msrb.mxu2 %v5162_v56 }
 0x431   :  { %v4880_v27 = vpop.f32.mrf.mxu1 }
 0x432   :  { %v5161_v27 = vld [vmem:[%s9734_s5 + $0x18] sm:$0xff] }
 0x433   :  { %5190 = vmatpush.msrb.mxu2 %v5161_v27 }
 0x437   :  { %v4891_v20 = vpop.f32.mrf.mxu2 }
 0x438   :  { %v4892_v29 = vadd.f32 %v4891_v20, %v4879_v15 }
 0x43f   :  { %v4893_v40 = vpop.f32.mrf.mxu2 }
 0x441   :  { %v4956_v52 = vpop.f32.mrf.mxu0 }
 0x442   :  { %v4904_v37 = vpop.f32.mrf.mxu3 }
 0x443   :  { %v4905_v1 = vadd.f32 %v4904_v37, %v4892_v29 }
 0x449   :  { %v4917_v47 = vpop.f32.mrf.mxu1  ;;  %v4958_v49 = vpop.f32.mrf.mxu0 }
 0x44a   :  { %v4906_v9 = vpop.f32.mrf.mxu3  ;;  %v4918_v32 = vadd.f32 %v4917_v47, %v4905_v1  ;;  %v5160_v47 = vld [vmem:[%s9734_s5 + $0x10] sm:$0xff] }
 0x44b   :  { %5191 = vmatpush.msrb.mxu2 %v5160_v47  ;;  %v5159_v9 = vld [vmem:[%s9734_s5 + $0x8] sm:$0xff] }
 0x44d   :  { %5192 = vmatpush.msrb.mxu2 %v5159_v9 }
 0x451   :  { %v4919_v0 = vpop.f32.mrf.mxu1 }
 0x452   :  { %v5158_v0 = vld [vmem:[%s9734_s5] sm:$0xff] }
 0x453   :  { %5193 = vmatpush.msrb.mxu2 %v5158_v0 }
 0x457   :  { %v4930_v26 = vpop.f32.mrf.mxu2 }
 0x458   :  { %v4931_v7 = vadd.f32 %v4930_v26, %v4918_v32 }
 0x45f   :  { %v4932_v18 = vpop.f32.mrf.mxu2 }
 0x462   :  { %v4943_v54 = vpop.f32.mrf.mxu3 }
 0x463   :  { %v5008_v19 = vpop.f32.mrf.mxu0  ;;  %v4944_v62 = vadd.f32 %v4943_v54, %v4931_v7 }
 0x465   :  { %v4957_v43 = vadd.f32 %v4956_v52, %v4944_v62  ;;  %v7216_v52 = vld [vmem:[%s9732_s12] ss:$0 sm:$0xff] }
 0x469   :  { %v4969_v3 = vpop.f32.mrf.mxu1 }
 0x46a   :  { %v4945_v35 = vpop.f32.mrf.mxu3  ;;  %v4970_v8 = vadd.f32 %v4969_v3, %v4957_v43 }
 0x46b   :  { %v5010_v23 = vpop.f32.mrf.mxu0 }
 0x471   :  { %v4971_v5 = vpop.f32.mrf.mxu1 }
 0x477   :  { %v4982_v50 = vpop.f32.mrf.mxu2 }
 0x478   :  { %v4983_v46 = vadd.f32 %v4982_v50, %v4970_v8 }
 0x47f   :  { %v4984_v63 = vpop.f32.mrf.mxu2 }
 0x482   :  { %v4995_v57 = vpop.f32.mrf.mxu3 }
 0x483   :  { %v4996_v51 = vadd.f32 %v4995_v57, %v4983_v46  ;;  %v5060_v28 = vpop.f32.mrf.mxu0 }
 0x485   :  { %v5009_v31 = vadd.f32 %v5008_v19, %v4996_v51 }
 0x489   :  { %v5021_v45 = vpop.f32.mrf.mxu1 }
 0x48a   :  { %v4997_v33 = vpop.f32.mrf.mxu3  ;;  %v5022_v2 = vadd.f32 %v5021_v45, %v5009_v31 }
 0x48b   :  { %v5062_v14 = vpop.f32.mrf.mxu0 }
 0x491   :  { %v5023_v42 = vpop.f32.mrf.mxu1 }
 0x497   :  { %v5034_v38 = vpop.f32.mrf.mxu2 }
 0x498   :  { %v5035_v39 = vadd.f32 %v5034_v38, %v5022_v2 }
 0x49f   :  { %v5036_v6 = vpop.f32.mrf.mxu2 }
 0x4a0   :  { %v5047_v53 = vpop.f32.mrf.mxu3 }
 0x4a1   :  { %v5048_v11 = vadd.f32 %v5047_v53, %v5035_v39 }
 0x4a3   :  { %v5061_v15 = vadd.f32 %v5060_v28, %v5048_v11 }
 0x4a5   :  { %v5068_v20 = vmul.f32 %v7214_v24, %v5061_v15 }
 0x4a7   :  { %v5073_v29 = vadd.f32 %v7215_v44, %v5068_v20 }
 0x4a8   :  { %v5049_v40 = vpop.f32.mrf.mxu3 }
 0x4a9   :  { %v5074_v37 = vmax.f32 %v5073_v29, 0.0 }
 0x4ab   :  { %v5075_v1 = vpack.c.bf16 %v5074_v37, %v5074_v37 }
 0x4ad   :  { %5152 = vmatmul.bf16.vlgmr.msrb.gmra.mxu1 %v5075_v1 }
 0x52a   :  { %v5153_v26 = vpop.f32.mrf.mxu1 }
 0x52b   :  { %v5154_v49 = vadd.f32 %v7216_v52, %v5153_v26 }
 0x52d   :  { %v5157_v18 = vmax.f32 %v5154_v49, 0.0 }
 0x52f   :  { %5194 = vmatmul.f32.vlgmr.msrb.gmra.mxu2 %v5157_v18 }
 0x532   :  { %v5155_v54 = vpop.f32.mrf.mxu1 }
 0x5b2   :  { %v5195_v3 = vpop.f32.mrf.mxu2 }
 0x5b3   :  { %v5196_v35 = vadd.f32 %v7217_v59, %v5195_v3 }
 0x5b5   :  { %5199 = vst.msk [vmem:[%s9736_s14] sm:$0xff] %vm5198_vm1, %v5196_v35 }

</bundles_post_ra>
